<compile_context>
chip_gen: v7x
topology: tpu7x:2x2x1
jax: 0.10.0
libtpu: 0.0.40
codegen_flags: <defaults>
</compile_context>

<pallas_src>
import jax
import jax.numpy as jnp
from jax.experimental import pallas as pl
from jax.experimental.pallas import tpu as pltpu

# ----------------------- configuration (small synthetic sizes) -----------------------
EMBED_DIM = 32           # cfg.MODEL.BILINEAR.DIM
ATT_HEADS = 4            # cfg.MODEL.BILINEAR.HEAD
HEAD_DIM = EMBED_DIM // ATT_HEADS
ATT_MID_DIM = [HEAD_DIM, 16, HEAD_DIM]   # [head_dim, mid, head_dim]
LAYER_NUM = 2            # cfg.MODEL.BILINEAR.ENCODE.LAYERS
ELU_ALPHA = 1.3          # CELU alpha (act_type='celu')
EPS = 1e-5               # GroupNorm / LayerNorm eps (torch default)
NEG_INF = -1e9

D4 = 4 * EMBED_DIM                    # q|k|v1|v2 concatenated width
HM1 = ATT_HEADS * ATT_MID_DIM[1]      # flattened SCAtt mid width
SC_W = ATT_HEADS + EMBED_DIM          # fused alpha_spatial | alpha_channel width


def _celu(v):
    # CELU(alpha).  (exp(v/a) - 1 instead of expm1; precision delta is negligible here.)
    return jnp.where(v > 0.0, v, ELU_ALPHA * (jnp.exp(v / ELU_ALPHA) - 1.0))


# ----------------------------------- fused kernel ------------------------------------
def encoder_kernel(x_ref, mcol_ref, mrow_ref, R0_ref, E_ref,
                   Win_ref, inaff_ref, P_ref,
                   Wmid_ref, bmid_ref, Wsc_ref, bsc_ref,
                   Wbfg_ref, Wbfx_ref, bfaff_ref,
                   GTh_ref, Wp_ref, paff_ref,
                   att_out_ref, gv_out_ref):
    """Whole LowRankBilinearEncoder forward for TB batch elements (tokens flattened)."""
    x = x_ref[...]                         # [N, D]   N = TB*M flattened tokens
    mcol = mcol_ref[...]                   # [N, 1]   att_mask as a column (0/1)
    mrow = mrow_ref[0]                     # [1, N]   att_mask as a row
    R0 = R0_ref[...]                       # [TB, N]  block-membership (token -> batch)
    E = E_ref[...]                         # [N, TB]  R0^T (batch -> token broadcast)
    P = P_ref[...]                         # [4D, 4D] GroupNorm group-averaging matrix
    GTh = GTh_ref[...]                     # [H, D]   per-head -> channel broadcast

    N, D = x.shape
    TB = R0.shape[0]
    H = ATT_HEADS

    is_pad = mcol == 0.0
    Rm = R0 * mrow                                                      # masked reduce matrix
    cnt = jnp.dot(R0, mcol, preferred_element_type=jnp.float32)         # [TB, 1] tokens/batch
    inv_cnt = pl.reciprocal(jnp.maximum(cnt, 1.0), approx=True)         # guard all-masked

    # gv_feat = sum(att_feats * mask, 1) / sum(mask, 1)   (segmented reduce on the MXU)
    gv = jnp.dot(Rm, x, preferred_element_type=jnp.float32) * inv_cnt   # [TB, D]
    feats = [gv]

    for l in range(LAYER_NUM):             # unrolled; stacked weights stay VMEM-resident
        # ---- fused in_proj q|k|v1|v2: ONE matmul + ONE CELU + ONE GroupNorm ----
        aff = inaff_ref[l]                 # [3, 4D]  rows: bias, gn_gamma, gn_beta
        z = jnp.concatenate([x, gv], axis=0)                             # [N+TB, D]
        r = _celu(jnp.dot(z, Win_ref[l], preferred_element_type=jnp.float32)
                  + aff[0:1, :])                                         # [N+TB, 4D]
        # group moments via the precomputed averaging matrix P (no lane concat)
        mean = jnp.dot(r, P, preferred_element_type=jnp.float32)
        ey2 = jnp.dot(r * r, P, preferred_element_type=jnp.float32)
        var = jnp.maximum(ey2 - mean * mean, 0.0)                        # clamp rounding
        yn = (r - mean) * jax.lax.rsqrt(var + EPS) * aff[1:2, :] + aff[2:3, :]

        k = yn[0:N, D:2 * D]               # [N, D]
        v2 = yn[0:N, 3 * D:4 * D]          # [N, D]
        q = yn[N:N + TB, 0:D]              # [TB, D]
        v1 = yn[N:N + TB, 2 * D:3 * D]     # [TB, D]

        # ---- SCAtt (low-rank bilinear attention), heads flattened along D ----
        q_exp = jnp.dot(E, q, preferred_element_type=jnp.float32)        # broadcast q to tokens
        att_mid = _celu(jnp.dot(k * q_exp, Wmid_ref[l],
                                preferred_element_type=jnp.float32) + bmid_ref[l])  # [N, H*m1]
        pool = jnp.dot(Rm, att_mid, preferred_element_type=jnp.float32) * inv_cnt   # [TB, H*m1]

        # fused "last" (spatial) + "last2" (channel) linears: one matmul
        sc_in = jnp.concatenate([att_mid, pool], axis=0)                  # [N+TB, H*m1]
        sc = jnp.dot(sc_in, Wsc_ref[l], preferred_element_type=jnp.float32) + bsc_ref[l]
        alpha_sp = sc[0:N, 0:H]                                           # [N, H]
        alpha_ch = jax.nn.sigmoid(sc[N:N + TB, H:H + D])                  # [TB, D]

        # masked softmax over tokens, segmented per batch/head via R0 / E matmuls.
        # A single column-max over the whole block is used as the shift: softmax is
        # shift-invariant per segment, and padded rows (NEG_INF) underflow to exactly 0.
        alpha_sp = jnp.where(is_pad, NEG_INF, alpha_sp)
        alpha_sp = alpha_sp - jnp.max(alpha_sp, axis=0, keepdims=True)
        e = jnp.exp(alpha_sp)
        ssum = jnp.dot(R0, e, preferred_element_type=jnp.float32)          # [TB, H]
        inv_ssum = pl.reciprocal(jnp.maximum(ssum, 1e-20), approx=True)    # guard all-masked
        alpha = e * jnp.dot(E, inv_ssum, preferred_element_type=jnp.float32)   # [N, H]

        alpha_exp = jnp.dot(alpha, GTh, preferred_element_type=jnp.float32)    # [N, D]
        val2 = jnp.dot(R0, alpha_exp * v2, preferred_element_type=jnp.float32) # [TB, D]
        gv = v1 * val2 * alpha_ch                                               # [TB, D]
        feats.append(gv)

        # ---- bifeat_emb (split matmul) + relu + residual + LayerNorm ----
        baff = bfaff_ref[l]                # [3, D]  rows: bias, ln_gamma, ln_beta
        gcon = jnp.dot(gv, Wbfg_ref[l], preferred_element_type=jnp.float32)     # [TB, D]
        xcon = jnp.dot(x, Wbfx_ref[l], preferred_element_type=jnp.float32)      # [N, D]
        h = jnp.maximum(xcon + jnp.dot(E, gcon, preferred_element_type=jnp.float32)
                        + baff[0:1, :], 0.0)
        y = h + x
        mu = jnp.mean(y, axis=-1, keepdims=True)
        lvar = jnp.mean((y - mu) * (y - mu), axis=-1, keepdims=True)
        x = (y - mu) * jax.lax.rsqrt(lvar + EPS) * baff[1:2, :] + baff[2:3, :]

    att_out_ref[...] = x

    # ---- final: proj(cat(feat_arr)) -> LayerNorm (done in-kernel; no HBM hop) ----
    paff = paff_ref[...]                   # [3, D]  rows: bias, ln_gamma, ln_beta
    gv_cat = jnp.concatenate(feats, axis=1)                                      # [TB, (L+1)D]
    gp = jnp.dot(gv_cat, Wp_ref[...], preferred_element_type=jnp.float32) + paff[0:1, :]
    mu = jnp.mean(gp, axis=-1, keepdims=True)
    pvar = jnp.mean((gp - mu) * (gp - mu), axis=-1, keepdims=True)
    gv_out_ref[0] = (gp - mu) * jax.lax.rsqrt(pvar + EPS) * paff[1:2, :] + paff[2:3, :]


# ------------------------------------- wrapper ----------------------------------------
def encoder_forward(att_feats, att_mask, params, tile_b=4):
    """LowRankBilinearEncoder.forward (mode=None / 'v'), eval mode (dropout = identity)."""
    B, M, D = att_feats.shape
    TB = tile_b
    # pad batch to a multiple of TB with fully-masked rows (guards keep them finite)
    Bp = ((B + TB - 1) // TB) * TB
    if Bp != B:
        att_feats = jnp.pad(att_feats, ((0, Bp - B), (0, 0), (0, 0)))
        att_mask = jnp.pad(att_mask, ((0, Bp - B), (0, 0)))
    G = Bp // TB
    N = TB * M            # flattened tokens per grid step (must be a multiple of 8)
    L = LAYER_NUM

    x_flat = att_feats.reshape(Bp * M, D).astype(jnp.float32)
    m_col = att_mask.reshape(Bp * M, 1).astype(jnp.float32)
    m_row = att_mask.reshape(G, 1, N).astype(jnp.float32)

    # segment matrices: R0 reduces tokens -> batch, E broadcasts batch -> tokens
    R0 = jnp.kron(jnp.eye(TB, dtype=jnp.float32), jnp.ones((1, M), jnp.float32))  # [TB, N]
    E = R0.T                                                                        # [N, TB]

    def full(shape):
        # whole array, constant block index -> fetched once, resident across grid steps
        return pl.BlockSpec(shape, lambda g, _r=len(shape): (0,) * _r)

    in_specs = [
        pl.BlockSpec((N, D), lambda g: (g, 0)),         # att_feats (flattened tokens)
        pl.BlockSpec((N, 1), lambda g: (g, 0)),         # att_mask as column
        pl.BlockSpec((1, 1, N), lambda g: (g, 0, 0)),   # att_mask as row
        full((TB, N)),                    # R0
        full((N, TB)),                    # E
        full((L, D, D4)),                 # W_in    (q|k|v1|v2, right-multiply form)
        full((L, 3, D4)),                 # in_aff  (bias, gn_gamma, gn_beta)
        full((D4, D4)),                   # P       (GroupNorm group-averaging matrix)
        full((L, D, HM1)),                # W_mid   (block-diag basic)
        full((L, 1, HM1)),                # b_mid
        full((L, HM1, SC_W)),             # W_sc    (last | last2, block-diag)
        full((L, 1, SC_W)),               # b_sc
        full((L, D, D)),                  # W_bf_g  (bifeat_emb, gv half)
        full((L, D, D)),                  # W_bf_x  (bifeat_emb, att_feats half)
        full((L, 3, D)),                  # bf_aff  (bias, ln_gamma, ln_beta)
        full((ATT_HEADS, D)),             # GT_head
        full(((L + 1) * D, D)),           # W_proj
        full((3, D)),                     # p_aff   (bias, ln_gamma, ln_beta)
    ]
    out_specs = (pl.BlockSpec((N, D), lambda g: (g, 0)),
                 pl.BlockSpec((1, TB, D), lambda g: (g, 0, 0)))
    out_shape = (jax.ShapeDtypeStruct((Bp * M, D), jnp.float32),
                 jax.ShapeDtypeStruct((G, TB, D), jnp.float32))

    att_out, gv_out = pl.pallas_call(
        encoder_kernel,
        grid=(G,),
        in_specs=in_specs,
        out_specs=out_specs,
        out_shape=out_shape,
        compiler_params=pltpu.CompilerParams(
            dimension_semantics=("parallel",),
            vmem_limit_bytes=32 * 1024 * 1024),
    )(x_flat, m_col, m_row, R0, E,
      params["W_in"], params["in_aff"], params["P"],
      params["W_mid"], params["b_mid"], params["W_sc"], params["b_sc"],
      params["W_bf_g"], params["W_bf_x"], params["bf_aff"],
      params["GT_head"], params["W_proj"], params["p_aff"])

    att_out = att_out.reshape(Bp, M, D)[:B]
    gv_out = gv_out.reshape(Bp, D)[:B]
    return att_out, gv_out


# ------------------------------ parameter construction --------------------------------
def init_params(key):
    D, H, Dh = EMBED_DIM, ATT_HEADS, HEAD_DIM
    m1 = ATT_MID_DIM[1]
    L = LAYER_NUM
    keys = iter(jax.random.split(key, 12 * L + 4))

    def W(shape, scale=0.05):
        return (scale * jax.random.normal(next(keys), shape)).astype(jnp.float32)

    eyeH = jnp.eye(H, dtype=jnp.float32)
    ones_D = jnp.ones((D,), jnp.float32)
    zeros_D = jnp.zeros((D,), jnp.float32)

    W_in, in_aff, W_mid, b_mid, W_sc, b_sc = ([] for _ in range(6))
    W_bf_g, W_bf_x, bf_aff = ([] for _ in range(3))
    for _ in range(L):
        # in_proj_{q,k,v1,v2}: Linear(D,D) stored as right-multiply matrices
        Wi = W((4, D, D))
        bi = W((4, D))
        W_in.append(jnp.concatenate([Wi[0], Wi[1], Wi[2], Wi[3]], axis=1))     # [D, 4D]
        in_aff.append(jnp.stack([bi.reshape(-1),
                                 jnp.ones((4 * D,), jnp.float32),              # GN gamma
                                 jnp.zeros((4 * D,), jnp.float32)]))           # GN beta
        # SCAtt weights (torch shapes) lifted to block-diagonal over heads
        Wb1 = W((m1, Dh)); bb1 = W((m1,))                  # attention_basic Linear(Dh, m1)
        W_mid.append(jnp.kron(eyeH, Wb1.T))                # [D, H*m1]
        b_mid.append(jnp.tile(bb1, H).reshape(1, H * m1))
        Wls = W((1, m1)); bls = W(())                      # attention_last  Linear(m1, 1)
        Wlc = W((Dh, m1)); blc = W((Dh,))                  # attention_last2 Linear(m1, Dh)
        W_sc.append(jnp.concatenate([jnp.kron(eyeH, Wls.T),      # [H*m1, H]
                                     jnp.kron(eyeH, Wlc.T)],     # [H*m1, D]
                                    axis=1))                     # [H*m1, H+D]
        b_sc.append(jnp.concatenate([jnp.full((1, H), bls, jnp.float32),
                                     jnp.tile(blc, H).reshape(1, D)], axis=1))
        # bifeat_emb Linear(2D, D); input order is cat([gv, att_feats]) -> split weights
        Wb = W((D, 2 * D)); bb = W((D,))
        W_bf_g.append(Wb[:, :D].T)                         # [D, D]
        W_bf_x.append(Wb[:, D:].T)                         # [D, D]
        bf_aff.append(jnp.stack([bb, ones_D, zeros_D]))    # [3, D]

    # head membership / GroupNorm averaging matrices
    GT_head = jnp.kron(eyeH, jnp.ones((1, Dh), jnp.float32))                  # [H, D]
    P = jnp.kron(jnp.eye(4 * H, dtype=jnp.float32),
                 jnp.ones((Dh, Dh), jnp.float32)) / float(Dh)                 # [4D, 4D]

    proj_W = W((D, (L + 1) * D))           # torch Linear((L+1)D, D) weight
    proj_b = W((D,))

    return dict(
        W_in=jnp.stack(W_in), in_aff=jnp.stack(in_aff),
        W_mid=jnp.stack(W_mid), b_mid=jnp.stack(b_mid),
        W_sc=jnp.stack(W_sc), b_sc=jnp.stack(b_sc),
        W_bf_g=jnp.stack(W_bf_g), W_bf_x=jnp.stack(W_bf_x), bf_aff=jnp.stack(bf_aff),
        GT_head=GT_head, P=P,
        W_proj=proj_W.T, p_aff=jnp.stack([proj_b, ones_D, zeros_D]),
    )


# ------------------------------------- main --------------------------------------------
if __name__ == "__main__":
    key = jax.random.PRNGKey(0)
    kx, kp = jax.random.split(key)

    B, M, D = 8, 8, EMBED_DIM
    att_feats = jax.random.normal(kx, (B, M, D), dtype=jnp.float32)
    lengths = jnp.array([8, 5, 8, 3, 6, 8, 7, 4], dtype=jnp.int32)
    att_mask = (jnp.arange(M)[None, :] < lengths[:, None]).astype(jnp.float32)  # [B, M]

    params = init_params(kp)
    fwd = jax.jit(lambda a, m: encoder_forward(a, m, params, tile_b=4))
    att_out, gv_out = fwd(att_feats, att_mask)
    jax.block_until_ready((att_out, gv_out))

    assert att_out.shape == (B, M, D) and gv_out.shape == (B, D)
    assert bool(jnp.all(jnp.isfinite(att_out))) and bool(jnp.all(jnp.isfinite(gv_out)))
    print("KERNEL_OK")
</pallas_src>

<mosaic_0001>
module attributes {stable_mosaic.version = 11 : i64} {
  func.func @encoder_kernel(%arg0: i32, %arg1: memref<32x32xf32, #tpu.memory_space<vmem>>, %arg2: memref<32x1xf32, #tpu.memory_space<vmem>>, %arg3: memref<1x1x32xf32, #tpu.memory_space<vmem>>, %arg4: memref<4x32xf32, #tpu.memory_space<vmem>>, %arg5: memref<32x4xf32, #tpu.memory_space<vmem>>, %arg6: memref<2x32x128xf32, #tpu.memory_space<vmem>>, %arg7: memref<2x3x128xf32, #tpu.memory_space<vmem>>, %arg8: memref<128x128xf32, #tpu.memory_space<vmem>>, %arg9: memref<2x32x64xf32, #tpu.memory_space<vmem>>, %arg10: memref<2x1x64xf32, #tpu.memory_space<vmem>>, %arg11: memref<2x64x36xf32, #tpu.memory_space<vmem>>, %arg12: memref<2x1x36xf32, #tpu.memory_space<vmem>>, %arg13: memref<2x32x32xf32, #tpu.memory_space<vmem>>, %arg14: memref<2x32x32xf32, #tpu.memory_space<vmem>>, %arg15: memref<2x3x32xf32, #tpu.memory_space<vmem>>, %arg16: memref<4x32xf32, #tpu.memory_space<vmem>>, %arg17: memref<96x32xf32, #tpu.memory_space<vmem>>, %arg18: memref<3x32xf32, #tpu.memory_space<vmem>>, %arg19: memref<32x32xf32, #tpu.memory_space<vmem>>, %arg20: memref<1x4x32xf32, #tpu.memory_space<vmem>>) attributes {dimension_semantics = [#tpu.dimension_semantics<parallel>], iteration_bounds = array<i64: 2>, scalar_prefetch = 0 : i64, scratch_operands = 0 : i64, tpu.core_type = #tpu.core_type<tc>, window_params = [{transform_indices = @transform_0, window_bounds = array<i64: 32, 32>}, {transform_indices = @transform_1, window_bounds = array<i64: 32, 1>}, {transform_indices = @transform_2, window_bounds = array<i64: 1, 1, 32>}, {pipeline_mode = #tpu.pipeline_mode<synchronous>, transform_indices = @transform_3, window_bounds = array<i64: 4, 32>}, {pipeline_mode = #tpu.pipeline_mode<synchronous>, transform_indices = @transform_4, window_bounds = array<i64: 32, 4>}, {pipeline_mode = #tpu.pipeline_mode<synchronous>, transform_indices = @transform_5, window_bounds = array<i64: 2, 32, 128>}, {pipeline_mode = #tpu.pipeline_mode<synchronous>, transform_indices = @transform_6, window_bounds = array<i64: 2, 3, 128>}, {pipeline_mode = #tpu.pipeline_mode<synchronous>, transform_indices = @transform_7, window_bounds = array<i64: 128, 128>}, {pipeline_mode = #tpu.pipeline_mode<synchronous>, transform_indices = @transform_8, window_bounds = array<i64: 2, 32, 64>}, {pipeline_mode = #tpu.pipeline_mode<synchronous>, transform_indices = @transform_9, window_bounds = array<i64: 2, 1, 64>}, {pipeline_mode = #tpu.pipeline_mode<synchronous>, transform_indices = @transform_10, window_bounds = array<i64: 2, 64, 36>}, {pipeline_mode = #tpu.pipeline_mode<synchronous>, transform_indices = @transform_11, window_bounds = array<i64: 2, 1, 36>}, {pipeline_mode = #tpu.pipeline_mode<synchronous>, transform_indices = @transform_12, window_bounds = array<i64: 2, 32, 32>}, {pipeline_mode = #tpu.pipeline_mode<synchronous>, transform_indices = @transform_13, window_bounds = array<i64: 2, 32, 32>}, {pipeline_mode = #tpu.pipeline_mode<synchronous>, transform_indices = @transform_14, window_bounds = array<i64: 2, 3, 32>}, {pipeline_mode = #tpu.pipeline_mode<synchronous>, transform_indices = @transform_15, window_bounds = array<i64: 4, 32>}, {pipeline_mode = #tpu.pipeline_mode<synchronous>, transform_indices = @transform_16, window_bounds = array<i64: 96, 32>}, {pipeline_mode = #tpu.pipeline_mode<synchronous>, transform_indices = @transform_17, window_bounds = array<i64: 3, 32>}, {transform_indices = @transform_18, window_bounds = array<i64: 32, 32>}, {transform_indices = @transform_19, window_bounds = array<i64: 1, 4, 32>}]} {
    %c0 = arith.constant 0 : index
    %c0_0 = arith.constant 0 : index
    %0 = vector.load %arg1[%c0, %c0_0] : memref<32x32xf32, #tpu.memory_space<vmem>>, vector<32x32xf32>
    %c0_1 = arith.constant 0 : index
    %c0_2 = arith.constant 0 : index
    %1 = vector.load %arg2[%c0_1, %c0_2] : memref<32x1xf32, #tpu.memory_space<vmem>>, vector<32x1xf32>
    %c0_3 = arith.constant 0 : index
    %c0_4 = arith.constant 0 : index
    %c0_5 = arith.constant 0 : index
    %2 = vector.load %arg3[%c0_3, %c0_4, %c0_5] : memref<1x1x32xf32, #tpu.memory_space<vmem>>, vector<1x1x32xf32>
    %3 = vector.shape_cast %2 : vector<1x1x32xf32> to vector<1x32xf32>
    %c0_6 = arith.constant 0 : index
    %c0_7 = arith.constant 0 : index
    %4 = vector.load %arg4[%c0_6, %c0_7] : memref<4x32xf32, #tpu.memory_space<vmem>>, vector<4x32xf32>
    %c0_8 = arith.constant 0 : index
    %c0_9 = arith.constant 0 : index
    %5 = vector.load %arg5[%c0_8, %c0_9] : memref<32x4xf32, #tpu.memory_space<vmem>>, vector<32x4xf32>
    %c0_10 = arith.constant 0 : index
    %c0_11 = arith.constant 0 : index
    %6 = vector.load %arg8[%c0_10, %c0_11] : memref<128x128xf32, #tpu.memory_space<vmem>>, vector<128x128xf32>
    %c0_12 = arith.constant 0 : index
    %c0_13 = arith.constant 0 : index
    %7 = vector.load %arg16[%c0_12, %c0_13] : memref<4x32xf32, #tpu.memory_space<vmem>>, vector<4x32xf32>
    %cst = arith.constant 0.000000e+00 : f32
    %8 = vector.broadcast %cst : f32 to vector<32x1xf32>
    %9 = arith.cmpf oeq, %1, %8 : vector<32x1xf32>
    %10 = vector.broadcast %3 : vector<1x32xf32> to vector<4x32xf32>
    %11 = arith.mulf %4, %10 : vector<4x32xf32>
    %cst_14 = arith.constant dense<0.000000e+00> : vector<4x1xf32>
    %12 = tpu.matmul %4, %1, %cst_14 {dimension_numbers = #tpu.dot_dimension_numbers<[1], [0], [0], [1], [0, 0, 1, 1], [], []>} : vector<4x32xf32>, vector<32x1xf32>, vector<4x1xf32> -> vector<4x1xf32>
    %cst_15 = arith.constant 1.000000e+00 : f32
    %13 = vector.broadcast %cst_15 : f32 to vector<4x1xf32>
    %14 = arith.maximumf %12, %13 : vector<4x1xf32>
    %15 = tpu.reciprocal %14 {approx = true} : vector<4x1xf32> -> vector<4x1xf32>
    %cst_16 = arith.constant dense<0.000000e+00> : vector<4x32xf32>
    %16 = tpu.matmul %11, %0, %cst_16 {dimension_numbers = #tpu.dot_dimension_numbers<[1], [0], [0], [1], [0, 0, 1, 1], [], []>} : vector<4x32xf32>, vector<32x32xf32>, vector<4x32xf32> -> vector<4x32xf32>
    %17 = vector.broadcast %15 : vector<4x1xf32> to vector<4x32xf32>
    %18 = arith.mulf %16, %17 : vector<4x32xf32>
    %c0_17 = arith.constant 0 : index
    %c0_18 = arith.constant 0 : index
    %c0_19 = arith.constant 0 : index
    %19 = vector.load %arg7[%c0_17, %c0_18, %c0_19] : memref<2x3x128xf32, #tpu.memory_space<vmem>>, vector<1x3x128xf32>
    %20 = vector.shape_cast %19 : vector<1x3x128xf32> to vector<3x128xf32>
    %21 = tpu.concatenate %0, %18 in 0 : vector<32x32xf32>, vector<4x32xf32> -> vector<36x32xf32>
    %c0_20 = arith.constant 0 : index
    %c0_21 = arith.constant 0 : index
    %c0_22 = arith.constant 0 : index
    %22 = vector.load %arg6[%c0_20, %c0_21, %c0_22] : memref<2x32x128xf32, #tpu.memory_space<vmem>>, vector<1x32x128xf32>
    %23 = vector.shape_cast %22 : vector<1x32x128xf32> to vector<32x128xf32>
    %cst_23 = arith.constant dense<0.000000e+00> : vector<36x128xf32>
    %24 = tpu.matmul %21, %23, %cst_23 {dimension_numbers = #tpu.dot_dimension_numbers<[1], [0], [0], [1], [0, 0, 1, 1], [], []>} : vector<36x32xf32>, vector<32x128xf32>, vector<36x128xf32> -> vector<36x128xf32>
    %25 = vector.extract_strided_slice %20 {offsets = [0, 0], sizes = [1, 128], strides = [1, 1]} : vector<3x128xf32> to vector<1x128xf32>
    %26 = vector.broadcast %25 : vector<1x128xf32> to vector<36x128xf32>
    %27 = arith.addf %24, %26 : vector<36x128xf32>
    %cst_24 = arith.constant 0.000000e+00 : f32
    %28 = vector.broadcast %cst_24 : f32 to vector<36x128xf32>
    %29 = arith.cmpf ogt, %27, %28 : vector<36x128xf32>
    %cst_25 = arith.constant 1.300000e+00 : f32
    %30 = vector.broadcast %cst_25 : f32 to vector<36x128xf32>
    %31 = arith.divf %27, %30 : vector<36x128xf32>
    %32 = math.exp %31 : vector<36x128xf32>
    %cst_26 = arith.constant 1.000000e+00 : f32
    %33 = vector.broadcast %cst_26 : f32 to vector<36x128xf32>
    %34 = arith.subf %32, %33 : vector<36x128xf32>
    %cst_27 = arith.constant 1.300000e+00 : f32
    %35 = vector.broadcast %cst_27 : f32 to vector<36x128xf32>
    %36 = arith.mulf %35, %34 : vector<36x128xf32>
    %37 = arith.select %29, %27, %36 : vector<36x128xi1>, vector<36x128xf32>
    %cst_28 = arith.constant dense<0.000000e+00> : vector<36x128xf32>
    %38 = tpu.matmul %37, %6, %cst_28 {dimension_numbers = #tpu.dot_dimension_numbers<[1], [0], [0], [1], [0, 0, 1, 1], [], []>} : vector<36x128xf32>, vector<128x128xf32>, vector<36x128xf32> -> vector<36x128xf32>
    %39 = arith.mulf %37, %37 : vector<36x128xf32>
    %cst_29 = arith.constant dense<0.000000e+00> : vector<36x128xf32>
    %40 = tpu.matmul %39, %6, %cst_29 {dimension_numbers = #tpu.dot_dimension_numbers<[1], [0], [0], [1], [0, 0, 1, 1], [], []>} : vector<36x128xf32>, vector<128x128xf32>, vector<36x128xf32> -> vector<36x128xf32>
    %41 = arith.mulf %38, %38 : vector<36x128xf32>
    %42 = arith.subf %40, %41 : vector<36x128xf32>
    %cst_30 = arith.constant 0.000000e+00 : f32
    %43 = vector.broadcast %cst_30 : f32 to vector<36x128xf32>
    %44 = arith.maximumf %42, %43 : vector<36x128xf32>
    %45 = arith.subf %37, %38 : vector<36x128xf32>
    %cst_31 = arith.constant 9.99999974E-6 : f32
    %46 = vector.broadcast %cst_31 : f32 to vector<36x128xf32>
    %47 = arith.addf %44, %46 : vector<36x128xf32>
    %48 = math.rsqrt %47 : vector<36x128xf32>
    %49 = arith.mulf %45, %48 : vector<36x128xf32>
    %50 = vector.extract_strided_slice %20 {offsets = [1, 0], sizes = [1, 128], strides = [1, 1]} : vector<3x128xf32> to vector<1x128xf32>
    %51 = vector.broadcast %50 : vector<1x128xf32> to vector<36x128xf32>
    %52 = arith.mulf %49, %51 : vector<36x128xf32>
    %53 = vector.extract_strided_slice %20 {offsets = [2, 0], sizes = [1, 128], strides = [1, 1]} : vector<3x128xf32> to vector<1x128xf32>
    %54 = vector.broadcast %53 : vector<1x128xf32> to vector<36x128xf32>
    %55 = arith.addf %52, %54 : vector<36x128xf32>
    %56 = vector.extract_strided_slice %55 {offsets = [0, 32], sizes = [32, 32], strides = [1, 1]} : vector<36x128xf32> to vector<32x32xf32>
    %57 = vector.extract_strided_slice %55 {offsets = [0, 96], sizes = [32, 32], strides = [1, 1]} : vector<36x128xf32> to vector<32x32xf32>
    %58 = vector.extract_strided_slice %55 {offsets = [32, 0], sizes = [4, 32], strides = [1, 1]} : vector<36x128xf32> to vector<4x32xf32>
    %59 = vector.extract_strided_slice %55 {offsets = [32, 64], sizes = [4, 32], strides = [1, 1]} : vector<36x128xf32> to vector<4x32xf32>
    %cst_32 = arith.constant dense<0.000000e+00> : vector<32x32xf32>
    %60 = tpu.matmul %5, %58, %cst_32 {dimension_numbers = #tpu.dot_dimension_numbers<[1], [0], [0], [1], [0, 0, 1, 1], [], []>} : vector<32x4xf32>, vector<4x32xf32>, vector<32x32xf32> -> vector<32x32xf32>
    %61 = arith.mulf %56, %60 : vector<32x32xf32>
    %c0_33 = arith.constant 0 : index
    %c0_34 = arith.constant 0 : index
    %c0_35 = arith.constant 0 : index
    %62 = vector.load %arg9[%c0_33, %c0_34, %c0_35] : memref<2x32x64xf32, #tpu.memory_space<vmem>>, vector<1x32x64xf32>
    %63 = vector.shape_cast %62 : vector<1x32x64xf32> to vector<32x64xf32>
    %cst_36 = arith.constant dense<0.000000e+00> : vector<32x64xf32>
    %64 = tpu.matmul %61, %63, %cst_36 {dimension_numbers = #tpu.dot_dimension_numbers<[1], [0], [0], [1], [0, 0, 1, 1], [], []>} : vector<32x32xf32>, vector<32x64xf32>, vector<32x64xf32> -> vector<32x64xf32>
    %c0_37 = arith.constant 0 : index
    %c0_38 = arith.constant 0 : index
    %c0_39 = arith.constant 0 : index
    %65 = vector.load %arg10[%c0_37, %c0_38, %c0_39] : memref<2x1x64xf32, #tpu.memory_space<vmem>>, vector<1x1x64xf32>
    %66 = vector.shape_cast %65 : vector<1x1x64xf32> to vector<1x64xf32>
    %67 = vector.broadcast %66 : vector<1x64xf32> to vector<32x64xf32>
    %68 = arith.addf %64, %67 : vector<32x64xf32>
    %cst_40 = arith.constant 0.000000e+00 : f32
    %69 = vector.broadcast %cst_40 : f32 to vector<32x64xf32>
    %70 = arith.cmpf ogt, %68, %69 : vector<32x64xf32>
    %cst_41 = arith.constant 1.300000e+00 : f32
    %71 = vector.broadcast %cst_41 : f32 to vector<32x64xf32>
    %72 = arith.divf %68, %71 : vector<32x64xf32>
    %73 = math.exp %72 : vector<32x64xf32>
    %cst_42 = arith.constant 1.000000e+00 : f32
    %74 = vector.broadcast %cst_42 : f32 to vector<32x64xf32>
    %75 = arith.subf %73, %74 : vector<32x64xf32>
    %cst_43 = arith.constant 1.300000e+00 : f32
    %76 = vector.broadcast %cst_43 : f32 to vector<32x64xf32>
    %77 = arith.mulf %76, %75 : vector<32x64xf32>
    %78 = arith.select %70, %68, %77 : vector<32x64xi1>, vector<32x64xf32>
    %cst_44 = arith.constant dense<0.000000e+00> : vector<4x64xf32>
    %79 = tpu.matmul %11, %78, %cst_44 {dimension_numbers = #tpu.dot_dimension_numbers<[1], [0], [0], [1], [0, 0, 1, 1], [], []>} : vector<4x32xf32>, vector<32x64xf32>, vector<4x64xf32> -> vector<4x64xf32>
    %80 = vector.broadcast %15 : vector<4x1xf32> to vector<4x64xf32>
    %81 = arith.mulf %79, %80 : vector<4x64xf32>
    %82 = tpu.concatenate %78, %81 in 0 : vector<32x64xf32>, vector<4x64xf32> -> vector<36x64xf32>
    %c0_45 = arith.constant 0 : index
    %c0_46 = arith.constant 0 : index
    %c0_47 = arith.constant 0 : index
    %83 = vector.load %arg11[%c0_45, %c0_46, %c0_47] : memref<2x64x36xf32, #tpu.memory_space<vmem>>, vector<1x64x36xf32>
    %84 = vector.shape_cast %83 : vector<1x64x36xf32> to vector<64x36xf32>
    %cst_48 = arith.constant dense<0.000000e+00> : vector<36x36xf32>
    %85 = tpu.matmul %82, %84, %cst_48 {dimension_numbers = #tpu.dot_dimension_numbers<[1], [0], [0], [1], [0, 0, 1, 1], [], []>} : vector<36x64xf32>, vector<64x36xf32>, vector<36x36xf32> -> vector<36x36xf32>
    %c0_49 = arith.constant 0 : index
    %c0_50 = arith.constant 0 : index
    %c0_51 = arith.constant 0 : index
    %86 = vector.load %arg12[%c0_49, %c0_50, %c0_51] : memref<2x1x36xf32, #tpu.memory_space<vmem>>, vector<1x1x36xf32>
    %87 = vector.shape_cast %86 : vector<1x1x36xf32> to vector<1x36xf32>
    %88 = vector.broadcast %87 : vector<1x36xf32> to vector<36x36xf32>
    %89 = arith.addf %85, %88 : vector<36x36xf32>
    %90 = vector.extract_strided_slice %89 {offsets = [0, 0], sizes = [32, 4], strides = [1, 1]} : vector<36x36xf32> to vector<32x4xf32>
    %91 = vector.extract_strided_slice %89 {offsets = [32, 4], sizes = [4, 32], strides = [1, 1]} : vector<36x36xf32> to vector<4x32xf32>
    %92 = arith.negf %91 : vector<4x32xf32>
    %93 = math.exp %92 : vector<4x32xf32>
    %cst_52 = arith.constant 1.000000e+00 : f32
    %94 = vector.broadcast %cst_52 : f32 to vector<4x32xf32>
    %95 = arith.addf %94, %93 : vector<4x32xf32>
    %96 = arith.divf %94, %95 : vector<4x32xf32>
    %cst_53 = arith.constant -1.000000e+09 : f32
    %97 = vector.shape_cast %9 : vector<32x1xi1> to vector<32x1xi1>
    %98 = vector.broadcast %97 : vector<32x1xi1> to vector<32x4xi1>
    %99 = vector.broadcast %cst_53 : f32 to vector<32x4xf32>
    %100 = arith.select %98, %99, %90 : vector<32x4xi1>, vector<32x4xf32>
    %cst_54 = arith.constant dense<0xFF800000> : vector<4xf32>
    %101 = vector.multi_reduction <maximumf>, %100, %cst_54 [0] : vector<32x4xf32> to vector<4xf32>
    %102 = vector.shape_cast %101 : vector<4xf32> to vector<1x4xf32>
    %103 = vector.broadcast %102 : vector<1x4xf32> to vector<32x4xf32>
    %104 = arith.subf %100, %103 : vector<32x4xf32>
    %105 = math.exp %104 : vector<32x4xf32>
    %cst_55 = arith.constant dense<0.000000e+00> : vector<4x4xf32>
    %106 = tpu.matmul %4, %105, %cst_55 {dimension_numbers = #tpu.dot_dimension_numbers<[1], [0], [0], [1], [0, 0, 1, 1], [], []>} : vector<4x32xf32>, vector<32x4xf32>, vector<4x4xf32> -> vector<4x4xf32>
    %cst_56 = arith.constant 9.99999968E-21 : f32
    %107 = vector.broadcast %cst_56 : f32 to vector<4x4xf32>
    %108 = arith.maximumf %106, %107 : vector<4x4xf32>
    %109 = tpu.reciprocal %108 {approx = true} : vector<4x4xf32> -> vector<4x4xf32>
    %cst_57 = arith.constant dense<0.000000e+00> : vector<32x4xf32>
    %110 = tpu.matmul %5, %109, %cst_57 {dimension_numbers = #tpu.dot_dimension_numbers<[1], [0], [0], [1], [0, 0, 1, 1], [], []>} : vector<32x4xf32>, vector<4x4xf32>, vector<32x4xf32> -> vector<32x4xf32>
    %111 = arith.mulf %105, %110 : vector<32x4xf32>
    %cst_58 = arith.constant dense<0.000000e+00> : vector<32x32xf32>
    %112 = tpu.matmul %111, %7, %cst_58 {dimension_numbers = #tpu.dot_dimension_numbers<[1], [0], [0], [1], [0, 0, 1, 1], [], []>} : vector<32x4xf32>, vector<4x32xf32>, vector<32x32xf32> -> vector<32x32xf32>
    %113 = arith.mulf %112, %57 : vector<32x32xf32>
    %cst_59 = arith.constant dense<0.000000e+00> : vector<4x32xf32>
    %114 = tpu.matmul %4, %113, %cst_59 {dimension_numbers = #tpu.dot_dimension_numbers<[1], [0], [0], [1], [0, 0, 1, 1], [], []>} : vector<4x32xf32>, vector<32x32xf32>, vector<4x32xf32> -> vector<4x32xf32>
    %115 = arith.mulf %59, %114 : vector<4x32xf32>
    %116 = arith.mulf %115, %96 : vector<4x32xf32>
    %c0_60 = arith.constant 0 : index
    %c0_61 = arith.constant 0 : index
    %c0_62 = arith.constant 0 : index
    %117 = vector.load %arg15[%c0_60, %c0_61, %c0_62] : memref<2x3x32xf32, #tpu.memory_space<vmem>>, vector<1x3x32xf32>
    %118 = vector.shape_cast %117 : vector<1x3x32xf32> to vector<3x32xf32>
    %c0_63 = arith.constant 0 : index
    %c0_64 = arith.constant 0 : index
    %c0_65 = arith.constant 0 : index
    %119 = vector.load %arg13[%c0_63, %c0_64, %c0_65] : memref<2x32x32xf32, #tpu.memory_space<vmem>>, vector<1x32x32xf32>
    %120 = vector.shape_cast %119 : vector<1x32x32xf32> to vector<32x32xf32>
    %cst_66 = arith.constant dense<0.000000e+00> : vector<4x32xf32>
    %121 = tpu.matmul %116, %120, %cst_66 {dimension_numbers = #tpu.dot_dimension_numbers<[1], [0], [0], [1], [0, 0, 1, 1], [], []>} : vector<4x32xf32>, vector<32x32xf32>, vector<4x32xf32> -> vector<4x32xf32>
    %c0_67 = arith.constant 0 : index
    %c0_68 = arith.constant 0 : index
    %c0_69 = arith.constant 0 : index
    %122 = vector.load %arg14[%c0_67, %c0_68, %c0_69] : memref<2x32x32xf32, #tpu.memory_space<vmem>>, vector<1x32x32xf32>
    %123 = vector.shape_cast %122 : vector<1x32x32xf32> to vector<32x32xf32>
    %cst_70 = arith.constant dense<0.000000e+00> : vector<32x32xf32>
    %124 = tpu.matmul %0, %123, %cst_70 {dimension_numbers = #tpu.dot_dimension_numbers<[1], [0], [0], [1], [0, 0, 1, 1], [], []>} : vector<32x32xf32>, vector<32x32xf32>, vector<32x32xf32> -> vector<32x32xf32>
    %cst_71 = arith.constant dense<0.000000e+00> : vector<32x32xf32>
    %125 = tpu.matmul %5, %121, %cst_71 {dimension_numbers = #tpu.dot_dimension_numbers<[1], [0], [0], [1], [0, 0, 1, 1], [], []>} : vector<32x4xf32>, vector<4x32xf32>, vector<32x32xf32> -> vector<32x32xf32>
    %126 = arith.addf %124, %125 : vector<32x32xf32>
    %127 = vector.extract_strided_slice %118 {offsets = [0, 0], sizes = [1, 32], strides = [1, 1]} : vector<3x32xf32> to vector<1x32xf32>
    %128 = vector.broadcast %127 : vector<1x32xf32> to vector<32x32xf32>
    %129 = arith.addf %126, %128 : vector<32x32xf32>
    %cst_72 = arith.constant 0.000000e+00 : f32
    %130 = vector.broadcast %cst_72 : f32 to vector<32x32xf32>
    %131 = arith.maximumf %129, %130 : vector<32x32xf32>
    %132 = arith.addf %131, %0 : vector<32x32xf32>
    %cst_73 = arith.constant dense<0.000000e+00> : vector<32xf32>
    %133 = vector.multi_reduction <add>, %132, %cst_73 [1] : vector<32x32xf32> to vector<32xf32>
    %134 = vector.shape_cast %133 : vector<32xf32> to vector<32x1xf32>
    %cst_74 = arith.constant 3.200000e+01 : f32
    %135 = vector.broadcast %cst_74 : f32 to vector<32x1xf32>
    %136 = arith.divf %134, %135 : vector<32x1xf32>
    %137 = vector.broadcast %136 : vector<32x1xf32> to vector<32x32xf32>
    %138 = arith.subf %132, %137 : vector<32x32xf32>
    %139 = vector.broadcast %136 : vector<32x1xf32> to vector<32x32xf32>
    %140 = arith.subf %132, %139 : vector<32x32xf32>
    %141 = arith.mulf %138, %140 : vector<32x32xf32>
    %cst_75 = arith.constant dense<0.000000e+00> : vector<32xf32>
    %142 = vector.multi_reduction <add>, %141, %cst_75 [1] : vector<32x32xf32> to vector<32xf32>
    %143 = vector.shape_cast %142 : vector<32xf32> to vector<32x1xf32>
    %cst_76 = arith.constant 3.200000e+01 : f32
    %144 = vector.broadcast %cst_76 : f32 to vector<32x1xf32>
    %145 = arith.divf %143, %144 : vector<32x1xf32>
    %146 = vector.broadcast %136 : vector<32x1xf32> to vector<32x32xf32>
    %147 = arith.subf %132, %146 : vector<32x32xf32>
    %cst_77 = arith.constant 9.99999974E-6 : f32
    %148 = vector.broadcast %cst_77 : f32 to vector<32x1xf32>
    %149 = arith.addf %145, %148 : vector<32x1xf32>
    %150 = math.rsqrt %149 : vector<32x1xf32>
    %151 = vector.broadcast %150 : vector<32x1xf32> to vector<32x32xf32>
    %152 = arith.mulf %147, %151 : vector<32x32xf32>
    %153 = vector.extract_strided_slice %118 {offsets = [1, 0], sizes = [1, 32], strides = [1, 1]} : vector<3x32xf32> to vector<1x32xf32>
    %154 = vector.broadcast %153 : vector<1x32xf32> to vector<32x32xf32>
    %155 = arith.mulf %152, %154 : vector<32x32xf32>
    %156 = vector.extract_strided_slice %118 {offsets = [2, 0], sizes = [1, 32], strides = [1, 1]} : vector<3x32xf32> to vector<1x32xf32>
    %157 = vector.broadcast %156 : vector<1x32xf32> to vector<32x32xf32>
    %158 = arith.addf %155, %157 : vector<32x32xf32>
    %c1 = arith.constant 1 : index
    %c0_78 = arith.constant 0 : index
    %c0_79 = arith.constant 0 : index
    %159 = vector.load %arg7[%c1, %c0_78, %c0_79] : memref<2x3x128xf32, #tpu.memory_space<vmem>>, vector<1x3x128xf32>
    %160 = vector.shape_cast %159 : vector<1x3x128xf32> to vector<3x128xf32>
    %161 = tpu.concatenate %158, %116 in 0 : vector<32x32xf32>, vector<4x32xf32> -> vector<36x32xf32>
    %c1_80 = arith.constant 1 : index
    %c0_81 = arith.constant 0 : index
    %c0_82 = arith.constant 0 : index
    %162 = vector.load %arg6[%c1_80, %c0_81, %c0_82] : memref<2x32x128xf32, #tpu.memory_space<vmem>>, vector<1x32x128xf32>
    %163 = vector.shape_cast %162 : vector<1x32x128xf32> to vector<32x128xf32>
    %cst_83 = arith.constant dense<0.000000e+00> : vector<36x128xf32>
    %164 = tpu.matmul %161, %163, %cst_83 {dimension_numbers = #tpu.dot_dimension_numbers<[1], [0], [0], [1], [0, 0, 1, 1], [], []>} : vector<36x32xf32>, vector<32x128xf32>, vector<36x128xf32> -> vector<36x128xf32>
    %165 = vector.extract_strided_slice %160 {offsets = [0, 0], sizes = [1, 128], strides = [1, 1]} : vector<3x128xf32> to vector<1x128xf32>
    %166 = vector.broadcast %165 : vector<1x128xf32> to vector<36x128xf32>
    %167 = arith.addf %164, %166 : vector<36x128xf32>
    %cst_84 = arith.constant 0.000000e+00 : f32
    %168 = vector.broadcast %cst_84 : f32 to vector<36x128xf32>
    %169 = arith.cmpf ogt, %167, %168 : vector<36x128xf32>
    %cst_85 = arith.constant 1.300000e+00 : f32
    %170 = vector.broadcast %cst_85 : f32 to vector<36x128xf32>
    %171 = arith.divf %167, %170 : vector<36x128xf32>
    %172 = math.exp %171 : vector<36x128xf32>
    %cst_86 = arith.constant 1.000000e+00 : f32
    %173 = vector.broadcast %cst_86 : f32 to vector<36x128xf32>
    %174 = arith.subf %172, %173 : vector<36x128xf32>
    %cst_87 = arith.constant 1.300000e+00 : f32
    %175 = vector.broadcast %cst_87 : f32 to vector<36x128xf32>
    %176 = arith.mulf %175, %174 : vector<36x128xf32>
    %177 = arith.select %169, %167, %176 : vector<36x128xi1>, vector<36x128xf32>
    %cst_88 = arith.constant dense<0.000000e+00> : vector<36x128xf32>
    %178 = tpu.matmul %177, %6, %cst_88 {dimension_numbers = #tpu.dot_dimension_numbers<[1], [0], [0], [1], [0, 0, 1, 1], [], []>} : vector<36x128xf32>, vector<128x128xf32>, vector<36x128xf32> -> vector<36x128xf32>
    %179 = arith.mulf %177, %177 : vector<36x128xf32>
    %cst_89 = arith.constant dense<0.000000e+00> : vector<36x128xf32>
    %180 = tpu.matmul %179, %6, %cst_89 {dimension_numbers = #tpu.dot_dimension_numbers<[1], [0], [0], [1], [0, 0, 1, 1], [], []>} : vector<36x128xf32>, vector<128x128xf32>, vector<36x128xf32> -> vector<36x128xf32>
    %181 = arith.mulf %178, %178 : vector<36x128xf32>
    %182 = arith.subf %180, %181 : vector<36x128xf32>
    %cst_90 = arith.constant 0.000000e+00 : f32
    %183 = vector.broadcast %cst_90 : f32 to vector<36x128xf32>
    %184 = arith.maximumf %182, %183 : vector<36x128xf32>
    %185 = arith.subf %177, %178 : vector<36x128xf32>
    %cst_91 = arith.constant 9.99999974E-6 : f32
    %186 = vector.broadcast %cst_91 : f32 to vector<36x128xf32>
    %187 = arith.addf %184, %186 : vector<36x128xf32>
    %188 = math.rsqrt %187 : vector<36x128xf32>
    %189 = arith.mulf %185, %188 : vector<36x128xf32>
    %190 = vector.extract_strided_slice %160 {offsets = [1, 0], sizes = [1, 128], strides = [1, 1]} : vector<3x128xf32> to vector<1x128xf32>
    %191 = vector.broadcast %190 : vector<1x128xf32> to vector<36x128xf32>
    %192 = arith.mulf %189, %191 : vector<36x128xf32>
    %193 = vector.extract_strided_slice %160 {offsets = [2, 0], sizes = [1, 128], strides = [1, 1]} : vector<3x128xf32> to vector<1x128xf32>
    %194 = vector.broadcast %193 : vector<1x128xf32> to vector<36x128xf32>
    %195 = arith.addf %192, %194 : vector<36x128xf32>
    %196 = vector.extract_strided_slice %195 {offsets = [0, 32], sizes = [32, 32], strides = [1, 1]} : vector<36x128xf32> to vector<32x32xf32>
    %197 = vector.extract_strided_slice %195 {offsets = [0, 96], sizes = [32, 32], strides = [1, 1]} : vector<36x128xf32> to vector<32x32xf32>
    %198 = vector.extract_strided_slice %195 {offsets = [32, 0], sizes = [4, 32], strides = [1, 1]} : vector<36x128xf32> to vector<4x32xf32>
    %199 = vector.extract_strided_slice %195 {offsets = [32, 64], sizes = [4, 32], strides = [1, 1]} : vector<36x128xf32> to vector<4x32xf32>
    %cst_92 = arith.constant dense<0.000000e+00> : vector<32x32xf32>
    %200 = tpu.matmul %5, %198, %cst_92 {dimension_numbers = #tpu.dot_dimension_numbers<[1], [0], [0], [1], [0, 0, 1, 1], [], []>} : vector<32x4xf32>, vector<4x32xf32>, vector<32x32xf32> -> vector<32x32xf32>
    %201 = arith.mulf %196, %200 : vector<32x32xf32>
    %c1_93 = arith.constant 1 : index
    %c0_94 = arith.constant 0 : index
    %c0_95 = arith.constant 0 : index
    %202 = vector.load %arg9[%c1_93, %c0_94, %c0_95] : memref<2x32x64xf32, #tpu.memory_space<vmem>>, vector<1x32x64xf32>
    %203 = vector.shape_cast %202 : vector<1x32x64xf32> to vector<32x64xf32>
    %cst_96 = arith.constant dense<0.000000e+00> : vector<32x64xf32>
    %204 = tpu.matmul %201, %203, %cst_96 {dimension_numbers = #tpu.dot_dimension_numbers<[1], [0], [0], [1], [0, 0, 1, 1], [], []>} : vector<32x32xf32>, vector<32x64xf32>, vector<32x64xf32> -> vector<32x64xf32>
    %c1_97 = arith.constant 1 : index
    %c0_98 = arith.constant 0 : index
    %c0_99 = arith.constant 0 : index
    %205 = vector.load %arg10[%c1_97, %c0_98, %c0_99] : memref<2x1x64xf32, #tpu.memory_space<vmem>>, vector<1x1x64xf32>
    %206 = vector.shape_cast %205 : vector<1x1x64xf32> to vector<1x64xf32>
    %207 = vector.broadcast %206 : vector<1x64xf32> to vector<32x64xf32>
    %208 = arith.addf %204, %207 : vector<32x64xf32>
    %cst_100 = arith.constant 0.000000e+00 : f32
    %209 = vector.broadcast %cst_100 : f32 to vector<32x64xf32>
    %210 = arith.cmpf ogt, %208, %209 : vector<32x64xf32>
    %cst_101 = arith.constant 1.300000e+00 : f32
    %211 = vector.broadcast %cst_101 : f32 to vector<32x64xf32>
    %212 = arith.divf %208, %211 : vector<32x64xf32>
    %213 = math.exp %212 : vector<32x64xf32>
    %cst_102 = arith.constant 1.000000e+00 : f32
    %214 = vector.broadcast %cst_102 : f32 to vector<32x64xf32>
    %215 = arith.subf %213, %214 : vector<32x64xf32>
    %cst_103 = arith.constant 1.300000e+00 : f32
    %216 = vector.broadcast %cst_103 : f32 to vector<32x64xf32>
    %217 = arith.mulf %216, %215 : vector<32x64xf32>
    %218 = arith.select %210, %208, %217 : vector<32x64xi1>, vector<32x64xf32>
    %cst_104 = arith.constant dense<0.000000e+00> : vector<4x64xf32>
    %219 = tpu.matmul %11, %218, %cst_104 {dimension_numbers = #tpu.dot_dimension_numbers<[1], [0], [0], [1], [0, 0, 1, 1], [], []>} : vector<4x32xf32>, vector<32x64xf32>, vector<4x64xf32> -> vector<4x64xf32>
    %220 = vector.broadcast %15 : vector<4x1xf32> to vector<4x64xf32>
    %221 = arith.mulf %219, %220 : vector<4x64xf32>
    %222 = tpu.concatenate %218, %221 in 0 : vector<32x64xf32>, vector<4x64xf32> -> vector<36x64xf32>
    %c1_105 = arith.constant 1 : index
    %c0_106 = arith.constant 0 : index
    %c0_107 = arith.constant 0 : index
    %223 = vector.load %arg11[%c1_105, %c0_106, %c0_107] : memref<2x64x36xf32, #tpu.memory_space<vmem>>, vector<1x64x36xf32>
    %224 = vector.shape_cast %223 : vector<1x64x36xf32> to vector<64x36xf32>
    %cst_108 = arith.constant dense<0.000000e+00> : vector<36x36xf32>
    %225 = tpu.matmul %222, %224, %cst_108 {dimension_numbers = #tpu.dot_dimension_numbers<[1], [0], [0], [1], [0, 0, 1, 1], [], []>} : vector<36x64xf32>, vector<64x36xf32>, vector<36x36xf32> -> vector<36x36xf32>
    %c1_109 = arith.constant 1 : index
    %c0_110 = arith.constant 0 : index
    %c0_111 = arith.constant 0 : index
    %226 = vector.load %arg12[%c1_109, %c0_110, %c0_111] : memref<2x1x36xf32, #tpu.memory_space<vmem>>, vector<1x1x36xf32>
    %227 = vector.shape_cast %226 : vector<1x1x36xf32> to vector<1x36xf32>
    %228 = vector.broadcast %227 : vector<1x36xf32> to vector<36x36xf32>
    %229 = arith.addf %225, %228 : vector<36x36xf32>
    %230 = vector.extract_strided_slice %229 {offsets = [0, 0], sizes = [32, 4], strides = [1, 1]} : vector<36x36xf32> to vector<32x4xf32>
    %231 = vector.extract_strided_slice %229 {offsets = [32, 4], sizes = [4, 32], strides = [1, 1]} : vector<36x36xf32> to vector<4x32xf32>
    %232 = arith.negf %231 : vector<4x32xf32>
    %233 = math.exp %232 : vector<4x32xf32>
    %cst_112 = arith.constant 1.000000e+00 : f32
    %234 = vector.broadcast %cst_112 : f32 to vector<4x32xf32>
    %235 = arith.addf %234, %233 : vector<4x32xf32>
    %236 = arith.divf %234, %235 : vector<4x32xf32>
    %cst_113 = arith.constant -1.000000e+09 : f32
    %237 = vector.shape_cast %9 : vector<32x1xi1> to vector<32x1xi1>
    %238 = vector.broadcast %237 : vector<32x1xi1> to vector<32x4xi1>
    %239 = vector.broadcast %cst_113 : f32 to vector<32x4xf32>
    %240 = arith.select %238, %239, %230 : vector<32x4xi1>, vector<32x4xf32>
    %cst_114 = arith.constant dense<0xFF800000> : vector<4xf32>
    %241 = vector.multi_reduction <maximumf>, %240, %cst_114 [0] : vector<32x4xf32> to vector<4xf32>
    %242 = vector.shape_cast %241 : vector<4xf32> to vector<1x4xf32>
    %243 = vector.broadcast %242 : vector<1x4xf32> to vector<32x4xf32>
    %244 = arith.subf %240, %243 : vector<32x4xf32>
    %245 = math.exp %244 : vector<32x4xf32>
    %cst_115 = arith.constant dense<0.000000e+00> : vector<4x4xf32>
    %246 = tpu.matmul %4, %245, %cst_115 {dimension_numbers = #tpu.dot_dimension_numbers<[1], [0], [0], [1], [0, 0, 1, 1], [], []>} : vector<4x32xf32>, vector<32x4xf32>, vector<4x4xf32> -> vector<4x4xf32>
    %cst_116 = arith.constant 9.99999968E-21 : f32
    %247 = vector.broadcast %cst_116 : f32 to vector<4x4xf32>
    %248 = arith.maximumf %246, %247 : vector<4x4xf32>
    %249 = tpu.reciprocal %248 {approx = true} : vector<4x4xf32> -> vector<4x4xf32>
    %cst_117 = arith.constant dense<0.000000e+00> : vector<32x4xf32>
    %250 = tpu.matmul %5, %249, %cst_117 {dimension_numbers = #tpu.dot_dimension_numbers<[1], [0], [0], [1], [0, 0, 1, 1], [], []>} : vector<32x4xf32>, vector<4x4xf32>, vector<32x4xf32> -> vector<32x4xf32>
    %251 = arith.mulf %245, %250 : vector<32x4xf32>
    %cst_118 = arith.constant dense<0.000000e+00> : vector<32x32xf32>
    %252 = tpu.matmul %251, %7, %cst_118 {dimension_numbers = #tpu.dot_dimension_numbers<[1], [0], [0], [1], [0, 0, 1, 1], [], []>} : vector<32x4xf32>, vector<4x32xf32>, vector<32x32xf32> -> vector<32x32xf32>
    %253 = arith.mulf %252, %197 : vector<32x32xf32>
    %cst_119 = arith.constant dense<0.000000e+00> : vector<4x32xf32>
    %254 = tpu.matmul %4, %253, %cst_119 {dimension_numbers = #tpu.dot_dimension_numbers<[1], [0], [0], [1], [0, 0, 1, 1], [], []>} : vector<4x32xf32>, vector<32x32xf32>, vector<4x32xf32> -> vector<4x32xf32>
    %255 = arith.mulf %199, %254 : vector<4x32xf32>
    %256 = arith.mulf %255, %236 : vector<4x32xf32>
    %c1_120 = arith.constant 1 : index
    %c0_121 = arith.constant 0 : index
    %c0_122 = arith.constant 0 : index
    %257 = vector.load %arg15[%c1_120, %c0_121, %c0_122] : memref<2x3x32xf32, #tpu.memory_space<vmem>>, vector<1x3x32xf32>
    %258 = vector.shape_cast %257 : vector<1x3x32xf32> to vector<3x32xf32>
    %c1_123 = arith.constant 1 : index
    %c0_124 = arith.constant 0 : index
    %c0_125 = arith.constant 0 : index
    %259 = vector.load %arg13[%c1_123, %c0_124, %c0_125] : memref<2x32x32xf32, #tpu.memory_space<vmem>>, vector<1x32x32xf32>
    %260 = vector.shape_cast %259 : vector<1x32x32xf32> to vector<32x32xf32>
    %cst_126 = arith.constant dense<0.000000e+00> : vector<4x32xf32>
    %261 = tpu.matmul %256, %260, %cst_126 {dimension_numbers = #tpu.dot_dimension_numbers<[1], [0], [0], [1], [0, 0, 1, 1], [], []>} : vector<4x32xf32>, vector<32x32xf32>, vector<4x32xf32> -> vector<4x32xf32>
    %c1_127 = arith.constant 1 : index
    %c0_128 = arith.constant 0 : index
    %c0_129 = arith.constant 0 : index
    %262 = vector.load %arg14[%c1_127, %c0_128, %c0_129] : memref<2x32x32xf32, #tpu.memory_space<vmem>>, vector<1x32x32xf32>
    %263 = vector.shape_cast %262 : vector<1x32x32xf32> to vector<32x32xf32>
    %cst_130 = arith.constant dense<0.000000e+00> : vector<32x32xf32>
    %264 = tpu.matmul %158, %263, %cst_130 {dimension_numbers = #tpu.dot_dimension_numbers<[1], [0], [0], [1], [0, 0, 1, 1], [], []>} : vector<32x32xf32>, vector<32x32xf32>, vector<32x32xf32> -> vector<32x32xf32>
    %cst_131 = arith.constant dense<0.000000e+00> : vector<32x32xf32>
    %265 = tpu.matmul %5, %261, %cst_131 {dimension_numbers = #tpu.dot_dimension_numbers<[1], [0], [0], [1], [0, 0, 1, 1], [], []>} : vector<32x4xf32>, vector<4x32xf32>, vector<32x32xf32> -> vector<32x32xf32>
    %266 = arith.addf %264, %265 : vector<32x32xf32>
    %267 = vector.extract_strided_slice %258 {offsets = [0, 0], sizes = [1, 32], strides = [1, 1]} : vector<3x32xf32> to vector<1x32xf32>
    %268 = vector.broadcast %267 : vector<1x32xf32> to vector<32x32xf32>
    %269 = arith.addf %266, %268 : vector<32x32xf32>
    %cst_132 = arith.constant 0.000000e+00 : f32
    %270 = vector.broadcast %cst_132 : f32 to vector<32x32xf32>
    %271 = arith.maximumf %269, %270 : vector<32x32xf32>
    %272 = arith.addf %271, %158 : vector<32x32xf32>
    %cst_133 = arith.constant dense<0.000000e+00> : vector<32xf32>
    %273 = vector.multi_reduction <add>, %272, %cst_133 [1] : vector<32x32xf32> to vector<32xf32>
    %274 = vector.shape_cast %273 : vector<32xf32> to vector<32x1xf32>
    %cst_134 = arith.constant 3.200000e+01 : f32
    %275 = vector.broadcast %cst_134 : f32 to vector<32x1xf32>
    %276 = arith.divf %274, %275 : vector<32x1xf32>
    %277 = vector.broadcast %276 : vector<32x1xf32> to vector<32x32xf32>
    %278 = arith.subf %272, %277 : vector<32x32xf32>
    %279 = vector.broadcast %276 : vector<32x1xf32> to vector<32x32xf32>
    %280 = arith.subf %272, %279 : vector<32x32xf32>
    %281 = arith.mulf %278, %280 : vector<32x32xf32>
    %cst_135 = arith.constant dense<0.000000e+00> : vector<32xf32>
    %282 = vector.multi_reduction <add>, %281, %cst_135 [1] : vector<32x32xf32> to vector<32xf32>
    %283 = vector.shape_cast %282 : vector<32xf32> to vector<32x1xf32>
    %cst_136 = arith.constant 3.200000e+01 : f32
    %284 = vector.broadcast %cst_136 : f32 to vector<32x1xf32>
    %285 = arith.divf %283, %284 : vector<32x1xf32>
    %286 = vector.broadcast %276 : vector<32x1xf32> to vector<32x32xf32>
    %287 = arith.subf %272, %286 : vector<32x32xf32>
    %cst_137 = arith.constant 9.99999974E-6 : f32
    %288 = vector.broadcast %cst_137 : f32 to vector<32x1xf32>
    %289 = arith.addf %285, %288 : vector<32x1xf32>
    %290 = math.rsqrt %289 : vector<32x1xf32>
    %291 = vector.broadcast %290 : vector<32x1xf32> to vector<32x32xf32>
    %292 = arith.mulf %287, %291 : vector<32x32xf32>
    %293 = vector.extract_strided_slice %258 {offsets = [1, 0], sizes = [1, 32], strides = [1, 1]} : vector<3x32xf32> to vector<1x32xf32>
    %294 = vector.broadcast %293 : vector<1x32xf32> to vector<32x32xf32>
    %295 = arith.mulf %292, %294 : vector<32x32xf32>
    %296 = vector.extract_strided_slice %258 {offsets = [2, 0], sizes = [1, 32], strides = [1, 1]} : vector<3x32xf32> to vector<1x32xf32>
    %297 = vector.broadcast %296 : vector<1x32xf32> to vector<32x32xf32>
    %298 = arith.addf %295, %297 : vector<32x32xf32>
    %c0_138 = arith.constant 0 : index
    %c0_139 = arith.constant 0 : index
    %299 = vector.load %arg19[%c0_138, %c0_139] : memref<32x32xf32, #tpu.memory_space<vmem>>, vector<32x32xf32>
    tpu.vector_store %arg19[%c0_138, %c0_139], %298 {strides = array<i32>} : memref<32x32xf32, #tpu.memory_space<vmem>>, vector<32x32xf32>,
    %c0_140 = arith.constant 0 : index
    %c0_141 = arith.constant 0 : index
    %300 = vector.load %arg18[%c0_140, %c0_141] : memref<3x32xf32, #tpu.memory_space<vmem>>, vector<3x32xf32>
    %301 = tpu.concatenate %18, %116, %256 in 1 : vector<4x32xf32>, vector<4x32xf32>, vector<4x32xf32> -> vector<4x96xf32>
    %c0_142 = arith.constant 0 : index
    %c0_143 = arith.constant 0 : index
    %302 = vector.load %arg17[%c0_142, %c0_143] : memref<96x32xf32, #tpu.memory_space<vmem>>, vector<96x32xf32>
    %cst_144 = arith.constant dense<0.000000e+00> : vector<4x32xf32>
    %303 = tpu.matmul %301, %302, %cst_144 {dimension_numbers = #tpu.dot_dimension_numbers<[1], [0], [0], [1], [0, 0, 1, 1], [], []>} : vector<4x96xf32>, vector<96x32xf32>, vector<4x32xf32> -> vector<4x32xf32>
    %304 = vector.extract_strided_slice %300 {offsets = [0, 0], sizes = [1, 32], strides = [1, 1]} : vector<3x32xf32> to vector<1x32xf32>
    %305 = vector.broadcast %304 : vector<1x32xf32> to vector<4x32xf32>
    %306 = arith.addf %303, %305 : vector<4x32xf32>
    %cst_145 = arith.constant dense<0.000000e+00> : vector<4xf32>
    %307 = vector.multi_reduction <add>, %306, %cst_145 [1] : vector<4x32xf32> to vector<4xf32>
    %308 = vector.shape_cast %307 : vector<4xf32> to vector<4x1xf32>
    %cst_146 = arith.constant 3.200000e+01 : f32
    %309 = vector.broadcast %cst_146 : f32 to vector<4x1xf32>
    %310 = arith.divf %308, %309 : vector<4x1xf32>
    %311 = vector.broadcast %310 : vector<4x1xf32> to vector<4x32xf32>
    %312 = arith.subf %306, %311 : vector<4x32xf32>
    %313 = vector.broadcast %310 : vector<4x1xf32> to vector<4x32xf32>
    %314 = arith.subf %306, %313 : vector<4x32xf32>
    %315 = arith.mulf %312, %314 : vector<4x32xf32>
    %cst_147 = arith.constant dense<0.000000e+00> : vector<4xf32>
    %316 = vector.multi_reduction <add>, %315, %cst_147 [1] : vector<4x32xf32> to vector<4xf32>
    %317 = vector.shape_cast %316 : vector<4xf32> to vector<4x1xf32>
    %cst_148 = arith.constant 3.200000e+01 : f32
    %318 = vector.broadcast %cst_148 : f32 to vector<4x1xf32>
    %319 = arith.divf %317, %318 : vector<4x1xf32>
    %320 = vector.broadcast %310 : vector<4x1xf32> to vector<4x32xf32>
    %321 = arith.subf %306, %320 : vector<4x32xf32>
    %cst_149 = arith.constant 9.99999974E-6 : f32
    %322 = vector.broadcast %cst_149 : f32 to vector<4x1xf32>
    %323 = arith.addf %319, %322 : vector<4x1xf32>
    %324 = math.rsqrt %323 : vector<4x1xf32>
    %325 = vector.broadcast %324 : vector<4x1xf32> to vector<4x32xf32>
    %326 = arith.mulf %321, %325 : vector<4x32xf32>
    %327 = vector.extract_strided_slice %300 {offsets = [1, 0], sizes = [1, 32], strides = [1, 1]} : vector<3x32xf32> to vector<1x32xf32>
    %328 = vector.broadcast %327 : vector<1x32xf32> to vector<4x32xf32>
    %329 = arith.mulf %326, %328 : vector<4x32xf32>
    %330 = vector.extract_strided_slice %300 {offsets = [2, 0], sizes = [1, 32], strides = [1, 1]} : vector<3x32xf32> to vector<1x32xf32>
    %331 = vector.broadcast %330 : vector<1x32xf32> to vector<4x32xf32>
    %332 = arith.addf %329, %331 : vector<4x32xf32>
    %c0_150 = arith.constant 0 : index
    %c0_151 = arith.constant 0 : index
    %c0_152 = arith.constant 0 : index
    %333 = vector.load %arg20[%c0_150, %c0_151, %c0_152] : memref<1x4x32xf32, #tpu.memory_space<vmem>>, vector<1x4x32xf32>
    %334 = vector.shape_cast %333 : vector<1x4x32xf32> to vector<4x32xf32>
    %335 = vector.shape_cast %332 : vector<4x32xf32> to vector<1x4x32xf32>
    tpu.vector_store %arg20[%c0_150, %c0_151, %c0_152], %335 {strides = array<i32>} : memref<1x4x32xf32, #tpu.memory_space<vmem>>, vector<1x4x32xf32>,
    return
  }
  func.func @transform_0(%arg0: i32) -> (i32, i32) {
    %c0_i32 = arith.constant 0 : i32
    %c0_i32_0 = arith.constant 0 : i32
    return %arg0, %c0_i32 : i32, i32
  }
  func.func @transform_1(%arg0: i32) -> (i32, i32) {
    %c0_i32 = arith.constant 0 : i32
    %c0_i32_0 = arith.constant 0 : i32
    return %arg0, %c0_i32 : i32, i32
  }
  func.func @transform_2(%arg0: i32) -> (i32, i32, i32) {
    %c0_i32 = arith.constant 0 : i32
    %c0_i32_0 = arith.constant 0 : i32
    %c0_i32_1 = arith.constant 0 : i32
    return %arg0, %c0_i32, %c0_i32_0 : i32, i32, i32
  }
  func.func @transform_3(%arg0: i32) -> (i32, i32) {
    %c0_i32 = arith.constant 0 : i32
    %c0_i32_0 = arith.constant 0 : i32
    %c0_i32_1 = arith.constant 0 : i32
    return %c0_i32, %c0_i32_0 : i32, i32
  }
  func.func @transform_4(%arg0: i32) -> (i32, i32) {
    %c0_i32 = arith.constant 0 : i32
    %c0_i32_0 = arith.constant 0 : i32
    %c0_i32_1 = arith.constant 0 : i32
    return %c0_i32, %c0_i32_0 : i32, i32
  }
  func.func @transform_5(%arg0: i32) -> (i32, i32, i32) {
    %c0_i32 = arith.constant 0 : i32
    %c0_i32_0 = arith.constant 0 : i32
    %c0_i32_1 = arith.constant 0 : i32
    %c0_i32_2 = arith.constant 0 : i32
    return %c0_i32, %c0_i32_0, %c0_i32_1 : i32, i32, i32
  }
  func.func @transform_6(%arg0: i32) -> (i32, i32, i32) {
    %c0_i32 = arith.constant 0 : i32
    %c0_i32_0 = arith.constant 0 : i32
    %c0_i32_1 = arith.constant 0 : i32
    %c0_i32_2 = arith.constant 0 : i32
    return %c0_i32, %c0_i32_0, %c0_i32_1 : i32, i32, i32
  }
  func.func @transform_7(%arg0: i32) -> (i32, i32) {
    %c0_i32 = arith.constant 0 : i32
    %c0_i32_0 = arith.constant 0 : i32
    %c0_i32_1 = arith.constant 0 : i32
    return %c0_i32, %c0_i32_0 : i32, i32
  }
  func.func @transform_8(%arg0: i32) -> (i32, i32, i32) {
    %c0_i32 = arith.constant 0 : i32
    %c0_i32_0 = arith.constant 0 : i32
    %c0_i32_1 = arith.constant 0 : i32
    %c0_i32_2 = arith.constant 0 : i32
    return %c0_i32, %c0_i32_0, %c0_i32_1 : i32, i32, i32
  }
  func.func @transform_9(%arg0: i32) -> (i32, i32, i32) {
    %c0_i32 = arith.constant 0 : i32
    %c0_i32_0 = arith.constant 0 : i32
    %c0_i32_1 = arith.constant 0 : i32
    %c0_i32_2 = arith.constant 0 : i32
    return %c0_i32, %c0_i32_0, %c0_i32_1 : i32, i32, i32
  }
  func.func @transform_10(%arg0: i32) -> (i32, i32, i32) {
    %c0_i32 = arith.constant 0 : i32
    %c0_i32_0 = arith.constant 0 : i32
    %c0_i32_1 = arith.constant 0 : i32
    %c0_i32_2 = arith.constant 0 : i32
    return %c0_i32, %c0_i32_0, %c0_i32_1 : i32, i32, i32
  }
  func.func @transform_11(%arg0: i32) -> (i32, i32, i32) {
    %c0_i32 = arith.constant 0 : i32
    %c0_i32_0 = arith.constant 0 : i32
    %c0_i32_1 = arith.constant 0 : i32
    %c0_i32_2 = arith.constant 0 : i32
    return %c0_i32, %c0_i32_0, %c0_i32_1 : i32, i32, i32
  }
  func.func @transform_12(%arg0: i32) -> (i32, i32, i32) {
    %c0_i32 = arith.constant 0 : i32
    %c0_i32_0 = arith.constant 0 : i32
    %c0_i32_1 = arith.constant 0 : i32
    %c0_i32_2 = arith.constant 0 : i32
    return %c0_i32, %c0_i32_0, %c0_i32_1 : i32, i32, i32
  }
  func.func @transform_13(%arg0: i32) -> (i32, i32, i32) {
    %c0_i32 = arith.constant 0 : i32
    %c0_i32_0 = arith.constant 0 : i32
    %c0_i32_1 = arith.constant 0 : i32
    %c0_i32_2 = arith.constant 0 : i32
    return %c0_i32, %c0_i32_0, %c0_i32_1 : i32, i32, i32
  }
  func.func @transform_14(%arg0: i32) -> (i32, i32, i32) {
    %c0_i32 = arith.constant 0 : i32
    %c0_i32_0 = arith.constant 0 : i32
    %c0_i32_1 = arith.constant 0 : i32
    %c0_i32_2 = arith.constant 0 : i32
    return %c0_i32, %c0_i32_0, %c0_i32_1 : i32, i32, i32
  }
  func.func @transform_15(%arg0: i32) -> (i32, i32) {
    %c0_i32 = arith.constant 0 : i32
    %c0_i32_0 = arith.constant 0 : i32
    %c0_i32_1 = arith.constant 0 : i32
    return %c0_i32, %c0_i32_0 : i32, i32
  }
  func.func @transform_16(%arg0: i32) -> (i32, i32) {
    %c0_i32 = arith.constant 0 : i32
    %c0_i32_0 = arith.constant 0 : i32
    %c0_i32_1 = arith.constant 0 : i32
    return %c0_i32, %c0_i32_0 : i32, i32
  }
  func.func @transform_17(%arg0: i32) -> (i32, i32) {
    %c0_i32 = arith.constant 0 : i32
    %c0_i32_0 = arith.constant 0 : i32
    %c0_i32_1 = arith.constant 0 : i32
    return %c0_i32, %c0_i32_0 : i32, i32
  }
  func.func @transform_18(%arg0: i32) -> (i32, i32) {
    %c0_i32 = arith.constant 0 : i32
    %c0_i32_0 = arith.constant 0 : i32
    return %arg0, %c0_i32 : i32, i32
  }
  func.func @transform_19(%arg0: i32) -> (i32, i32, i32) {
    %c0_i32 = arith.constant 0 : i32
    %c0_i32_0 = arith.constant 0 : i32
    %c0_i32_1 = arith.constant 0 : i32
    return %arg0, %c0_i32, %c0_i32_0 : i32, i32, i32
  }
}

</mosaic_0001>

<bundles_post_ra>
// kernel: _lambda_.1
= control target key start
LH: loop header
LB: loop body
LE: loop exit
PB: predicated region body
PF: predicated region fallthrough
CT: control target
= control target key end

     0   :  { %s7564_s0 = inlined_call_operand.vmem [shape: f32[64,32], index: 0, kind: input, shape index: {}]   ;;  %s7565_s1 = inlined_call_operand.vmem [shape: f32[64,1], index: 1, kind: input, shape index: {}]   ;;  %s7566_s2 = inlined_call_operand.vmem [shape: f32[2,1,32], index: 2, kind: input, shape index: {}]   ;;  %s7567_s3 = inlined_call_operand.vmem [shape: f32[4,32], index: 3, kind: input, shape index: {}]   ;;  %s7568_s4 = inlined_call_operand.vmem [shape: f32[32,4], index: 4, kind: input, shape index: {}]   ;;  %s7569_s5 = inlined_call_operand.hbm [shape: f32[2,32,128], index: 5, kind: input, shape index: {}]   ;;  %s7570_s6 = inlined_call_operand.hbm [shape: f32[2,3,128], index: 6, kind: input, shape index: {}]   ;;  %s7571_s7 = inlined_call_operand.hbm [shape: f32[128,128], index: 7, kind: input, shape index: {}]   ;;  %s7572_s8 = inlined_call_operand.hbm [shape: f32[2,32,64], index: 8, kind: input, shape index: {}]   ;;  %s7573_s9 = inlined_call_operand.hbm [shape: f32[2,1,64], index: 9, kind: input, shape index: {}]   ;;  %s7574_s10 = inlined_call_operand.vmem [shape: f32[2,64,36], index: 10, kind: input, shape index: {}]   ;;  %s7575_s11 = inlined_call_operand.vmem [shape: f32[2,1,36], index: 11, kind: input, shape index: {}]   ;;  %s7576_s12 = inlined_call_operand.hbm [shape: f32[2,32,32], index: 12, kind: input, shape index: {}]   ;;  %s7577_s13 = inlined_call_operand.hbm [shape: f32[2,32,32], index: 13, kind: input, shape index: {}]   ;;  %s7578_s14 = inlined_call_operand.vmem [shape: f32[2,3,32], index: 14, kind: input, shape index: {}]   ;;  %s7579_s15 = inlined_call_operand.vmem [shape: f32[4,32], index: 15, kind: input, shape index: {}]   ;;  %s7580_s16 = inlined_call_operand.hbm [shape: f32[96,32], index: 16, kind: input, shape index: {}]   ;;  %s7581_s17 = inlined_call_operand.vmem [shape: f32[3,32], index: 17, kind: input, shape index: {}]   ;;  %s7582_s18 = inlined_call_operand.hbm [shape: f32[64,32], index: 18, kind: output, shape index: {0}]   ;;  %s7583_s19 = inlined_call_operand.hbm [shape: f32[2,4,32], index: 19, kind: output, shape index: {1}]  }
   0x1   :  { %7602 = sst [smem:[#allocation34_spill]] %s7564_s0 }
   0x2   :  { %7603 = sst [smem:[#allocation35_spill]] %s7565_s1 }
   0x3   :  { %7604 = sst [smem:[#allocation36_spill]] %s7566_s2 }
   0x4   :  { %7605 = sst [smem:[#allocation37_spill]] %s7567_s3 }
   0x5   :  { %7606 = sst [smem:[#allocation38_spill]] %s7568_s4 }
   0x6   :  { %7607 = sst [smem:[#allocation39_spill]] %s7578_s14 }
   0x7   :  { %7608 = sst [smem:[#allocation40_spill]] %s7581_s17 }
   0x8   :  { %7609 = sst [smem:[#allocation41_spill]] %s7582_s18 }
   0x9   :  { %7610 = sst [smem:[#allocation42_spill]] %s7583_s19 }
   0xa   :  { %25 = vsyncpa [#allocation3], 0 }
   0xb   :  { %26 = vsyncpa [#allocation6], 0 }
   0xc   :  { %27 = vsyncpa [#allocation9], 0 }
   0xd   :  { %28 = vsyncpa [#allocation12], 0 }
   0xe   :  { %29 = vsyncpa [#allocation15], 0 }
   0xf   :  { %30 = vsyncpa [#allocation4], 0 }
  0x10   :  { %32 = vsyncpa [#allocation4 + $0x1], 0 }
  0x11   :  { %33 = vsyncpa [#allocation18], 0 }
  0x12   :  { %35 = vsyncpa [#allocation18 + $0x1], 0  ;;  %s6442_s0 = smov 0   ;;  %s6444_s30 = smov 0  }
  0x13   :  { %s6446_s20 = smov 0   ;;  %s6448_s21 = smov 0  }
  0x14 LB: > { %7611 = sst [smem:[#allocation26_spill]] %s6302_s0  ;;  %s6463_s1 = sadd.s32 4294967295, %s6314_s21   ;;  %s6314_s21 = sphi %s6448_s21, %s7654_s21   ;;  %s6310_s20 = sphi %s6446_s20, %s7657_s20   ;;  %s6306_s30 = sphi %s6444_s30, %s7656_s30   ;;  %s6302_s0 = sphi %s6442_s0, %s7655_s0  }
  0x15   : > { %7612 = sst [smem:[#allocation27_spill]] %s6306_s30  ;;  %s4496_s22 = sadd.s32 4294967294, %s6314_s21  }
  0x16   : > { %7613 = sst [smem:[#allocation28_spill]] %s6310_s20  ;;  %s6467_s2 = sadd.s32 1, %s6314_s21  }
  0x17   : > { %7614 = sst [smem:[#allocation29_spill]] %s6314_s21  ;;  %s441_s23 = sadd.s32 1, %s6310_s20 }
  0x18   : > { %7615 = sst [smem:[#allocation30_spill]] %s6467_s2  ;;  %s438_s24 = ssub.s32 %s6314_s21, %s6467_s2 }
  0x19   : > { %p451_p0 = scmp.ne.s32.totalorder %s6310_s20, %s6306_s30  ;;  %p439_p1 = scmp.eq.s32.totalorder %s438_s24, 0 }
  0x1a   : > { %p452_p2 = scmp.eq.s32.totalorder %s6463_s1, 1  ;;  %p457_p3 = scmp.ne.s32.totalorder %s6306_s30, %s6302_s0 }
  0x1b   : > { %p458_p4 = scmp.eq.s32.totalorder %s4496_s22, 1  ;;  %p4497_p7 = scmp.ge.s32.totalorder %s6314_s21, 1 }
  0x1c   : > { %s6478_s25 = scalar_select %p439_p1, %s6310_s20, %s441_s23  }
  0x1d   : > { %p6480_p5 = por %p452_p2, %p451_p0  ;;  %p6484_p6 = por %p458_p4, %p457_p3 }
  0x1e   : > { %7616 = sst [smem:[#allocation31_spill]] %s6478_s25  ;;  %p491_p8 = scmp.lt.s32.totalorder %s6314_s21, 3 }
  0x1f   : > { %s7617_s3 = scalar_select %p6480_p5, 1, 0 }
  0x20   : > { %s7619_s26 = scalar_select %p6484_p6, 1, 0 }
  0x21   : > { %7618 = sst [smem:[#allocation32_spill]] %s7617_s3  ;;  %p7592_p9 = scmp.eq.s32.totalorder %s6463_s1, 0 }
  0x22   : > { %7620 = sst [smem:[#allocation33_spill]] %s7619_s26  ;;  %p6491_p10 = pnand %p4497_p7, %p491_p8 }
  0x23   : > { %s6316_s28 = smov [#allocation5]   ;;  %s6317_s23 = smov [#allocation8]  }
  0x24   : > { %s7621_s27 = scalar_select %p6491_p10, 1, 0 }
  0x25   : > { %s522_s29 = sshll.u32 %s6316_s28, 4  ;;  %p5754_p11 = pneg %p6491_p10  ;;  %s523_s29 = int_to_ptr.vmem [resolvable:$true] %s522_s29 }
  0x26   : > { %s548_s24 = sshll.u32 %s6317_s23, 4  ;;  %s5976_s2 = scalar_lea.hbm %s7570_s6, 128  ;;  %s549_s24 = int_to_ptr.vmem [resolvable:$true] %s548_s24 }
  0x27   : > { %p6499_p12 = pnand %p7592_p9, %p5754_p11  ;;  %p5977_p13 = scmp.ne.s32.totalorder %s7570_s6, %s5976_s2 }
  0x28   : > { %p5983_p3 = scmp.lt.u32.totalorder %s5976_s2, %s7570_s6 }
  0x29   : > { %p6511_p0 = pneg %p6499_p12 }
  0x2b   : > { %p5979_p1 = pnand %p6511_p0, %p5977_p13 }
  0x2d   : > { %p5980_p2 = pneg %p5979_p1 }
  0x2f   : > { %p5985_p4 = pnand %p5983_p3, %p5980_p2 }
  0x31   : > { %5988 = shalt.err (!%p5985_p4)
}
  0x32   : > { %s5989_s20 = scalar_lea.vmem %s523_s29, 128  ;;  %p5997_p9 = scmp.lt.s32.totalorder %s523_s29, %s523_s29 }
  0x33   : > { %p5990_p7 = scmp.ne.s32.totalorder %s523_s29, %s5989_s20  ;;  %p5998_p6 = scmp.lt.s32.totalorder %s5989_s20, %s5989_s20 }
  0x35   : > { %p5992_p8 = pnand %p5990_p7, %p6511_p0  ;;  %p5999_p5 = por %p5998_p6, %p5997_p9 }
  0x37   : > { %p5993_p11 = pneg %p5992_p8 }
  0x39   : > { %p6000_p10 = pnand %p5999_p5, %p5993_p11 }
  0x3b   : > { %6003 = shalt.err (!%p6000_p10)
}
  0x3c   : > { %s6318_s0 = smov 64   ;;  %s6319_s25 = smov 4  }
  0x3d   : > { %5760 = dma.hbm_to_vmem [thread:$0]  (!%p6499_p12), %s7570_s6, 128, %s523_s29, [#allocation6], %s6318_s0, %s6318_s0, %s6319_s25  }
  0x3e   : > { %s6320_s2 = smov [#allocation11]   ;;  %s6004_s18 = scalar_lea.hbm %s7572_s8, 1024 }
  0x3f   : > { %s580_s26 = sshll.u32 %s6320_s2, 4  ;;  %p6005_p5 = scmp.ne.s32.totalorder %s7572_s8, %s6004_s18  ;;  %s581_s26 = int_to_ptr.vmem [resolvable:$true] %s580_s26 }
  0x40   : > { %p6011_p10 = scmp.lt.u32.totalorder %s6004_s18, %s7572_s8 }
  0x41   : > { %p6007_p6 = pnand %p6005_p5, %p6511_p0 }
  0x43   : > { %p6008_p9 = pneg %p6007_p6 }
  0x45   : > { %p6013_p13 = pnand %p6011_p10, %p6008_p9 }
  0x47   : > { %6016 = shalt.err (!%p6013_p13)
}
  0x48   : > { %s6017_s29 = scalar_lea.vmem %s549_s24, 1024  ;;  %p6025_p4 = scmp.lt.s32.totalorder %s549_s24, %s549_s24 }
  0x49   : > { %p6018_p1 = scmp.ne.s32.totalorder %s549_s24, %s6017_s29  ;;  %p6026_p7 = scmp.lt.s32.totalorder %s6017_s29, %s6017_s29 }
  0x4b   : > { %p6020_p2 = pnand %p6018_p1, %p6511_p0  ;;  %p6027_p8 = por %p6026_p7, %p6025_p4 }
  0x4d   : > { %p6021_p3 = pneg %p6020_p2 }
  0x4f   : > { %p6028_p11 = pnand %p6027_p8, %p6021_p3 }
  0x51   : > { %6031 = shalt.err (!%p6028_p11)
}
  0x52   : > { %s7600_s30 = smov 128   ;;  %s6322_s3 = smov 8  }
  0x53   : > { %5766 = dma.hbm_to_vmem [thread:$0]  (!%p6499_p12), %s7572_s8, 1024, %s549_s24, [#allocation9], %s7600_s30, %s7600_s30, %s6322_s3  }
  0x54   : > { %s6032_s25 = scalar_lea.hbm %s7576_s12, 1024 }
  0x55   : > { %p6033_p5 = scmp.ne.s32.totalorder %s7576_s12, %s6032_s25  ;;  %p6039_p10 = scmp.lt.u32.totalorder %s6032_s25, %s7576_s12 }
  0x57   : > { %p6035_p6 = pnand %p6033_p5, %p6511_p0 }
  0x59   : > { %p6036_p9 = pneg %p6035_p6 }
  0x5b   : > { %p6041_p13 = pnand %p6039_p10, %p6036_p9 }
  0x5d   : > { %6044 = shalt.err (!%p6041_p13)
}
  0x5e   : > { %s6045_s20 = scalar_lea.vmem %s581_s26, 1024  ;;  %p6053_p4 = scmp.lt.s32.totalorder %s581_s26, %s581_s26 }
  0x5f   : > { %p6046_p1 = scmp.ne.s32.totalorder %s581_s26, %s6045_s20  ;;  %p6054_p7 = scmp.lt.s32.totalorder %s6045_s20, %s6045_s20 }
  0x61   : > { %p6048_p2 = pnand %p6046_p1, %p6511_p0  ;;  %p6055_p8 = por %p6054_p7, %p6053_p4 }
  0x63   : > { %p6049_p3 = pneg %p6048_p2 }
  0x65   : > { %p6056_p11 = pnand %p6055_p8, %p6049_p3 }
  0x67   : > { %6059 = shalt.err (!%p6056_p11)
}
  0x68   : > { %5772 = dma.hbm_to_vmem [thread:$0]  (!%p6499_p12), %s7576_s12, 1024, %s581_s26, [#allocation12], %s7600_s30, %s7600_s30, %s6322_s3  }
  0x69   : > { %s6323_s14 = smov [#allocation2]   ;;  %s6324_s18 = smov [#allocation7]  }
  0x6a   : > { %s509_s17 = sshll.u32 %s6323_s14, 4  ;;  %s535_s0 = sshll.u32 %s6324_s18, 4  ;;  %s510_s17 = int_to_ptr.vmem [resolvable:$true] %s509_s17  ;;  %s536_s0 = int_to_ptr.vmem [resolvable:$true] %s535_s0 }
  0x6b   : > { %s6060_s21 = scalar_lea.hbm %s7569_s5, 1024 }
  0x6c   : > { %p6061_p5 = scmp.ne.s32.totalorder %s7569_s5, %s6060_s21  ;;  %p6067_p10 = scmp.lt.u32.totalorder %s6060_s21, %s7569_s5 }
  0x6e   : > { %p6063_p6 = pnand %p6061_p5, %p6511_p0 }
  0x70   : > { %p6064_p9 = pneg %p6063_p6 }
  0x72   : > { %p6069_p13 = pnand %p6067_p10, %p6064_p9 }
  0x74   : > { %6072 = shalt.err (!%p6069_p13)
}
  0x75   : > { %s6073_s26 = scalar_lea.vmem %s510_s17, 1024  ;;  %p6081_p4 = scmp.lt.s32.totalorder %s510_s17, %s510_s17 }
  0x76   : > { %p6074_p1 = scmp.ne.s32.totalorder %s510_s17, %s6073_s26  ;;  %p6082_p7 = scmp.lt.s32.totalorder %s6073_s26, %s6073_s26 }
  0x78   : > { %p6076_p2 = pnand %p6074_p1, %p6511_p0  ;;  %p6083_p8 = por %p6082_p7, %p6081_p4 }
  0x7a   : > { %p6077_p3 = pneg %p6076_p2 }
  0x7c   : > { %p6084_p11 = pnand %p6083_p8, %p6077_p3 }
  0x7e   : > { %6087 = shalt.err (!%p6084_p11)
}
  0x7f   : > { %5757 = dma.hbm_to_vmem [thread:$0]  (!%p6499_p12), %s7569_s5, 1024, %s510_s17, [#allocation3], %s7600_s30, %s7600_s30, %s6322_s3  }
  0x80   : > { %s6088_s19 = scalar_lea.hbm %s7571_s7, 2048 }
  0x81   : > { %p6089_p5 = scmp.ne.s32.totalorder %s7571_s7, %s6088_s19  ;;  %p6095_p10 = scmp.lt.u32.totalorder %s6088_s19, %s7571_s7 }
  0x83   : > { %p6091_p6 = pnand %p6089_p5, %p6511_p0 }
  0x85   : > { %p6092_p9 = pneg %p6091_p6 }
  0x87   : > { %p6097_p13 = pnand %p6095_p10, %p6092_p9 }
  0x89   : > { %6100 = shalt.err (!%p6097_p13)
}
  0x8a   : > { %s6101_s24 = scalar_lea.vmem %s536_s0, 2048  ;;  %p6109_p4 = scmp.lt.s32.totalorder %s536_s0, %s536_s0 }
  0x8b   : > { %p6102_p1 = scmp.ne.s32.totalorder %s536_s0, %s6101_s24  ;;  %p6110_p7 = scmp.lt.s32.totalorder %s6101_s24, %s6101_s24 }
  0x8d   : > { %p6104_p2 = pnand %p6102_p1, %p6511_p0  ;;  %p6111_p8 = por %p6110_p7, %p6109_p4 }
  0x8f   : > { %p6105_p3 = pneg %p6104_p2 }
  0x91   : > { %p6112_p11 = pnand %p6111_p8, %p6105_p3 }
  0x93   : > { %6115 = shalt.err (!%p6112_p11)
}
  0x94   : > { %5763 = dma.hbm_to_vmem [thread:$0]  (!%p6499_p12), %s7571_s7, 2048, %s536_s0, [#allocation6], %s7600_s30, %s7600_s30, %s6322_s3  }
  0x95   : > { %s6325_s29 = smov [#allocation10]   ;;  %s6116_s19 = scalar_lea.hbm %s7573_s9, 32 }
  0x96   : > { %s561_s14 = sshll.u32 %s6325_s29, 4  ;;  %p6117_p5 = scmp.ne.s32.totalorder %s7573_s9, %s6116_s19  ;;  %s562_s14 = int_to_ptr.vmem [resolvable:$true] %s561_s14 }
  0x97   : > { %p6123_p10 = scmp.lt.u32.totalorder %s6116_s19, %s7573_s9 }
  0x98   : > { %p6119_p6 = pnand %p6117_p5, %p6511_p0 }
  0x9a   : > { %p6120_p9 = pneg %p6119_p6 }
  0x9c   : > { %p6125_p13 = pnand %p6123_p10, %p6120_p9 }
  0x9e   : > { %6128 = shalt.err (!%p6125_p13)
}
  0x9f   : > { %s6129_s0 = scalar_lea.vmem %s562_s14, 32  ;;  %p6137_p4 = scmp.lt.s32.totalorder %s562_s14, %s562_s14 }
  0xa0   : > { %p6130_p1 = scmp.ne.s32.totalorder %s562_s14, %s6129_s0  ;;  %p6138_p7 = scmp.lt.s32.totalorder %s6129_s0, %s6129_s0 }
  0xa2   : > { %p6132_p2 = pnand %p6130_p1, %p6511_p0  ;;  %p6139_p8 = por %p6138_p7, %p6137_p4 }
  0xa4   : > { %p6133_p3 = pneg %p6132_p2 }
  0xa6   : > { %p6140_p11 = pnand %p6139_p8, %p6133_p3 }
  0xa8   : > { %6143 = shalt.err (!%p6140_p11)
}
  0xa9   : > { %s6326_s24 = smov 16   ;;  %s6327_s17 = smov 1  }
  0xaa   : > { %5769 = dma.hbm_to_vmem [thread:$0]  (!%p6499_p12), %s7573_s9, 32, %s562_s14, [#allocation9], %s6326_s24, %s6326_s24, %s6327_s17  }
  0xab   : > { %s6328_s18 = smov [#allocation13]   ;;  %s6329_s19 = smov [#allocation14]  }
  0xac   : > { %s593_s25 = sshll.u32 %s6328_s18, 4  ;;  %s612_s21 = sshll.u32 %s6329_s19, 4  ;;  %s594_s25 = int_to_ptr.vmem [resolvable:$true] %s593_s25  ;;  %s6629_s21 = int_to_ptr.vmem [resolvable:$true] %s612_s21 }
  0xad   : > { %s6144_s20 = scalar_lea.hbm %s7577_s13, 1024 }
  0xae   : > { %p6145_p5 = scmp.ne.s32.totalorder %s7577_s13, %s6144_s20  ;;  %p6151_p10 = scmp.lt.u32.totalorder %s6144_s20, %s7577_s13 }
  0xb0   : > { %p6147_p6 = pnand %p6145_p5, %p6511_p0 }
  0xb2   : > { %p6148_p9 = pneg %p6147_p6 }
  0xb4   : > { %p6153_p13 = pnand %p6151_p10, %p6148_p9 }
  0xb6   : > { %6156 = shalt.err (!%p6153_p13)
}
  0xb7   : > { %s6157_s24 = scalar_lea.vmem %s594_s25, 1024  ;;  %p6165_p4 = scmp.lt.s32.totalorder %s594_s25, %s594_s25 }
  0xb8   : > { %p6158_p1 = scmp.ne.s32.totalorder %s594_s25, %s6157_s24  ;;  %p6166_p7 = scmp.lt.s32.totalorder %s6157_s24, %s6157_s24 }
  0xba   : > { %p6160_p2 = pnand %p6158_p1, %p6511_p0  ;;  %p6167_p8 = por %p6166_p7, %p6165_p4 }
  0xbc   : > { %p6161_p3 = pneg %p6160_p2 }
  0xbe   : > { %p6168_p11 = pnand %p6167_p8, %p6161_p3 }
  0xc0   : > { %6171 = shalt.err (!%p6168_p11)
}
  0xc1   : > { %s7624_s30 = smov 128   ;;  %s6172_s2 = scalar_lea.hbm %s7580_s16, 1536 }
  0xc2   : > { %5775 = dma.hbm_to_vmem [thread:$0]  (!%p6499_p12), %s7577_s13, 1024, %s594_s25, [#allocation12], %s7624_s30, %s7624_s30, %s6322_s3  }
  0xc3   : > { %p6173_p5 = scmp.ne.s32.totalorder %s7580_s16, %s6172_s2  ;;  %p6179_p10 = scmp.lt.u32.totalorder %s6172_s2, %s7580_s16 }
  0xc5   : > { %p6175_p6 = pnand %p6173_p5, %p6511_p0 }
  0xc7   : > { %p6176_p9 = pneg %p6175_p6 }
  0xc9   : > { %p6181_p13 = pnand %p6179_p10, %p6176_p9 }
  0xcb   : > { %6184 = shalt.err (!%p6181_p13)
}
  0xcc   : > { %s6185_s25 = scalar_lea.vmem %s6629_s21, 1536  ;;  %p6193_p4 = scmp.lt.s32.totalorder %s6629_s21, %s6629_s21 }
  0xcd   : > { %p6186_p1 = scmp.ne.s32.totalorder %s6629_s21, %s6185_s25  ;;  %p6194_p7 = scmp.lt.s32.totalorder %s6185_s25, %s6185_s25 }
  0xcf   : > { %p6188_p2 = pnand %p6186_p1, %p6511_p0  ;;  %p6195_p8 = por %p6194_p7, %p6193_p4 }
  0xd1   : > { %p6189_p3 = pneg %p6188_p2 }
  0xd3   : > { %p6196_p11 = pnand %p6195_p8, %p6189_p3 }
  0xd5   : > { %6199 = shalt.err (!%p6196_p11)
}
  0xd6   : > { %5778 = dma.hbm_to_vmem [thread:$0]  (!%p6499_p12), %s7580_s16, 1536, %s6629_s21, [#allocation15], %s7624_s30, %s7624_s30, %s6322_s3  }
  0xd7   : > { %p7625_p5 = scmp.ne.s32.totalorder %s7621_s27, 0 }
  0xd8   : > { %p7626_p0 = scmp.eq.s32.totalorder (!%p7625_p5), %s6463_s1, 0 }
  0xd9   : > { %655 = sbr.rel (%p7625_p5) target bundleno = 7251 (0x1c53), region = 92 }
  0xe0   : > { %6273 = dma.done.wait (%p7626_p0), [#allocation3], 1024   ;;  %p7627_p6 = pmov %p7626_p0 }
  0xe1   : > { %p7628_p9 = pmov %p7626_p0 }
  0xe2   : > { %6275 = vsyncadd (%p7627_p6), [#allocation3], 4294966272 }
  0xe3   : > { %6277 = dma.done.wait (%p7628_p9), [#allocation6], 2176   ;;  %p7629_p10 = pmov %p7626_p0 }
  0xe4   : > { %p7630_p13 = pmov %p7626_p0 }
  0xe5   : > { %6279 = vsyncadd (%p7629_p10), [#allocation6], 4294965120 }
  0xe6   : > { %6281 = dma.done.wait (%p7630_p13), [#allocation9], 1056   ;;  %p7631_p12 = pmov %p7626_p0 }
  0xe7   : > { %p7632_p1 = pmov %p7626_p0 }
  0xe8   : > { %6283 = vsyncadd (%p7631_p12), [#allocation9], 4294966240 }
  0xe9   : > { %6285 = dma.done.wait (%p7632_p1), [#allocation12], 2048   ;;  %p7633_p2 = pmov %p7626_p0 }
  0xea   : > { %p7634_p3 = pmov %p7626_p0 }
  0xeb   : > { %6287 = vsyncadd (%p7633_p2), [#allocation12], 4294965248 }
  0xec   : > { %6289 = dma.done.wait (%p7634_p3), [#allocation15], 1536   ;;  %p7635_p4 = pmov %p7626_p0 }
  0xed   : > { %s4518_s27 = sshll.u32 %s6463_s1, 2  ;;  %v6330_v0 = vmov 0.0|0.0   ;;  %vm6331_vm0 = vmmov 0   ;;  %v6332_v1 = vmov 0.0   ;;  %s7636_s21 = sld [smem:[#allocation35_spill]]  ;;  %v966_v7 = vld [vmem:[#allocation2] sm:$0xff]  ;;  %v970_v48 = vlaneseq }
  0xee   : > { %6291 = vsyncadd (%p7635_p4), [#allocation15], 4294965760  ;;  %5468 = vmatprep.subr.bf16.mxu1 %v6330_v0  ;;  %p753_p7 = scmp.lt.s32.totalorder %s4518_s27, 7  ;;  %4923 = vmatprep.mubr.msk.f32.mxu1 %vm6331_vm0, %v6332_v1  ;;  %p764_p8 = scmp.lt.s32.totalorder %s6463_s1, 1  ;;  %v967_v8 = vld [vmem:[#allocation2 + $0x8] sm:$0xff]  ;;  %v968_v9 = vld [vmem:[#allocation2 + $0x10] sm:$0xff] }
  0xef   : > { %5480 = vmatprep.subr.bf16.mxu0 %v6330_v0  ;;  %4945 = vmatprep.mubr.msk.f32.mxu0 %vm6331_vm0, %v6332_v1  ;;  %v969_v10 = vld [vmem:[#allocation2 + $0x18] sm:$0xff]  ;;  %v5481_v12 = vpack.c.bf16 %v967_v8, %v966_v7  ;;  %s7637_s18 = sld [smem:[#allocation34_spill]]  ;;  %s7638_s0 = sld [smem:[#allocation37_spill]]  ;;  %vm810_vm1 = vcmask 261120   ;;  %v6333_v23 = vmov 0   ;;  %v782_v24 = vld [vmem:[#allocation7] sm:$0xff] }
  0xf0   : > { %s7659_s27 = smov (!%p753_p7, %s4518_s27), 7  ;;  %v5484_v13 = vpack.c.bf16 %v969_v10, %v968_v9  ;;  %s7640_s24 = sld [smem:[#allocation36_spill]]  ;;  %5859 = vset.pattern.permute.xlu0 %v6333_v23  ;;  %5860 = vset.pattern.permute.xlu1 %v6333_v23  ;;  %v783_v25 = vld [vmem:[#allocation7 + $0x8] sm:$0xff]  ;;  %v784_v26 = vld [vmem:[#allocation7 + $0x10] sm:$0xff]  ;;  %v785_v28 = vld [vmem:[#allocation7 + $0x18] sm:$0xff]  ;;  %v6818_v49 = vshrl.u32 %v970_v48, 7 }
  0xf1   : > { %s4519_s22 = sshll.u32 %s7659_s27, 3  ;;  %5482 = vmatpush3.bf16.msra.mxu0 %v5481_v12  ;;  %v6772_v27 = vpack.c.bf16 %v783_v25, %v782_v24  ;;  %v6775_v29 = vpack.c.bf16 %v785_v28, %v784_v26  ;;  %v786_v30 = vld [vmem:[#allocation7 + $0x20] sm:$0xff]  ;;  %v787_v31 = vld [vmem:[#allocation7 + $0x28] sm:$0xff]  ;;  %v788_v33 = vld [vmem:[#allocation7 + $0x30] sm:$0xff]  ;;  %s7641_s4 = sld [smem:[#allocation38_spill]]  ;;  %vm1353_vm7 = vcmask 31744  }
  0xf2   : > { %s765_s2 = scalar_select %p764_p8, %s6463_s1, 1  ;;  %5483 = vmatprep.subr.bf16.mxu0 %v6330_v0  ;;  %v6781_v32 = vpack.c.bf16 %v787_v31, %v786_v30  ;;  %v789_v34 = vld [vmem:[#allocation7 + $0x38] sm:$0xff]  ;;  %v790_v36 = vld [vmem:[#allocation7 + $0x40] sm:$0xff]  ;;  %v791_v37 = vld [vmem:[#allocation7 + $0x48] sm:$0xff]  ;;  %v6821_v50 = vsub.s32 0, %v6818_v49  ;;  %vm1366_vm8 = vcmask 1043456  }
  0xf3   : > { %s762_s30 = scalar_lea.vmem %s7636_s21, %s4519_s22  ;;  %v6787_v35 = vpack.c.bf16 %v789_v34, %v788_v33  ;;  %v6793_v38 = vpack.c.bf16 %v791_v37, %v790_v36  ;;  %v792_v39 = vld [vmem:[#allocation7 + $0x50] sm:$0xff]  ;;  %v793_v40 = vld [vmem:[#allocation7 + $0x58] sm:$0xff]  ;;  %v794_v42 = vld [vmem:[#allocation7 + $0x60] sm:$0xff]  ;;  %s6335_s23 = smov 96   ;;  %vm1705_vm14 = vcmask 523264  }
  0xf4   : > { %v6710_v2 = vld [vmem:[%s762_s30] sm:$0xff]  ;;  %v6712_v3 = vld [vmem:[%s762_s30 + $0x8] sm:$0xff]  ;;  %v6714_v4 = vld [vmem:[%s762_s30 + $0x10] sm:$0xff]  ;;  %v6799_v41 = vpack.c.bf16 %v793_v40, %v792_v39  ;;  %s6337_s21 = smov 64   ;;  %s7642_s17 = sld [smem:[#allocation39_spill]] }
  0xf5   : > { %v5469_v5 = vpack.c.bf16 %v6712_v3, %v6710_v2  ;;  %v6719_v6 = vld [vmem:[%s762_s30 + $0x18] sm:$0xff]  ;;  %s6726_s19 = scalar_lea.vmem %s7637_s18, %s4519_s22  ;;  %s7639_s26 = smov %s7638_s0  ;;  %v6736_v16 = vld [vmem:[%s7638_s0] sm:$0xf]  ;;  %5485 = vmatpush3.bf16.msra.mxu0 %v5484_v13  ;;  %v795_v43 = vld [vmem:[#allocation7 + $0x68] sm:$0xff]  ;;  %vm800_vm9 = vcmp.eq.f32.partialorder %v6712_v3, 0.0  ;;  %vm799_vm10 = vcmp.eq.f32.partialorder %v6710_v2, 0.0 }
  0xf6   : > { %v5472_v11 = vpack.c.bf16 %v6719_v6, %v6714_v4  ;;  %v768_v14 = vld [vmem:[%s6726_s19] sm:$0xff]  ;;  %v769_v15 = vld [vmem:[%s6726_s19 + $0x8] sm:$0xff]  ;;  %s766_s27 = scalar_lea.vmem %s7640_s24, %s765_s2  ;;  %v770_v18 = vld [vmem:[%s6726_s19 + $0x10] sm:$0xff]  ;;  %5510 = vmatprep.subr.bf16.mxu0 %v6330_v0  ;;  %v6805_v44 = vpack.c.bf16 %v795_v43, %v794_v42  ;;  %s6334_s2 = smov 32   ;;  %vm802_vm11 = vcmp.eq.f32.partialorder %v6719_v6, 0.0  ;;  %vm801_vm12 = vcmp.eq.f32.partialorder %v6714_v4, 0.0 }
  0xf7   : > { %5470 = vmatpush3.bf16.msra.mxu1 %v5469_v5  ;;  %v5475_v17 = vpack.c.bf16 %v769_v15, %v768_v14  ;;  %v771_v19 = vld [vmem:[%s6726_s19 + $0x18] sm:$0xff]  ;;  %v4522_v21 = vld [vmem:[%s766_s27] ss:$0 sm:$0xff]  ;;  %v1819_v3 = vsel %vm801_vm12, 1, %v6333_v23  ;;  %s6336_s24 = smov 60   ;;  %s7643_s14 = sld [smem:[#allocation40_spill]] }
  0xf8   : > { %5471 = vmatprep.subr.bf16.mxu1 %v6330_v0  ;;  %v5478_v20 = vpack.c.bf16 %v771_v19, %v770_v18  ;;  %4946 = vmatmul.mubr.msk.f32.vlgmr.msra.gmra.mrb[0].mxu0 %vm810_vm1, %v768_v14  ;;  %v6754_v22 = vmul.f32 %v4522_v21, %v6736_v16  ;;  %v796_v45 = vld [vmem:[#allocation7 + $0x70] sm:$0xff]  ;;  %v797_v46 = vld [vmem:[#allocation7 + $0x78] sm:$0xff]  ;;  %s7644_s27 = sld [smem:[#allocation27_spill]]  ;;  %s7645_s20 = sld [smem:[#allocation41_spill]] }
  0xf9   : > { %4948 = vmatprep.mubr.msk.f32.mxu0 %vm6331_vm0, %v6332_v1  ;;  %5512 = vmatpush3.bf16.msra.mxu0 %v6772_v27  ;;  %v6811_v47 = vpack.c.bf16 %v797_v46, %v796_v45  ;;  %v6823_v51 = vld [vmem:[#allocation5] sm:$0x7]  ;;  %s6338_s18 = smov [#allocation16]  }
  0xfa   : > { %5513 = vmatprep.subr.bf16.mxu0 %v6330_v0  ;;  %v6827_v52 = vrot.slane %v6823_v51, %v6821_v50 }
  0xfb   : > { %5473 = vmatpush3.bf16.msra.mxu1 %v5472_v11 }
  0xfc   : > { %5474 = vmatprep.subr.bf16.mxu1 %v6330_v0  ;;  %4949 = vmatmul.mubr.msk.f32.gmra.mrb[2].mxu0 %vm810_vm1, %v769_v15 }
  0xfd   : > { %4951 = vmatprep.mubr.msk.f32.mxu0 %vm6331_vm0, %v6332_v1  ;;  %5515 = vmatpush3.bf16.msra.mxu0 %v6775_v29 }
  0xfe   : > { %4924 = vmatmul.mubr.msk.f32.vlgmr.msra.gmra.mrb[0].mxu1 %vm810_vm1, %v6736_v16  ;;  %5516 = vmatprep.subr.bf16.mxu0 %v6330_v0  ;;  %s7463_s22 = sand.u32 1, %s7644_s27  }
  0xff   : > { %5476 = vmatpush3.bf16.msra.mxu1 %v5475_v17  ;;  %4934 = vmatprep.mubr.msk.f32.mxu1 %vm6331_vm0, %v6332_v1  ;;  %s4516_s28 = sshll.u32 %s7463_s22, 5  ;;  %s4517_s3 = sshll.u32 %s7463_s22, 2 }
 0x100   : > { %5477 = vmatprep.subr.bf16.mxu1 %v6330_v0  ;;  %4952 = vmatmul.mubr.msk.f32.gmra.mrb[4].mxu0 %vm810_vm1, %v770_v18  ;;  %s7486_s25 = scalar_lea.vmem [#allocation17], %s4517_s3 }
 0x101   : > { %4954 = vmatprep.mubr.msk.f32.mxu0 %vm6331_vm0, %v6332_v1  ;;  %5518 = vmatpush3.bf16.msra.mxu0 %v6781_v32 }
 0x102   : > { %5519 = vmatprep.subr.bf16.mxu0 %v6330_v0 }
 0x103   : > { %5479 = vmatpush3.bf16.msra.mxu1 %v5478_v20 }
 0x104   : > { %5486 = vmatprep.subr.bf16.mxu1 %v6330_v0  ;;  %4955 = vmatmul.mubr.msk.f32.gmra.mrb[6].mxu0 %vm810_vm1, %v771_v19 }
 0x105   : > { %4957 = vmatprep.mubr.msk.f32.mxu0 %vm6331_vm0, %v6332_v1  ;;  %5521 = vmatpush3.bf16.msra.mxu0 %v6787_v35 }
 0x106   : > { %4935 = vmatmul.mubr.msk.f32.vlgmr.msra.gmra.mrb[2].mxu1 %vm810_vm1, %v6754_v22  ;;  %5522 = vmatprep.subr.bf16.mxu0 %v6330_v0 }
 0x107   : > { %4992 = vmatprep.mubr.msk.f32.mxu1 %vm6331_vm0, %v6332_v1  ;;  %5488 = vmatpush3.bf16.msra.mxu1 %v6772_v27 }
 0x108   : > { %5489 = vmatprep.subr.bf16.mxu1 %v6330_v0 }
 0x109   : > { %5524 = vmatpush3.bf16.msra.mxu0 %v6793_v38 }
 0x10a   : > { %5525 = vmatprep.subr.bf16.mxu0 %v6330_v0 }
 0x10b   : > { %5491 = vmatpush3.bf16.msra.mxu1 %v6775_v29 }
 0x10c   : > { %5492 = vmatprep.subr.bf16.mxu1 %v6330_v0 }
 0x10d   : > { %5527 = vmatpush3.bf16.msra.mxu0 %v6799_v41 }
 0x10e   : > { %5528 = vmatprep.subr.bf16.mxu0 %v6330_v0 }
 0x10f   : > { %5494 = vmatpush3.bf16.msra.mxu1 %v6781_v32 }
 0x110   : > { %5495 = vmatprep.subr.bf16.mxu1 %v6330_v0 }
 0x111   : > { %5530 = vmatpush3.bf16.msra.mxu0 %v6805_v44 }
 0x112   : > { %5531 = vmatprep.subr.bf16.mxu0 %v6330_v0 }
 0x113   : > { %5497 = vmatpush3.bf16.msra.mxu1 %v6787_v35 }
 0x114   : > { %5498 = vmatprep.subr.bf16.mxu1 %v6330_v0 }
 0x115   : > { %5533 = vmatpush3.bf16.msra.mxu0 %v6811_v47 }
 0x117   : > { %5500 = vmatpush3.bf16.msra.mxu1 %v6793_v38 }
 0x118   : > { %5501 = vmatprep.subr.bf16.mxu1 %v6330_v0 }
 0x11b   : > { %5503 = vmatpush3.bf16.msra.mxu1 %v6799_v41 }
 0x11c   : > { %5504 = vmatprep.subr.bf16.mxu1 %v6330_v0 }
 0x11f   : > { %5506 = vmatpush3.bf16.msra.mxu1 %v6805_v44 }
 0x120   : > { %5507 = vmatprep.subr.bf16.mxu1 %v6330_v0 }
 0x123   : > { %5509 = vmatpush3.bf16.msra.mxu1 %v6811_v47 }
 0x1cb   : > { %v1055_v56 = vpop.f32.mrb[0].mxu0 }
 0x1cc   : > { %v1056_v57 = vadd.f32 %v1055_v56, %v6827_v52  ;;  %v4947_v58 = vpop.f32.mrb[1].mxu0 }
 0x1ce   : > { %v1085_v59 = vmul.f32 0.7692308, %v1056_v57  ;;  %vm1079_vm2 = vcmp.gt.f32.partialorder %v1056_v57, 0.0 }
 0x1cf   : > { %v1060_v60 = vpop.f32.mrb[2].mxu0 }
 0x1d0   : > { %v1090_v61 = vmul.f32 1.442695, %v1085_v59  ;;  %v1061_v62 = vadd.f32 %v1060_v60, %v6827_v52  ;;  %v4950_v63 = vpop.f32.mrb[3].mxu0 }
 0x1d1   : > { %v880_v53 = vpop.f32.mrb[0].mxu1 }
 0x1d2   : > { %v884_v54 = vmax.f32 %v880_v53, 1.0  ;;  %v4925_v55 = vpop.f32.mrb[1].mxu1  ;;  %v1086_v7 = vmul.f32 0.7692308, %v1061_v62  ;;  %vm1080_vm3 = vcmp.gt.f32.partialorder %v1061_v62, 0.0 }
 0x1d3   : > { %v1065_v9 = vpop.f32.mrb[4].mxu0 }
 0x1d4   : > { %5861 = vrcp.f32 %v884_v54  ;;  %v1092_v10 = vmul.f32 1.442695, %v1086_v7  ;;  %v1066_v11 = vadd.f32 %v1065_v9, %v6827_v52  ;;  %v4953_v12 = vpop.f32.mrb[5].mxu0 }
 0x1d5   : > { %5863 = vpow2.f32 %v1090_v61 }
 0x1d6   : > { %5865 = vpow2.f32 %v1092_v10  ;;  %v1087_v14 = vmul.f32 0.7692308, %v1066_v11  ;;  %vm1081_vm4 = vcmp.gt.f32.partialorder %v1066_v11, 0.0 }
 0x1d7   : > { %v1070_v15 = vpop.f32.mrb[6].mxu0 }
 0x1d8   : > { %v1094_v17 = vmul.f32 1.442695, %v1087_v14  ;;  %v1071_v18 = vadd.f32 %v1070_v15, %v6827_v52  ;;  %v4956_v19 = vpop.f32.mrb[7].mxu0 }
 0x1d9   : > { %v955_v5 = vpop.f32.mrb[2].mxu1 }
 0x1da   : > { %v4936_v8 = vpop.f32.mrb[3].mxu1  ;;  %5867 = vpow2.f32 %v1094_v17  ;;  %v1088_v20 = vmul.f32 0.7692308, %v1071_v18  ;;  %vm1082_vm5 = vcmp.gt.f32.partialorder %v1071_v18, 0.0 }
 0x1dc   : > { %v1096_v24 = vmul.f32 1.442695, %v1088_v20 }
 0x1de   : > { %v5862_v13 = vpop.eup %5861  ;;  %5869 = vpow2.f32 %v1096_v24 }
 0x1df   : > { %961 = vperm.xlu0 %5859, %v5862_v13   ;;  %v5864_v21 = vpop.eup %5863 }
 0x1e0   : > { %v4530_v25 = vadd.f32 -1.0, %v5864_v21  ;;  %v5866_v28 = vpop.eup %5865 }
 0x1e1   : > { %v4531_v31 = vadd.f32 -1.0, %v5866_v28 }
 0x1e2   : > { %v1105_v26 = vmul.f32 1.3, %v4530_v25 }
 0x1e3   : > { %v1106_v33 = vmul.f32 1.3, %v4531_v31 }
 0x1e4   : > { %v6833_v30 = vsel %vm1079_vm2, %v1056_v57, %v1105_v26  ;;  %v5868_v34 = vpop.eup %5867 }
 0x1e5   : > { %4993 = vmatmul.mubr.f32.vlgmr.msra.gmra.mrb[4].mxu1 %v6833_v30  ;;  %v6838_v36 = vsel %vm1080_vm3, %v1061_v62, %v1106_v33  ;;  %v4532_v37 = vadd.f32 -1.0, %v5868_v34  ;;  %v1205_v54 = vmul.f32 %v6833_v30, %v6833_v30 }
 0x1e6   : > { %4995 = vmatprep.mubr.msk.f32.mxu1 %vm6331_vm0, %v6332_v1  ;;  %v1206_v55 = vmul.f32 %v6838_v36, %v6838_v36 }
 0x1e7   : > { %v1107_v39 = vmul.f32 1.3, %v4532_v37 }
 0x1e8   : > { %v5870_v40 = vpop.eup %5869 }
 0x1e9   : > { %4996 = vmatmul.mubr.f32.gmra.mrb[6].mxu1 %v6838_v36  ;;  %v6843_v42 = vsel %vm1081_vm4, %v1066_v11, %v1107_v39  ;;  %v4533_v43 = vadd.f32 -1.0, %v5870_v40 }
 0x1ea   : > { %4998 = vmatprep.mubr.msk.f32.mxu1 %vm6331_vm0, %v6332_v1  ;;  %v1207_v56 = vmul.f32 %v6843_v42, %v6843_v42 }
 0x1eb   : > { %v1108_v45 = vmul.f32 1.3, %v4533_v43 }
 0x1ed   : > { %4999 = vmatmul.mubr.f32.gmra.mrb[8].mxu1 %v6843_v42  ;;  %v6848_v46 = vsel %vm1082_vm5, %v1071_v18, %v1108_v45 }
 0x1ee   : > { %5001 = vmatprep.mubr.msk.f32.mxu1 %vm6331_vm0, %v6332_v1  ;;  %v1208_v57 = vmul.f32 %v6848_v46, %v6848_v46 }
 0x1f1   : > { %5002 = vmatmul.mubr.f32.gmra.mrb[10].mxu1 %v6848_v46 }
 0x1f2   : > { %5004 = vmatprep.mubr.msk.f32.mxu1 %vm6331_vm0, %v6332_v1 }
 0x25e   : > { %v6853_v48 = vpop.permute.xlu0 %961 }
 0x25f   : > { %v6856_v53 = vmul.f32 %v6853_v48, %v955_v5 }
 0x261   : > { %4958 = vmatmul.mubr.msk.f32.gmra.mrb[8].mxu0 %vm810_vm1, %v6856_v53 }
 0x262   : > { %5039 = vmatprep.mubr.msk.f32.mxu0 %vm6331_vm0, %v6332_v1 }
 0x265   : > { %5040 = vmatmul.mubr.f32.vlgmr.msra.gmra.mrb[10].mxu0 %v1205_v54 }
 0x266   : > { %5042 = vmatprep.mubr.msk.f32.mxu0 %vm6331_vm0, %v6332_v1 }
 0x269   : > { %5043 = vmatmul.mubr.f32.gmra.mrb[12].mxu0 %v1206_v55 }
 0x26a   : > { %5045 = vmatprep.mubr.msk.f32.mxu0 %vm6331_vm0, %v6332_v1 }
 0x26d   : > { %5046 = vmatmul.mubr.f32.gmra.mrb[14].mxu0 %v1207_v56 }
 0x26e   : > { %5048 = vmatprep.mubr.msk.f32.mxu0 %vm6331_vm0, %v6332_v1 }
 0x271   : > { %5049 = vmatmul.mubr.f32.gmra.mrb[16].mxu0 %v1208_v57 }
 0x272   : > { %5051 = vmatprep.mubr.msk.f32.mxu0 %vm6331_vm0, %v6332_v1 }
 0x2b8   : > { %v1181_v58 = vpop.f32.mrb[4].mxu1 }
 0x2b9   : > { %v4994_v59 = vpop.f32.mrb[5].mxu1  ;;  %v1300_v9 = vmul.f32 %v1181_v58, %v1181_v58 }
 0x2ba   : > { %v1315_v59 = vsub.f32 %v6833_v30, %v1181_v58 }
 0x2bc   : > { %v1186_v60 = vpop.f32.mrb[6].mxu1 }
 0x2bd   : > { %v4997_v61 = vpop.f32.mrb[7].mxu1  ;;  %v1301_v14 = vmul.f32 %v1186_v60, %v1186_v60 }
 0x2c0   : > { %v1191_v62 = vpop.f32.mrb[8].mxu1 }
 0x2c1   : > { %v5000_v63 = vpop.f32.mrb[9].mxu1  ;;  %v1302_v21 = vmul.f32 %v1191_v62, %v1191_v62 }
 0x2c4   : > { %v1196_v5 = vpop.f32.mrb[10].mxu1 }
 0x2c5   : > { %v5003_v7 = vpop.f32.mrb[11].mxu1  ;;  %v1303_v33 = vmul.f32 %v1196_v5, %v1196_v5  ;;  %v1318_v30 = vsub.f32 %v6848_v46, %v1196_v5  ;;  %v6893_v46 = vsub.s32 1, %v6818_v49  ;;  %v6896_v5 = vsub.s32 2, %v6818_v49  ;;  %v6914_v49 = vld [vmem:[%s7641_s4 + $0x10] sm:$0xff] }
 0x334   : > { %v1075_v8 = vpop.f32.mrb[8].mxu0 }
 0x335   : > { %v1076_v10 = vadd.f32 %v1075_v8, %v6827_v52  ;;  %v4959_v11 = vpop.f32.mrb[9].mxu0 }
 0x337   : > { %v1089_v12 = vmul.f32 0.7692308, %v1076_v10  ;;  %vm1083_vm6 = vcmp.gt.f32.partialorder %v1076_v10, 0.0 }
 0x338   : > { %v1276_v13 = vpop.f32.mrb[10].mxu0 }
 0x339   : > { %v1098_v15 = vmul.f32 1.442695, %v1089_v12  ;;  %v1305_v17 = vsub.f32 %v1276_v13, %v1300_v9  ;;  %v5041_v18 = vpop.f32.mrb[11].mxu0  ;;  %v1316_v12 = vsub.f32 %v6838_v36, %v1186_v60 }
 0x33b   : > { %5871 = vpow2.f32 %v1098_v15  ;;  %v1310_v19 = vmax.f32 %v1305_v17, 0.0  ;;  %v1317_v15 = vsub.f32 %v6843_v42, %v1191_v62 }
 0x33c   : > { %v1281_v20 = vpop.f32.mrb[12].mxu0 }
 0x33d   : > { %v1320_v24 = vadd.f32 1e-05, %v1310_v19  ;;  %v1306_v25 = vsub.f32 %v1281_v20, %v1301_v14  ;;  %v5044_v26 = vpop.f32.mrb[13].mxu0 }
 0x33f   : > { %5873 = vrsqrt.f32 %v1320_v24  ;;  %v1311_v28 = vmax.f32 %v1306_v25, 0.0 }
 0x340   : > { %v1286_v31 = vpop.f32.mrb[14].mxu0 }
 0x341   : > { %v1321_v34 = vadd.f32 1e-05, %v1311_v28  ;;  %v1307_v52 = vsub.f32 %v1286_v31, %v1302_v21  ;;  %v5047_v37 = vpop.f32.mrb[15].mxu0  ;;  %v1338_v31 = vrot.slane %v6823_v51, %v6893_v46 }
 0x343   : > { %5875 = vrsqrt.f32 %v1321_v34  ;;  %v1312_v39 = vmax.f32 %v1307_v52, 0.0  ;;  %v1347_v34 = vrot.slane %v6823_v51, %v6896_v5  ;;  %v6926_v51 = vld [vmem:[%s7641_s4 + $0x18] sm:$0xff] }
 0x344   : > { %v1291_v40 = vpop.f32.mrb[16].mxu0 }
 0x345   : > { %v5872_v43 = vpop.eup %5871  ;;  %v1322_v45 = vadd.f32 1e-05, %v1312_v39  ;;  %v1308_v54 = vsub.f32 %v1291_v40, %v1303_v33  ;;  %v5050_v55 = vpop.f32.mrb[17].mxu0  ;;  %v6907_v39 = vld [vmem:[%s7641_s4 + $0x8] sm:$0xff] }
 0x346   : > { %v4534_v56 = vadd.f32 -1.0, %v5872_v43  ;;  %v1475_v55 = vld [vmem:[#allocation8] sm:$0xff] }
 0x347   : > { %5877 = vrsqrt.f32 %v1322_v45  ;;  %v1313_v57 = vmax.f32 %v1308_v54, 0.0 }
 0x348   : > { %v1109_v61 = vmul.f32 1.3, %v4534_v56  ;;  %v1476_v56 = vld [vmem:[#allocation8 + $0x8] sm:$0xff] }
 0x349   : > { %v5874_v63 = vpop.eup %5873  ;;  %v1323_v7 = vadd.f32 1e-05, %v1313_v57  ;;  %v1477_v57 = vld [vmem:[#allocation8 + $0x10] sm:$0xff] }
 0x34a   : > { %v1114_v8 = vsel %vm1083_vm6, %v1076_v10, %v1109_v61  ;;  %v6880_v9 = vmul.f32 %v5874_v63, %v1315_v59  ;;  %v6888_v10 = vld [vmem:[%s7641_s4] sm:$0xff]  ;;  %v5534_v59 = vpack.c.bf16 %v1476_v56, %v1475_v55  ;;  %v4540_v55 = vld [vmem:[#allocation10] ss:$0 sm:$0xff] }
 0x34b   : > { %5879 = vrsqrt.f32 %v1323_v7  ;;  %5005 = vmatmul.mubr.f32.gmra.mrb[12].mxu1 %v1114_v8  ;;  %v1209_v11 = vmul.f32 %v1114_v8, %v1114_v8  ;;  %v1478_v61 = vld [vmem:[#allocation8 + $0x18] sm:$0xff] }
 0x34c   : > { %5056 = vmatprep.mubr.msk.f32.mxu1 %vm1353_vm7, %v6888_v10  ;;  %v5538_v63 = vpack.c.bf16 %v1478_v61, %v1477_v57  ;;  %5535 = vmatprep.subr.bf16.mxu0 %v5534_v59 }
 0x34d   : > { %v5876_v13 = vpop.eup %5875  ;;  %5052 = vmatmul.mubr.f32.gmra.mrb[18].mxu0 %v1209_v11 }
 0x34e   : > { %v1331_v14 = vmul.f32 %v5876_v13, %v1316_v12  ;;  %5537 = vmatpush3.bf16.msra.mxu0 %v5534_v59 }
 0x34f   : > { %5539 = vmatprep.subr.bf16.mxu0 %v5538_v63 }
 0x350   : > { %v1340_v7 = vmul.f32 %v1338_v31, %v1331_v14 }
 0x351   : > { %v5878_v17 = vpop.eup %5877 }
 0x352   : > { %v1332_v18 = vmul.f32 %v5878_v17, %v1317_v15  ;;  %5541 = vmatpush3.bf16.msra.mxu0 %v5538_v63  ;;  %v1349_v11 = vadd.f32 %v1347_v34, %v1340_v7 }
 0x353   : > { %5548 = vmatprep.subr.bf16.mxu0 %v6330_v0 }
 0x354   : > { %v1341_v17 = vmul.f32 %v1338_v31, %v1332_v18  ;;  %v1817_v18 = vsel %vm799_vm10, 1, %v6333_v23 }
 0x355   : > { %v5880_v58 = vpop.eup %5879 }
 0x356   : > { %v1333_v19 = vmul.f32 %v5880_v58, %v1318_v30 }
 0x358   : > { %v1342_v15 = vmul.f32 %v1338_v31, %v1333_v19  ;;  %v1820_v19 = vsel %vm802_vm11, 1, %v6333_v23 }
 0x41e   : > { %v1201_v36 = vpop.f32.mrb[12].mxu1 }
 0x41f   : > { %v1304_v60 = vmul.f32 %v1201_v36, %v1201_v36  ;;  %v5006_v20 = vpop.f32.mrb[13].mxu1  ;;  %v1319_v26 = vsub.f32 %v1114_v8, %v1201_v36  ;;  %v1339_v8 = vmul.f32 %v1338_v31, %v6880_v9  ;;  %v1818_v9 = vsel %vm800_vm9, 1, %v6333_v23  ;;  %v1690_v23 = vld [vmem:[%s7574_s10] sm:$0xff] }
 0x420   : > { %v1296_v21 = vpop.f32.mrb[18].mxu0  ;;  %v1350_v20 = vadd.f32 %v1347_v34, %v1341_v17 }
 0x421   : > { %v1309_v42 = vsub.f32 %v1296_v21, %v1304_v60  ;;  %v5053_v62 = vpop.f32.mrb[19].mxu0  ;;  %v1348_v13 = vadd.f32 %v1347_v34, %v1339_v8  ;;  %v1351_v60 = vadd.f32 %v1347_v34, %v1342_v15 }
 0x423   : > { %v1314_v24 = vmax.f32 %v1309_v42, 0.0 }
 0x425   : > { %v1324_v25 = vadd.f32 1e-05, %v1314_v24 }
 0x427   : > { %5881 = vrsqrt.f32 %v1324_v25  ;;  %v1691_v25 = vld [vmem:[%s7574_s10 + $0x8] sm:$0xff] }
 0x431   : > { %v5882_v28 = vpop.eup %5881 }
 0x432   : > { %v1334_v33 = vmul.f32 %v5882_v28, %v1319_v26  ;;  %v5549_v26 = vpack.c.bf16 %v1691_v25, %v1690_v23  ;;  %v1692_v28 = vld [vmem:[%s7574_s10 + $0x10] sm:$0xff] }
 0x434   : > { %v1343_v52 = vmul.f32 %v1338_v31, %v1334_v33  ;;  %v1693_v31 = vld [vmem:[%s7574_s10 + $0x18] sm:$0xff] }
 0x435   : > { %v5552_v33 = vpack.c.bf16 %v1693_v31, %v1692_v28 }
 0x436   : > { %v6902_v37 = vadd.f32 %v1347_v34, %v1343_v52  ;;  %v1694_v34 = vld [vmem:[%s7574_s10 + $0x20] sm:$0xff]  ;;  %v1695_v52 = vld [vmem:[%s7574_s10 + $0x28] sm:$0xff] }
 0x438   : > { %5054 = vmatprep.subr.msk.mxu1 %vm1366_vm8, %v6902_v37 }
 0x439   : > { %5055 = vmatpush3.msk.msra.mxu1 %vm1366_vm8, %v6902_v37 }
 0x43a   : > { %5057 = vmatmul.mubr.msk.f32.vlgmr.msra.gmra.mrb[14].mxu1 %vm1353_vm7, %v6907_v39  ;;  %5542 = vmatprep.subr.bf16.mxu1 %v6330_v0 }
 0x43b   : > { %5059 = vmatprep.mubr.msk.f32.mxu1 %vm1353_vm7, %v6914_v49 }
 0x43e   : > { %5060 = vmatmul.mubr.msk.f32.gmra.mrb[16].mxu1 %vm1353_vm7, %v6926_v51 }
 0x43f   : > { %5084 = vmatprep.mubr.msk.f32.mxu1 %vm6331_vm0, %v6332_v1 }
 0x50d   : > { %v5058_v40 = vpop.f32.mrb[14].mxu1 }
 0x50e   : > { %1461 = vrot.lane.b32.xlu1 %v5058_v40, %s6334_s2  ;;  %v1436_v43 = vpop.f32.mrb[15].mxu1  ;;  %v5555_v40 = vpack.c.bf16 %v1695_v52, %v1694_v34 }
 0x50f   : > { %1459 = vrot.lane.b32.xlu0 %v1436_v43, %s6334_s2  ;;  %v1696_v43 = vld [vmem:[%s7574_s10 + $0x30] sm:$0xff] }
 0x511   : > { %v5061_v45 = vpop.f32.mrb[16].mxu1 }
 0x512   : > { %v1446_v54 = vpop.f32.mrb[17].mxu1 }
 0x513   : > { %1465 = vrot.lane.b32.xlu0 %v5061_v45, %s6334_s2  ;;  %1463 = vrot.lane.b32.xlu1 %v1446_v54, %s6334_s2  ;;  %v1697_v45 = vld [vmem:[%s7574_s10 + $0x38] sm:$0xff] }
 0x514   : > { %v5558_v54 = vpack.c.bf16 %v1697_v45, %v1696_v43 }
 0x580   : > { %v1462_v12 = vpop.permute.xlu1 %1461 }
 0x581   : > { %v1472_v30 = vmul.f32 %v1462_v12, %v1349_v11  ;;  %v1460_v58 = vpop.permute.xlu0 %1459 }
 0x582   : > { %v1471_v36 = vmul.f32 %v1460_v58, %v1348_v13 }
 0x583   : > { %1492 = vrot.lane.b32.xlu0 %v1472_v30, %s6335_s23 }
 0x584   : > { %1490 = vrot.lane.b32.xlu1 %v1471_v36, %s6335_s23 }
 0x585   : > { %v1466_v21 = vpop.permute.xlu0 %1465  ;;  %v1464_v42 = vpop.permute.xlu1 %1463 }
 0x586   : > { %v1474_v14 = vmul.f32 %v1466_v21, %v1351_v60  ;;  %v1473_v62 = vmul.f32 %v1464_v42, %v1350_v20 }
 0x588   : > { %1496 = vrot.lane.b32.xlu0 %v1474_v14, %s6335_s23  ;;  %1494 = vrot.lane.b32.xlu1 %v1473_v62, %s6335_s23 }
 0x58c   : > { %1825 = vperm.xlu0 %5859, %v1818_v9   ;;  %1822 = vperm.xlu1 %5860, %v1817_v18  }
 0x590   : > { %1831 = vperm.xlu0 %5859, %v1820_v19   ;;  %1828 = vperm.xlu1 %5860, %v1819_v3  }
 0x594   : > { %2136 = vrot.lane.b32.xlu0 %v1349_v11, %s6334_s2  ;;  %2134 = vrot.lane.b32.xlu1 %v1348_v13, %s6334_s2 }
 0x598   : > { %2140 = vrot.lane.b32.xlu0 %v1351_v60, %s6334_s2  ;;  %2138 = vrot.lane.b32.xlu1 %v1350_v20, %s6334_s2 }
 0x5f5   : > { %v1493_v2 = vpop.permute.xlu0 %1492 }
 0x5f6   : > { %v1491_v6 = vpop.permute.xlu1 %1490 }
 0x5f7   : > { %5070 = vmatprep.mubr.msk.f32.mxu0 %vm810_vm1, %v1491_v6 }
 0x5f8   : > { %5071 = vmatmul.mubr.msk.f32.vlgmr.msra.gmra.mrb[20].mxu0 %vm810_vm1, %v1493_v2 }
 0x5f9   : > { %5550 = vmatpush3.bf16.msra.mxu0 %v5549_v26 }
 0x5fa   : > { %v1497_v4 = vpop.permute.xlu0 %1496  ;;  %v1495_v24 = vpop.permute.xlu1 %1494  ;;  %5551 = vmatprep.subr.bf16.mxu0 %v6330_v0 }
 0x5fb   : > { %5073 = vmatprep.mubr.msk.f32.mxu0 %vm810_vm1, %v1495_v24 }
 0x5fc   : > { %5074 = vmatmul.mubr.msk.f32.gmra.mrb[22].mxu0 %vm810_vm1, %v1497_v4 }
 0x5fd   : > { %5103 = vmatprep.mubr.msk.f32.mxu0 %vm6331_vm0, %v6332_v1  ;;  %5553 = vmatpush3.bf16.msra.mxu0 %v5552_v33  ;;  %v7009_v33 = vld [vmem:[%s7575_s11] ss:$0 sm:$0xff] }
 0x5fe   : > { %5554 = vmatprep.subr.bf16.mxu0 %v6330_v0 }
 0x601   : > { %5556 = vmatpush3.bf16.msra.mxu0 %v5555_v40 }
 0x602   : > { %5557 = vmatprep.subr.bf16.mxu0 %v6330_v0 }
 0x605   : > { %5559 = vmatpush3.bf16.msra.mxu0 %v5558_v54 }
 0x606   : > { %5572 = vmatprep.subr.bf16.mxu0 %v6330_v0 }
 0x60b   : > { %v7011_v52 = vpop.permute.xlu1 %1822  ;;  %v7015_v45 = vpop.permute.xlu0 %1825 }
 0x60c   : > { %vm1833_vm4 = vcmp.eq.s32.totalorder %v7011_v52, 1  ;;  %vm1834_vm5 = vcmp.eq.s32.totalorder %v7015_v45, 1 }
 0x6cb   : > { %v5072_v56 = vpop.f32.mrb[20].mxu0 }
 0x6cc   : > { %v1578_v57 = vadd.f32 %v5072_v56, %v4540_v55  ;;  %v1572_v59 = vpop.f32.mrb[21].mxu0 }
 0x6cd   : > { %v1573_v61 = vadd.f32 %v4540_v55, %v1572_v59 }
 0x6ce   : > { %v1596_v63 = vmul.f32 0.7692308, %v1578_v57  ;;  %vm1592_vm13 = vcmp.gt.f32.partialorder %v1578_v57, 0.0 }
 0x6cf   : > { %v1595_v7 = vmul.f32 0.7692308, %v1573_v61  ;;  %v5075_v8 = vpop.f32.mrb[22].mxu0  ;;  %vm1591_vm15 = vcmp.gt.f32.partialorder %v1573_v61, 0.0 }
 0x6d0   : > { %v1601_v11 = vmul.f32 1.442695, %v1596_v63  ;;  %v1588_v12 = vadd.f32 %v5075_v8, %v4540_v55  ;;  %v1582_v13 = vpop.f32.mrb[23].mxu0 }
 0x6d1   : > { %v1599_v15 = vmul.f32 1.442695, %v1595_v7  ;;  %v1583_v17 = vadd.f32 %v4540_v55, %v1582_v13 }
 0x6d2   : > { %5883 = vpow2.f32 %v1601_v11  ;;  %v1598_v30 = vmul.f32 0.7692308, %v1588_v12  ;;  %vm1594_vm2 = vcmp.gt.f32.partialorder %v1588_v12, 0.0 }
 0x6d3   : > { %5885 = vpow2.f32 %v1599_v15  ;;  %v1597_v58 = vmul.f32 0.7692308, %v1583_v17  ;;  %vm1593_vm3 = vcmp.gt.f32.partialorder %v1583_v17, 0.0 }
 0x6d4   : > { %v1605_v36 = vmul.f32 1.442695, %v1598_v30 }
 0x6d5   : > { %v1603_v60 = vmul.f32 1.442695, %v1597_v58  ;;  %v7030_v58 = vpop.permute.xlu0 %1831 }
 0x6d6   : > { %5887 = vpow2.f32 %v1605_v36  ;;  %vm1836_vm9 = vcmp.eq.s32.totalorder %v7030_v58, 1 }
 0x6d7   : > { %5889 = vpow2.f32 %v1603_v60 }
 0x6dc   : > { %v5884_v20 = vpop.eup %5883 }
 0x6dd   : > { %v5886_v21 = vpop.eup %5885  ;;  %v4546_v42 = vadd.f32 -1.0, %v5884_v20 }
 0x6de   : > { %v4545_v14 = vadd.f32 -1.0, %v5886_v21 }
 0x6df   : > { %v1612_v62 = vmul.f32 1.3, %v4546_v42 }
 0x6e0   : > { %v5888_v9 = vpop.eup %5887  ;;  %v1611_v18 = vmul.f32 1.3, %v4545_v14 }
 0x6e1   : > { %v5890_v19 = vpop.eup %5889  ;;  %v1616_v3 = vsel %vm1592_vm13, %v1578_v57, %v1612_v62  ;;  %v4548_v2 = vadd.f32 -1.0, %v5888_v9 }
 0x6e2   : > { %v1615_v6 = vsel %vm1591_vm15, %v1573_v61, %v1611_v18  ;;  %v4547_v4 = vadd.f32 -1.0, %v5890_v19  ;;  %v7023_v61 = vpop.permute.xlu1 %1828 }
 0x6e3   : > { %v5543_v24 = vpack.c.bf16 %v1616_v3, %v1615_v6  ;;  %v1614_v23 = vmul.f32 1.3, %v4548_v2  ;;  %5104 = vmatmul.mubr.msk.f32.vlgmr.msra.gmra.mrb[24].mxu0 %vm1705_vm14, %v1615_v6  ;;  %vm1835_vm6 = vcmp.eq.s32.totalorder %v7023_v61, 1 }
 0x6e4   : > { %v1613_v25 = vmul.f32 1.3, %v4547_v4  ;;  %5106 = vmatprep.mubr.msk.f32.mxu0 %vm6331_vm0, %v6332_v1 }
 0x6e5   : > { %v1618_v26 = vsel %vm1594_vm2, %v1588_v12, %v1614_v23  ;;  %5544 = vmatpush3.bf16.msra.mxu1 %v5543_v24 }
 0x6e6   : > { %v1617_v28 = vsel %vm1593_vm3, %v1583_v17, %v1613_v25  ;;  %5545 = vmatprep.subr.bf16.mxu1 %v6330_v0 }
 0x6e7   : > { %v5546_v31 = vpack.c.bf16 %v1618_v26, %v1617_v28  ;;  %5107 = vmatmul.mubr.msk.f32.gmra.mrb[26].mxu0 %vm1705_vm14, %v1616_v3 }
 0x6e8   : > { %5109 = vmatprep.mubr.msk.f32.mxu0 %vm6331_vm0, %v6332_v1 }
 0x6e9   : > { %5547 = vmatpush3.bf16.msra.mxu1 %v5546_v31 }
 0x6ea   : > { %5560 = vmatprep.subr.bf16.mxu1 %v6330_v0 }
 0x6eb   : > { %5110 = vmatmul.mubr.msk.f32.gmra.mrb[28].mxu0 %vm1705_vm14, %v1617_v28 }
 0x6ec   : > { %5085 = vmatmul.mubr.msk.f32.vlgmr.msra.gmra.mrb[18].mxu1 %vm810_vm1, %v6754_v22  ;;  %5112 = vmatprep.mubr.msk.f32.mxu0 %vm6331_vm0, %v6332_v1 }
 0x6ed   : > { %5126 = vmatprep.mubr.msk.f32.mxu1 %vm6331_vm0, %v6332_v1 }
 0x6ef   : > { %5113 = vmatmul.mubr.msk.f32.gmra.mrb[30].mxu0 %vm1705_vm14, %v1618_v26 }
 0x6f0   : > { %5115 = vmatprep.mubr.msk.f32.mxu0 %vm6331_vm0, %v6332_v1 }
 0x7b6   : > { %v1787_v34 = vpop.f32.mrb[24].mxu0 }
 0x7b7   : > { %v1788_v40 = vadd.f32 %v7009_v33, %v1787_v34  ;;  %v5105_v43 = vpop.f32.mrb[25].mxu0 }
 0x7b9   : > { %v1837_v55 = vsel %vm1833_vm4, -1e+09, %v1788_v40 }
 0x7ba   : > { %v1792_v54 = vpop.f32.mrb[26].mxu0  ;;  %v1841_v63 = vsel %vm1353_vm7, %v1837_v55, -inf }
 0x7bb   : > { %v1793_v56 = vadd.f32 %v7009_v33, %v1792_v54  ;;  %v5108_v57 = vpop.f32.mrb[27].mxu0 }
 0x7bd   : > { %v1838_v59 = vsel %vm1834_vm5, -1e+09, %v1793_v56 }
 0x7be   : > { %v1842_v7 = vsel %vm1353_vm7, %v1838_v59, -inf  ;;  %v1797_v8 = vpop.f32.mrb[28].mxu0 }
 0x7bf   : > { %v1845_v11 = vmax.f32 %v1841_v63, %v1842_v7  ;;  %v1798_v12 = vadd.f32 %v7009_v33, %v1797_v8  ;;  %v1685_v13 = vpop.f32.mrb[18].mxu1  ;;  %v5111_v15 = vpop.f32.mrb[29].mxu0 }
 0x7c0   : > { %v1689_v17 = vmul.f32 %v1685_v13, %v6853_v48  ;;  %v5086_v30 = vpop.f32.mrb[19].mxu1 }
 0x7c1   : > { %v1839_v60 = vsel %vm1835_vm6, -1e+09, %v1798_v12 }
 0x7c2   : > { %v1802_v36 = vpop.f32.mrb[30].mxu0  ;;  %5116 = vmatmul.mubr.msk.f32.gmra.mrb[32].mxu0 %vm1705_vm14, %v1689_v17  ;;  %v1843_v14 = vsel %vm1353_vm7, %v1839_v60, -inf }
 0x7c3   : > { %v1803_v20 = vadd.f32 %v7009_v33, %v1802_v36  ;;  %v5114_v21 = vpop.f32.mrb[31].mxu0  ;;  %5164 = vmatprep.mubr.msk.f32.mxu0 %vm6331_vm0, %v6332_v1 }
 0x7c5   : > { %v1840_v42 = vsel %vm1836_vm9, -1e+09, %v1803_v20 }
 0x7c6   : > { %v1844_v62 = vsel %vm1353_vm7, %v1840_v42, -inf }
 0x7c7   : > { %v1846_v9 = vmax.f32 %v1843_v14, %v1844_v62 }
 0x7c9   : > { %v1847_v18 = vmax.f32 %v1845_v11, %v1846_v9 }
 0x7cb   : > { %v1848_v19 = vrot.slane %v1847_v18, 4 }
 0x7cd   : > { %v1849_v3 = vmax.f32 %v1847_v18, %v1848_v19 }
 0x7cf   : > { %v1850_v2 = vrot.slane %v1849_v3, 2 }
 0x7d1   : > { %v1851_v6 = vmax.f32 %v1849_v3, %v1850_v2  ;;  %v2137_v3 = vpop.permute.xlu0 %2136  ;;  %v2135_v2 = vpop.permute.xlu1 %2134 }
 0x7d3   : > { %v1852_v4 = vrot.slane %v1851_v6, 1 }
 0x7d5   : > { %v1853_v24 = vmax.f32 %v1851_v6, %v1852_v4 }
 0x7d7   : > { %v1857_v23 = vsub.f32 %v1840_v42, %v1853_v24  ;;  %v1854_v25 = vsub.f32 %v1837_v55, %v1853_v24  ;;  %v1855_v26 = vsub.f32 %v1838_v59, %v1853_v24  ;;  %v1856_v28 = vsub.f32 %v1839_v60, %v1853_v24 }
 0x7d9   : > { %v1858_v31 = vmul.f32 1.442695, %v1854_v25  ;;  %v1860_v34 = vmul.f32 1.442695, %v1855_v26  ;;  %v1864_v40 = vmul.f32 1.442695, %v1857_v23  ;;  %v2141_v25 = vpop.permute.xlu0 %2140 }
 0x7da   : > { %v1862_v43 = vmul.f32 1.442695, %v1856_v28 }
 0x7db   : > { %5891 = vpow2.f32 %v1858_v31  ;;  %v2139_v31 = vpop.permute.xlu1 %2138 }
 0x7dc   : > { %5893 = vpow2.f32 %v1860_v34 }
 0x7dd   : > { %5895 = vpow2.f32 %v1864_v40 }
 0x7de   : > { %5897 = vpow2.f32 %v1862_v43 }
 0x7e5   : > { %v5892_v54 = vpop.eup %5891 }
 0x7e6   : > { %v5894_v56 = vpop.eup %5893 }
 0x7e7   : > { %v5896_v57 = vpop.eup %5895  ;;  %v5561_v63 = vpack.c.bf16 %v5894_v56, %v5892_v54 }
 0x7e8   : > { %v5898_v7 = vpop.eup %5897 }
 0x7e9   : > { %5562 = vmatpush3.bf16.msra.mxu1 %v5561_v63  ;;  %v5564_v8 = vpack.c.bf16 %v5896_v57, %v5898_v7  ;;  %v2232_v63 = vld [vmem:[#allocation11 + $0x8] sm:$0xff] }
 0x7ea   : > { %5563 = vmatprep.subr.bf16.mxu1 %v6330_v0 }
 0x7ed   : > { %5565 = vmatpush3.bf16.msra.mxu1 %v5564_v8 }
 0x7f0   : > { %5127 = vmatmul.mubr.msk.f32.vlgmr.msra.gmra.mrb[20].mxu1 %vm810_vm1, %v6736_v16 }
 0x7f1   : > { %5131 = vmatprep.mubr.msk.f32.mxu1 %vm1353_vm7, %v6888_v10 }
 0x895   : > { %v1807_v55 = vpop.f32.mrb[32].mxu0 }
 0x896   : > { %v1808_v59 = vadd.f32 %v7009_v33, %v1807_v55  ;;  %v5117_v11 = vpop.f32.mrb[33].mxu0  ;;  %v798_v33 = vld [vmem:[%s7579_s15] sm:$0xf] }
 0x897   : > { %v2234_v55 = vld [vmem:[#allocation11 + $0x18] sm:$0xff] }
 0x898   : > { %v4556_v12 = vmul.f32 -1.442695, %v1808_v59 }
 0x89a   : > { %5899 = vpow2.f32 %v4556_v12 }
 0x8a4   : > { %v5900_v13 = vpop.eup %5899 }
 0x8a5   : > { %v1814_v15 = vadd.f32 1.0, %v5900_v13 }
 0x8a7   : > { %5901 = vrcp.f32 %v1814_v15 }
 0x8b1   : > { %v5902_v17 = vpop.eup %5901 }
 0x8b2   : > { %2226 = vrot.lane.b32.xlu0 %v5902_v17, %s6336_s24 }
 0x8c3   : > { %v1932_v30 = vpop.f32.mrb[20].mxu1 }
 0x8c4   : > { %v1936_v36 = vmax.f32 %v1932_v30, 1e-20  ;;  %v5128_v60 = vpop.f32.mrb[21].mxu1 }
 0x8c5   : > { %v2311_v60 = vld [vmem:[#allocation13 + $0x8] sm:$0xff] }
 0x8c6   : > { %5903 = vrcp.f32 %v1936_v36  ;;  %v2310_v36 = vld [vmem:[#allocation13] sm:$0xff] }
 0x8d0   : > { %v5904_v16 = vpop.eup %5903 }
 0x8d1   : > { %5129 = vmatprep.subr.msk.mxu1 %vm1366_vm8, %v5904_v16 }
 0x8d2   : > { %5130 = vmatpush3.msk.msra.mxu1 %vm1366_vm8, %v5904_v16  ;;  %v2312_v16 = vld [vmem:[#allocation13 + $0x10] sm:$0xff] }
 0x8d3   : > { %5132 = vmatmul.mubr.msk.f32.vlgmr.msra.gmra.mrb[22].mxu1 %vm1353_vm7, %v6907_v39  ;;  %5137 = vmatprep.subr.msk.mxu1 %vm1366_vm8, %v798_v33 }
 0x8d4   : > { %5134 = vmatprep.mubr.msk.f32.mxu1 %vm1353_vm7, %v6914_v49  ;;  %5138 = vmatpush3.msk.msra.mxu1 %vm1366_vm8, %v798_v33  ;;  %v2313_v33 = vld [vmem:[#allocation13 + $0x18] sm:$0xff] }
 0x8d5   : > { %5566 = vmatprep.subr.bf16.mxu1 %v6330_v0 }
 0x8d7   : > { %5135 = vmatmul.mubr.msk.f32.gmra.mrb[24].mxu1 %vm1353_vm7, %v6926_v51 }
 0x924   : > { %v2227_v15 = vpop.permute.xlu0 %2226 }
 0x9a6   : > { %v5133_v20 = vpop.f32.mrb[22].mxu1 }
 0x9a7   : > { %v2007_v21 = vpop.f32.mrb[23].mxu1  ;;  %v2027_v14 = vmul.f32 %v5894_v56, %v5133_v20  ;;  %v5965_v56 = vld [vmem:[%s7639_s26] sm:$0xf] }
 0x9a8   : > { %v2026_v42 = vmul.f32 %v5892_v54, %v2007_v21 }
 0x9aa   : > { %v5136_v62 = vpop.f32.mrb[24].mxu1  ;;  %5139 = vmatprep.mubr.msk.f32.mxu1 %vm1353_vm7, %v2026_v42  ;;  %v5582_v42 = vpack.c.bf16 %v2313_v33, %v2312_v16 }
 0x9ab   : > { %v2017_v9 = vpop.f32.mrb[25].mxu1  ;;  %5140 = vmatmul.mubr.msk.f32.vlgmr.msra.gmra.mrb[26].mxu1 %vm1353_vm7, %v2027_v14  ;;  %v2029_v19 = vmul.f32 %v5896_v57, %v5136_v62  ;;  %v2231_v57 = vld [vmem:[#allocation11] sm:$0xff]  ;;  %v5966_v14 = vld [vmem:[%s6726_s19] sm:$0xff] }
 0x9ac   : > { %v2028_v18 = vmul.f32 %v5898_v7, %v2017_v9  ;;  %v2233_v7 = vld [vmem:[#allocation11 + $0x10] sm:$0xff]  ;;  %v5573_v8 = vpack.c.bf16 %v2232_v63, %v2231_v57  ;;  %v5967_v62 = vld [vmem:[%s6726_s19 + $0x8] sm:$0xff] }
 0x9ad   : > { %v5576_v59 = vpack.c.bf16 %v2234_v55, %v2233_v7 }
 0x9ae   : > { %5142 = vmatprep.mubr.msk.f32.mxu1 %vm1353_vm7, %v2028_v18  ;;  %5574 = vmatpush3.bf16.msra.mxu0 %v5573_v8 }
 0x9af   : > { %5143 = vmatmul.mubr.msk.f32.gmra.mrb[28].mxu1 %vm1353_vm7, %v2029_v19  ;;  %5575 = vmatprep.subr.bf16.mxu0 %v6330_v0 }
 0x9b0   : > { %5153 = vmatprep.mubr.msk.f32.mxu1 %vm6331_vm0, %v6332_v1 }
 0x9b2   : > { %5577 = vmatpush3.bf16.msra.mxu0 %v5576_v59 }
 0x9b3   : > { %5586 = vmatprep.subr.bf16.mxu0 %v6330_v0 }
 0xa7e   : > { %v5141_v6 = vpop.f32.mrb[26].mxu1 }
 0xa7f   : > { %v2147_v4 = vmul.f32 %v5141_v6, %v2137_v3  ;;  %v2111_v24 = vpop.f32.mrb[27].mxu1 }
 0xa80   : > { %v2146_v23 = vmul.f32 %v2135_v2, %v2111_v24 }
 0xa82   : > { %v5567_v26 = vpack.c.bf16 %v2147_v4, %v2146_v23  ;;  %v5144_v28 = vpop.f32.mrb[28].mxu1 }
 0xa83   : > { %v2149_v34 = vmul.f32 %v5144_v28, %v2141_v25  ;;  %v2121_v40 = vpop.f32.mrb[29].mxu1 }
 0xa84   : > { %v2148_v43 = vmul.f32 %v2139_v31, %v2121_v40  ;;  %5568 = vmatpush3.bf16.msra.mxu1 %v5567_v26 }
 0xa85   : > { %5569 = vmatprep.subr.bf16.mxu1 %v6330_v0 }
 0xa86   : > { %v5570_v54 = vpack.c.bf16 %v2149_v34, %v2148_v43 }
 0xa88   : > { %5571 = vmatpush3.bf16.msra.mxu1 %v5570_v54 }
 0xa8b   : > { %5154 = vmatmul.mubr.msk.f32.vlgmr.msra.gmra.mrb[30].mxu1 %vm810_vm1, %v5965_v56 }
 0xa8c   : > { %5169 = vmatprep.mubr.msk.f32.mxu1 %vm1353_vm7, %v6888_v10 }
 0xb5e   : > { %v2216_v11 = vpop.f32.mrb[30].mxu1 }
 0xb5f   : > { %2221 = vrot.lane.b32.xlu1 %v2216_v11, %s6337_s21  ;;  %v5155_v12 = vpop.f32.mrb[31].mxu1 }
 0xbd1   : > { %v2222_v13 = vpop.permute.xlu1 %2221 }
 0xbd2   : > { %v2224_v10 = vmul.f32 %v2222_v13, %v6902_v37  ;;  %v5578_v37 = vpack.c.bf16 %v2311_v60, %v2310_v36 }
 0xbd4   : > { %v7081_v17 = vmul.f32 %v2227_v15, %v2224_v10 }
 0xbd6   : > { %2236 = vrot.lane.b32.xlu1 %v7081_v17, %s6337_s21 }
 0xc48   : > { %v7085_v30 = vpop.permute.xlu1 %2236 }
 0xc49   : > { %5165 = vmatmul.mubr.msk.f32.vlgmr.msra.gmra.mrb[34].mxu0 %vm810_vm1, %v7085_v30 }
 0xc4a   : > { %5197 = vmatprep.mubr.msk.f32.mxu0 %vm6331_vm0, %v6332_v1 }
 0xd1c   : > { %v2306_v20 = vpop.f32.mrb[34].mxu0 }
 0xd1d   : > { %v5166_v21 = vpop.f32.mrb[35].mxu0  ;;  %5167 = vmatprep.subr.msk.mxu1 %vm1366_vm8, %v2306_v20 }
 0xd1e   : > { %5168 = vmatpush3.msk.msra.mxu1 %vm1366_vm8, %v2306_v20 }
 0xd1f   : > { %5170 = vmatmul.mubr.msk.f32.vlgmr.msra.gmra.mrb[32].mxu1 %vm1353_vm7, %v6907_v39  ;;  %5579 = vmatprep.subr.bf16.mxu1 %v5578_v37  ;;  %v5968_v39 = vld [vmem:[%s6726_s19 + $0x10] sm:$0xff] }
 0xd20   : > { %5581 = vmatpush3.bf16.msra.mxu1 %v5578_v37  ;;  %5172 = vmatprep.mubr.msk.f32.mxu1 %vm1353_vm7, %v6914_v49  ;;  %v5969_v49 = vld [vmem:[%s6726_s19 + $0x18] sm:$0xff]  ;;  %s4651_s19 = sshll.u32 %s6463_s1, 9 }
 0xd21   : > { %5583 = vmatprep.subr.bf16.mxu1 %v5582_v42  ;;  %s7482_s0 = scalar_lea.hbm %s7645_s20, %s4651_s19  ;;  %s7648_s19 = sld [smem:[#allocation42_spill]] }
 0xd23   : > { %5173 = vmatmul.mubr.msk.f32.gmra.mrb[34].mxu1 %vm1353_vm7, %v6926_v51  ;;  %v7128_v51 = vld [vmem:[%s7642_s17] sm:$0x7] }
 0xd24   : > { %5585 = vmatpush3.bf16.msra.mxu1 %v5582_v42  ;;  %5183 = vmatprep.mubr.msk.f32.mxu1 %vm810_vm1, %v5966_v14  ;;  %v2490_v9 = vrot.slane %v7128_v51, %v6821_v50 }
 0xd25   : > { %5592 = vmatprep.subr.bf16.mxu1 %v6330_v0 }
 0xd27   : > { %5184 = vmatmul.mubr.msk.f32.vlgmr.msra.gmra.mrb[32].mxu1 %vm810_vm1, %v5967_v62 }
 0xd28   : > { %5186 = vmatprep.mubr.msk.f32.mxu1 %vm810_vm1, %v5968_v39  ;;  %5594 = vmatpush3.bf16.msra.mxu1 %v6772_v27 }
 0xd29   : > { %5595 = vmatprep.subr.bf16.mxu1 %v6330_v0 }
 0xd2b   : > { %5187 = vmatmul.mubr.msk.f32.gmra.mrb[34].mxu1 %vm810_vm1, %v5969_v49 }
 0xd2c   : > { %5597 = vmatpush3.bf16.msra.mxu1 %v6775_v29  ;;  %5244 = vmatprep.mubr.msk.f32.mxu1 %vm6331_vm0, %v6332_v1 }
 0xd2d   : > { %5598 = vmatprep.subr.bf16.mxu1 %v6330_v0 }
 0xd30   : > { %5600 = vmatpush3.bf16.msra.mxu1 %v6781_v32 }
 0xd31   : > { %5601 = vmatprep.subr.bf16.mxu1 %v6330_v0 }
 0xd34   : > { %5603 = vmatpush3.bf16.msra.mxu1 %v6787_v35 }
 0xd35   : > { %5604 = vmatprep.subr.bf16.mxu1 %v6330_v0 }
 0xd38   : > { %5606 = vmatpush3.bf16.msra.mxu1 %v6793_v38 }
 0xd39   : > { %5607 = vmatprep.subr.bf16.mxu1 %v6330_v0 }
 0xd3c   : > { %5609 = vmatpush3.bf16.msra.mxu1 %v6799_v41 }
 0xd3d   : > { %5610 = vmatprep.subr.bf16.mxu1 %v6330_v0 }
 0xd40   : > { %5612 = vmatpush3.bf16.msra.mxu1 %v6805_v44 }
 0xd41   : > { %5613 = vmatprep.subr.bf16.mxu1 %v6330_v0 }
 0xd44   : > { %5615 = vmatpush3.bf16.msra.mxu1 %v6811_v47 }
 0xdfa   : > { %v5185_v18 = vpop.f32.mrb[32].mxu1 }
 0xdfb   : > { %v2492_v19 = vadd.f32 %v5185_v18, %v2490_v9  ;;  %v2468_v3 = vpop.f32.mrb[33].mxu1  ;;  %v2576_v18 = vld [vmem:[#allocation2 + $0x28] sm:$0xff] }
 0xdfc   : > { %v2491_v2 = vadd.f32 %v2490_v9, %v2468_v3  ;;  %v2577_v3 = vld [vmem:[#allocation2 + $0x30] sm:$0xff] }
 0xdfd   : > { %v2496_v6 = vmax.f32 %v2492_v19, 0.0 }
 0xdfe   : > { %v2495_v4 = vmax.f32 %v2491_v2, 0.0  ;;  %v5188_v24 = vpop.f32.mrb[34].mxu1  ;;  %v2578_v2 = vld [vmem:[#allocation2 + $0x38] sm:$0xff] }
 0xdff   : > { %v2494_v23 = vadd.f32 %v5188_v24, %v2490_v9  ;;  %v2478_v25 = vpop.f32.mrb[35].mxu1  ;;  %v2500_v26 = vadd.f32 %v5967_v62, %v2496_v6  ;;  %v5590_v6 = vpack.c.bf16 %v2578_v2, %v2577_v3 }
 0xe00   : > { %v2493_v28 = vadd.f32 %v2490_v9, %v2478_v25  ;;  %v2499_v31 = vadd.f32 %v5966_v14, %v2495_v4  ;;  %v2575_v9 = vld [vmem:[#allocation2 + $0x20] sm:$0xff] }
 0xe01   : > { %v2506_v34 = vsel %vm810_vm1, %v2500_v26, 0.0  ;;  %v2498_v40 = vmax.f32 %v2494_v23, 0.0  ;;  %v5587_v19 = vpack.c.bf16 %v2576_v18, %v2575_v9 }
 0xe02   : > { %v2497_v43 = vmax.f32 %v2493_v28, 0.0  ;;  %2507 = vadd.xlane.f32.xlu1 %v2506_v34  ;;  %v2503_v54 = vsel %vm810_vm1, %v2499_v31, 0.0 }
 0xe03   : > { %2504 = vadd.xlane.f32.xlu0 %v2503_v54  ;;  %v2502_v63 = vadd.f32 %v5969_v49, %v2498_v40  ;;  %5588 = vmatpush3.bf16.msra.mxu0 %v5587_v19 }
 0xe04   : > { %v2501_v56 = vadd.f32 %v5968_v39, %v2497_v43  ;;  %5589 = vmatprep.subr.bf16.mxu0 %v6330_v0 }
 0xe05   : > { %v2512_v7 = vsel %vm810_vm1, %v2502_v63, 0.0 }
 0xe06   : > { %v2509_v57 = vsel %vm810_vm1, %v2501_v56, 0.0 }
 0xe07   : > { %2510 = vadd.xlane.f32.xlu0 %v2509_v57  ;;  %5591 = vmatpush3.bf16.msra.mxu0 %v5590_v6 }
 0xe08   : > { %5616 = vmatprep.subr.bf16.mxu0 %v6330_v0 }
 0xe0b   : > { %2513 = vadd.xlane.f32.xlu0 %v2512_v7 }
 0xe8f   : > { %v2508_v8 = vpop.xlane.xlu1 %2507 }
 0xe90   : > { %v2517_v55 = vmul.f32 0.03125, %v2508_v8  ;;  %v2505_v59 = vpop.xlane.xlu0 %2504  ;;  %v2567_v8 = vrot.slane %v7128_v51, %v6896_v5 }
 0xe91   : > { %v2516_v11 = vmul.f32 0.03125, %v2505_v59 }
 0xe92   : > { %v2521_v12 = vsub.f32 %v2500_v26, %v2517_v55 }
 0xe93   : > { %v2520_v13 = vsub.f32 %v2499_v31, %v2516_v11 }
 0xe94   : > { %v2511_v10 = vpop.xlane.xlu0 %2510  ;;  %v2525_v15 = vmul.f32 %v2521_v12, %v2521_v12 }
 0xe95   : > { %v2518_v36 = vmul.f32 0.03125, %v2511_v10  ;;  %v2524_v60 = vmul.f32 %v2520_v13, %v2520_v13 }
 0xe96   : > { %v2531_v16 = vsel %vm810_vm1, %v2525_v15, 0.0 }
 0xe97   : > { %v2522_v33 = vsub.f32 %v2501_v56, %v2518_v36  ;;  %2532 = vadd.xlane.f32.xlu0 %v2531_v16  ;;  %v2528_v37 = vsel %vm810_vm1, %v2524_v60, 0.0 }
 0xe98   : > { %2529 = vadd.xlane.f32.xlu1 %v2528_v37  ;;  %v2514_v20 = vpop.xlane.xlu0 %2513 }
 0xe99   : > { %v2519_v21 = vmul.f32 0.03125, %v2514_v20  ;;  %v2526_v42 = vmul.f32 %v2522_v33, %v2522_v33 }
 0xe9b   : > { %v2523_v14 = vsub.f32 %v2502_v63, %v2519_v21  ;;  %v2534_v62 = vsel %vm810_vm1, %v2526_v42, 0.0  ;;  %v2559_v63 = vrot.slane %v7128_v51, %v6893_v46 }
 0xe9c   : > { %2535 = vadd.xlane.f32.xlu1 %v2534_v62 }
 0xe9d   : > { %v2527_v39 = vmul.f32 %v2523_v14, %v2523_v14 }
 0xe9f   : > { %v2537_v49 = vsel %vm810_vm1, %v2527_v39, 0.0 }
 0xea0   : > { %2538 = vadd.xlane.f32.xlu0 %v2537_v49 }
 0xf24   : > { %v2533_v4 = vpop.xlane.xlu0 %2532 }
 0xf25   : > { %v2541_v24 = vmul.f32 0.03125, %v2533_v4  ;;  %v2530_v23 = vpop.xlane.xlu1 %2529 }
 0xf26   : > { %v2540_v25 = vmul.f32 0.03125, %v2530_v23 }
 0xf27   : > { %v2545_v26 = vadd.f32 1e-05, %v2541_v24 }
 0xf28   : > { %v2544_v28 = vadd.f32 1e-05, %v2540_v25 }
 0xf29   : > { %5905 = vrsqrt.f32 %v2545_v26  ;;  %v2536_v31 = vpop.xlane.xlu1 %2535 }
 0xf2a   : > { %5907 = vrsqrt.f32 %v2544_v28  ;;  %v2542_v34 = vmul.f32 0.03125, %v2536_v31 }
 0xf2c   : > { %v2546_v40 = vadd.f32 1e-05, %v2542_v34 }
 0xf2d   : > { %v2539_v43 = vpop.xlane.xlu0 %2538 }
 0xf2e   : > { %5909 = vrsqrt.f32 %v2546_v40  ;;  %v2543_v54 = vmul.f32 0.03125, %v2539_v43 }
 0xf30   : > { %v2547_v56 = vadd.f32 1e-05, %v2543_v54 }
 0xf32   : > { %5911 = vrsqrt.f32 %v2547_v56 }
 0xf33   : > { %v5906_v57 = vpop.eup %5905 }
 0xf34   : > { %v5908_v7 = vpop.eup %5907  ;;  %v2553_v59 = vmul.f32 %v5906_v57, %v2521_v12 }
 0xf35   : > { %v2552_v55 = vmul.f32 %v5908_v7, %v2520_v13 }
 0xf36   : > { %v2561_v36 = vmul.f32 %v2559_v63, %v2553_v59 }
 0xf37   : > { %v2560_v11 = vmul.f32 %v2559_v63, %v2552_v55 }
 0xf38   : > { %v5910_v10 = vpop.eup %5909  ;;  %v7153_v37 = vadd.f32 %v2567_v8, %v2561_v36 }
 0xf39   : > { %v7146_v15 = vadd.f32 %v2567_v8, %v2560_v11  ;;  %v2554_v60 = vmul.f32 %v5910_v10, %v2522_v33 }
 0xf3b   : > { %5198 = vmatmul.mubr.msk.f32.vlgmr.msra.gmra.mrb[36].mxu0 %vm810_vm1, %v7146_v15  ;;  %v2562_v51 = vmul.f32 %v2559_v63, %v2554_v60 }
 0xf3c   : > { %v5912_v16 = vpop.eup %5911  ;;  %5200 = vmatprep.mubr.msk.f32.mxu0 %vm6331_vm0, %v6332_v1  ;;  %5618 = vmatpush3.bf16.msra.mxu0 %v6772_v27 }
 0xf3d   : > { %v2555_v13 = vmul.f32 %v5912_v16, %v2523_v14  ;;  %5619 = vmatprep.subr.bf16.mxu0 %v6330_v0  ;;  %v7161_v12 = vadd.f32 %v2567_v8, %v2562_v51 }
 0xf3f   : > { %5201 = vmatmul.mubr.msk.f32.gmra.mrb[38].mxu0 %vm810_vm1, %v7153_v37  ;;  %v2563_v33 = vmul.f32 %v2559_v63, %v2555_v13 }
 0xf40   : > { %5203 = vmatprep.mubr.msk.f32.mxu0 %vm6331_vm0, %v6332_v1  ;;  %5621 = vmatpush3.bf16.msra.mxu0 %v6775_v29  ;;  %v7189_v29 = vld [vmem:[#allocation5 + $0x4] sm:$0x7] }
 0xf41   : > { %5622 = vmatprep.subr.bf16.mxu0 %v6330_v0  ;;  %v7169_v27 = vadd.f32 %v2567_v8, %v2563_v33 }
 0xf43   : > { %5204 = vmatmul.mubr.msk.f32.gmra.mrb[40].mxu0 %vm810_vm1, %v7161_v12 }
 0xf44   : > { %5206 = vmatprep.mubr.msk.f32.mxu0 %vm6331_vm0, %v6332_v1  ;;  %5624 = vmatpush3.bf16.msra.mxu0 %v6781_v32  ;;  %v2582_v32 = vrot.slane %v7189_v29, %v6821_v50 }
 0xf45   : > { %5625 = vmatprep.subr.bf16.mxu0 %v6330_v0 }
 0xf47   : > { %5207 = vmatmul.mubr.msk.f32.gmra.mrb[42].mxu0 %vm810_vm1, %v7169_v27 }
 0xf48   : > { %5209 = vmatprep.mubr.msk.f32.mxu0 %vm6331_vm0, %v6332_v1  ;;  %5627 = vmatpush3.bf16.msra.mxu0 %v6787_v35 }
 0xf49   : > { %5628 = vmatprep.subr.bf16.mxu0 %v6330_v0 }
 0xf4b   : > { %5210 = vmatmul.mubr.msk.f32.gmra.mrb[44].mxu0 %vm810_vm1, %v7085_v30 }
 0xf4c   : > { %5630 = vmatpush3.bf16.msra.mxu0 %v6793_v38  ;;  %5291 = vmatprep.mubr.msk.f32.mxu0 %vm6331_vm0, %v6332_v1 }
 0xf4d   : > { %5631 = vmatprep.subr.bf16.mxu0 %v6330_v0 }
 0xf50   : > { %5633 = vmatpush3.bf16.msra.mxu0 %v6799_v41 }
 0xf51   : > { %5634 = vmatprep.subr.bf16.mxu0 %v6330_v0 }
 0xf54   : > { %5636 = vmatpush3.bf16.msra.mxu0 %v6805_v44 }
 0xf55   : > { %5637 = vmatprep.subr.bf16.mxu0 %v6330_v0 }
 0xf58   : > { %5639 = vmatpush3.bf16.msra.mxu0 %v6811_v47 }
0x100e   : > { %v2661_v35 = vpop.f32.mrb[36].mxu0 }
0x100f   : > { %v2662_v38 = vadd.f32 %v2661_v35, %v2582_v32  ;;  %v5199_v30 = vpop.f32.mrb[37].mxu0 }
0x1011   : > { %v2690_v20 = vmul.f32 0.7692308, %v2662_v38  ;;  %vm2685_vm10 = vcmp.gt.f32.partialorder %v2662_v38, 0.0 }
0x1012   : > { %v2666_v21 = vpop.f32.mrb[38].mxu0 }
0x1013   : > { %v2695_v42 = vmul.f32 1.442695, %v2690_v20  ;;  %v2667_v41 = vadd.f32 %v2666_v21, %v2582_v32  ;;  %v5202_v14 = vpop.f32.mrb[39].mxu0  ;;  %v7237_v21 = vld [vmem:[%s7641_s4] sm:$0xff] }
0x1015   : > { %5913 = vpow2.f32 %v2695_v42  ;;  %v2691_v62 = vmul.f32 0.7692308, %v2667_v41  ;;  %vm2686_vm11 = vcmp.gt.f32.partialorder %v2667_v41, 0.0 }
0x1016   : > { %v2671_v44 = vpop.f32.mrb[40].mxu0 }
0x1017   : > { %v2697_v39 = vmul.f32 1.442695, %v2691_v62  ;;  %v2672_v49 = vadd.f32 %v2671_v44, %v2582_v32  ;;  %v5205_v9 = vpop.f32.mrb[41].mxu0 }
0x1019   : > { %5915 = vpow2.f32 %v2697_v39  ;;  %v2692_v47 = vmul.f32 0.7692308, %v2672_v49  ;;  %vm2687_vm12 = vcmp.gt.f32.partialorder %v2672_v49, 0.0 }
0x101a   : > { %v2676_v18 = vpop.f32.mrb[42].mxu0 }
0x101b   : > { %v2699_v19 = vmul.f32 1.442695, %v2692_v47  ;;  %v2677_v3 = vadd.f32 %v2676_v18, %v2582_v32  ;;  %v5208_v2 = vpop.f32.mrb[43].mxu0 }
0x101d   : > { %5917 = vpow2.f32 %v2699_v19  ;;  %v2693_v6 = vmul.f32 0.7692308, %v2677_v3  ;;  %vm2688_vm13 = vcmp.gt.f32.partialorder %v2677_v3, 0.0 }
0x101e   : > { %v2681_v4 = vpop.f32.mrb[44].mxu0 }
0x101f   : > { %v5914_v24 = vpop.eup %5913  ;;  %v2701_v23 = vmul.f32 1.442695, %v2693_v6  ;;  %v2682_v25 = vadd.f32 %v2681_v4, %v2582_v32  ;;  %v5211_v26 = vpop.f32.mrb[45].mxu0 }
0x1020   : > { %v4584_v28 = vadd.f32 -1.0, %v5914_v24 }
0x1021   : > { %5919 = vpow2.f32 %v2701_v23  ;;  %v2694_v31 = vmul.f32 0.7692308, %v2682_v25  ;;  %vm2689_vm15 = vcmp.gt.f32.partialorder %v2682_v25, 0.0 }
0x1022   : > { %v2710_v34 = vmul.f32 1.3, %v4584_v28 }
0x1023   : > { %v5916_v40 = vpop.eup %5915  ;;  %v2703_v43 = vmul.f32 1.442695, %v2694_v31 }
0x1024   : > { %v7193_v54 = vsel %vm2685_vm10, %v2662_v38, %v2710_v34  ;;  %v4585_v56 = vadd.f32 -1.0, %v5916_v40 }
0x1025   : > { %v2810_v57 = vmul.f32 %v7193_v54, %v7193_v54  ;;  %5921 = vpow2.f32 %v2703_v43  ;;  %5245 = vmatmul.mubr.f32.vlgmr.msra.gmra.mrb[36].mxu1 %v7193_v54 }
0x1026   : > { %5247 = vmatprep.mubr.msk.f32.mxu1 %vm6331_vm0, %v6332_v1  ;;  %v2711_v63 = vmul.f32 1.3, %v4585_v56 }
0x1027   : > { %v5918_v7 = vpop.eup %5917  ;;  %5292 = vmatmul.mubr.f32.vlgmr.msra.gmra.mrb[46].mxu0 %v2810_v57 }
0x1028   : > { %v7200_v8 = vsel %vm2686_vm11, %v2667_v41, %v2711_v63  ;;  %5294 = vmatprep.mubr.msk.f32.mxu0 %vm6331_vm0, %v6332_v1  ;;  %v4586_v55 = vadd.f32 -1.0, %v5918_v7 }
0x1029   : > { %5248 = vmatmul.mubr.f32.gmra.mrb[38].mxu1 %v7200_v8  ;;  %v2811_v59 = vmul.f32 %v7200_v8, %v7200_v8 }
0x102a   : > { %5250 = vmatprep.mubr.msk.f32.mxu1 %vm6331_vm0, %v6332_v1  ;;  %v2712_v11 = vmul.f32 1.3, %v4586_v55 }
0x102b   : > { %v5920_v10 = vpop.eup %5919  ;;  %5295 = vmatmul.mubr.f32.gmra.mrb[48].mxu0 %v2811_v59 }
0x102c   : > { %v7209_v36 = vsel %vm2687_vm12, %v2672_v49, %v2712_v11  ;;  %5297 = vmatprep.mubr.msk.f32.mxu0 %vm6331_vm0, %v6332_v1  ;;  %v4587_v60 = vadd.f32 -1.0, %v5920_v10 }
0x102d   : > { %5251 = vmatmul.mubr.f32.gmra.mrb[40].mxu1 %v7209_v36  ;;  %v2812_v16 = vmul.f32 %v7209_v36, %v7209_v36 }
0x102e   : > { %5253 = vmatprep.mubr.msk.f32.mxu1 %vm6331_vm0, %v6332_v1  ;;  %v2713_v51 = vmul.f32 1.3, %v4587_v60 }
0x102f   : > { %v5922_v13 = vpop.eup %5921  ;;  %5298 = vmatmul.mubr.f32.gmra.mrb[50].mxu0 %v2812_v16 }
0x1030   : > { %v7218_v33 = vsel %vm2688_vm13, %v2677_v3, %v2713_v51  ;;  %5300 = vmatprep.mubr.msk.f32.mxu0 %vm6331_vm0, %v6332_v1  ;;  %v4588_v32 = vadd.f32 -1.0, %v5922_v13  ;;  %v2943_v51 = vrot.slane %v7189_v29, %v6893_v46 }
0x1031   : > { %5254 = vmatmul.mubr.f32.gmra.mrb[42].mxu1 %v7218_v33  ;;  %v2813_v35 = vmul.f32 %v7218_v33, %v7218_v33 }
0x1032   : > { %5256 = vmatprep.mubr.msk.f32.mxu1 %vm6331_vm0, %v6332_v1  ;;  %v2714_v38 = vmul.f32 1.3, %v4588_v32 }
0x1033   : > { %5301 = vmatmul.mubr.f32.gmra.mrb[52].mxu0 %v2813_v35 }
0x1034   : > { %v7227_v30 = vsel %vm2689_vm15, %v2682_v25, %v2714_v38  ;;  %5303 = vmatprep.mubr.msk.f32.mxu0 %vm6331_vm0, %v6332_v1 }
0x1035   : > { %5257 = vmatmul.mubr.f32.gmra.mrb[44].mxu1 %v7227_v30  ;;  %v2814_v20 = vmul.f32 %v7227_v30, %v7227_v30 }
0x1036   : > { %5308 = vmatprep.mubr.msk.f32.mxu1 %vm1353_vm7, %v7237_v21 }
0x1037   : > { %5304 = vmatmul.mubr.f32.gmra.mrb[54].mxu0 %v2814_v20 }
0x10f8   : > { %v2786_v42 = vpop.f32.mrb[36].mxu1 }
0x10f9   : > { %v2905_v41 = vmul.f32 %v2786_v42, %v2786_v42  ;;  %v5246_v14 = vpop.f32.mrb[37].mxu1  ;;  %v2920_v13 = vsub.f32 %v7193_v54, %v2786_v42 }
0x10fa   : > { %v2881_v62 = vpop.f32.mrb[46].mxu0  ;;  %v2952_v14 = vrot.slane %v7189_v29, %v6896_v5 }
0x10fb   : > { %v2910_v44 = vsub.f32 %v2881_v62, %v2905_v41  ;;  %v5293_v39 = vpop.f32.mrb[47].mxu0 }
0x10fc   : > { %v2791_v49 = vpop.f32.mrb[38].mxu1 }
0x10fd   : > { %v2915_v9 = vmax.f32 %v2910_v44, 0.0  ;;  %v2906_v47 = vmul.f32 %v2791_v49, %v2791_v49  ;;  %v5249_v18 = vpop.f32.mrb[39].mxu1  ;;  %v2921_v39 = vsub.f32 %v7200_v8, %v2791_v49 }
0x10fe   : > { %v2886_v19 = vpop.f32.mrb[48].mxu0 }
0x10ff   : > { %v2925_v3 = vadd.f32 1e-05, %v2915_v9  ;;  %v2911_v2 = vsub.f32 %v2886_v19, %v2906_v47  ;;  %v5296_v6 = vpop.f32.mrb[49].mxu0 }
0x1100   : > { %v2796_v4 = vpop.f32.mrb[40].mxu1 }
0x1101   : > { %5923 = vrsqrt.f32 %v2925_v3  ;;  %v2916_v24 = vmax.f32 %v2911_v2, 0.0  ;;  %v2907_v23 = vmul.f32 %v2796_v4, %v2796_v4  ;;  %v5252_v25 = vpop.f32.mrb[41].mxu1  ;;  %v2922_v54 = vsub.f32 %v7209_v36, %v2796_v4  ;;  %v7259_v36 = vld [vmem:[%s7641_s4 + $0x8] sm:$0xff] }
0x1102   : > { %v2891_v26 = vpop.f32.mrb[50].mxu0 }
0x1103   : > { %v2926_v28 = vadd.f32 1e-05, %v2916_v24  ;;  %v2912_v31 = vsub.f32 %v2891_v26, %v2907_v23  ;;  %v5299_v34 = vpop.f32.mrb[51].mxu0 }
0x1104   : > { %v2801_v40 = vpop.f32.mrb[42].mxu1 }
0x1105   : > { %5925 = vrsqrt.f32 %v2926_v28  ;;  %v2917_v43 = vmax.f32 %v2912_v31, 0.0  ;;  %v2908_v56 = vmul.f32 %v2801_v40, %v2801_v40  ;;  %v5255_v57 = vpop.f32.mrb[43].mxu1  ;;  %v2923_v23 = vsub.f32 %v7218_v33, %v2801_v40  ;;  %v7267_v33 = vld [vmem:[%s7641_s4 + $0x10] sm:$0xff] }
0x1106   : > { %v2896_v63 = vpop.f32.mrb[52].mxu0 }
0x1107   : > { %v2927_v7 = vadd.f32 1e-05, %v2917_v43  ;;  %v2913_v55 = vsub.f32 %v2896_v63, %v2908_v56  ;;  %v5302_v59 = vpop.f32.mrb[53].mxu0 }
0x1108   : > { %v2806_v11 = vpop.f32.mrb[44].mxu1  ;;  %v3068_v59 = vld [vmem:[#allocation8 + $0x28] sm:$0xff] }
0x1109   : > { %5927 = vrsqrt.f32 %v2927_v7  ;;  %v2918_v10 = vmax.f32 %v2913_v55, 0.0  ;;  %v2909_v60 = vmul.f32 %v2806_v11, %v2806_v11  ;;  %v5258_v16 = vpop.f32.mrb[45].mxu1  ;;  %v2924_v8 = vsub.f32 %v7227_v30, %v2806_v11  ;;  %v7274_v30 = vld [vmem:[%s7641_s4 + $0x18] sm:$0xff]  ;;  %v3067_v55 = vld [vmem:[#allocation8 + $0x20] sm:$0xff] }
0x110a   : > { %v2901_v32 = vpop.f32.mrb[54].mxu0  ;;  %v3069_v11 = vld [vmem:[#allocation8 + $0x30] sm:$0xff] }
0x110b   : > { %v5924_v35 = vpop.eup %5923  ;;  %v2928_v38 = vadd.f32 1e-05, %v2918_v10  ;;  %v2914_v20 = vsub.f32 %v2901_v32, %v2909_v60  ;;  %v5305_v41 = vpop.f32.mrb[55].mxu0  ;;  %v5640_v10 = vpack.c.bf16 %v3068_v59, %v3067_v55  ;;  %v3070_v60 = vld [vmem:[#allocation8 + $0x38] sm:$0xff] }
0x110c   : > { %v2935_v62 = vmul.f32 %v5924_v35, %v2920_v13  ;;  %v5644_v16 = vpack.c.bf16 %v3070_v60, %v3069_v11 }
0x110d   : > { %5929 = vrsqrt.f32 %v2928_v38  ;;  %v2919_v44 = vmax.f32 %v2914_v20, 0.0  ;;  %5641 = vmatprep.subr.bf16.mxu0 %v5640_v10 }
0x110e   : > { %v2944_v9 = vmul.f32 %v2943_v51, %v2935_v62  ;;  %5643 = vmatpush3.bf16.msra.mxu0 %v5640_v10 }
0x110f   : > { %v5926_v47 = vpop.eup %5925  ;;  %v2929_v18 = vadd.f32 1e-05, %v2919_v44  ;;  %5645 = vmatprep.subr.bf16.mxu0 %v5644_v16 }
0x1110   : > { %v2936_v19 = vmul.f32 %v5926_v47, %v2921_v39  ;;  %v2953_v3 = vadd.f32 %v2952_v14, %v2944_v9  ;;  %v4604_v47 = vld [vmem:[%s7574_s10 + $0x40] sm:$0xff] }
0x1111   : > { %5931 = vrsqrt.f32 %v2929_v18  ;;  %v4605_v18 = vld [vmem:[%s7574_s10 + $0x48] sm:$0xff] }
0x1112   : > { %v2945_v42 = vmul.f32 %v2943_v51, %v2936_v19  ;;  %5647 = vmatpush3.bf16.msra.mxu0 %v5644_v16  ;;  %v5655_v19 = vpack.c.bf16 %v4605_v18, %v4604_v47 }
0x1113   : > { %v5928_v2 = vpop.eup %5927  ;;  %5654 = vmatprep.subr.bf16.mxu0 %v6330_v0 }
0x1114   : > { %v2954_v6 = vadd.f32 %v2952_v14, %v2945_v42  ;;  %v2937_v24 = vmul.f32 %v5928_v2, %v2922_v54  ;;  %v4607_v54 = vld [vmem:[%s7574_s10 + $0x58] sm:$0xff]  ;;  %v4608_v2 = vld [vmem:[%s7574_s10 + $0x60] sm:$0xff] }
0x1116   : > { %v2946_v29 = vmul.f32 %v2943_v51, %v2937_v24 }
0x1117   : > { %v5930_v25 = vpop.eup %5929 }
0x1118   : > { %v2955_v26 = vadd.f32 %v2952_v14, %v2946_v29  ;;  %v2938_v28 = vmul.f32 %v5930_v25, %v2923_v23  ;;  %v4610_v23 = vld [vmem:[%s7574_s10 + $0x70] sm:$0xff]  ;;  %v4611_v29 = vld [vmem:[%s7574_s10 + $0x78] sm:$0xff] }
0x1119   : > { %v5664_v25 = vpack.c.bf16 %v4611_v29, %v4610_v23 }
0x111a   : > { %v2947_v49 = vmul.f32 %v2943_v51, %v2938_v28 }
0x111b   : > { %v5932_v31 = vpop.eup %5931 }
0x111c   : > { %v2939_v34 = vmul.f32 %v5932_v31, %v2924_v8  ;;  %v2956_v43 = vadd.f32 %v2952_v14, %v2947_v49 }
0x111e   : > { %v2948_v56 = vmul.f32 %v2943_v51, %v2939_v34 }
0x1120   : > { %v7250_v57 = vadd.f32 %v2952_v14, %v2948_v56 }
0x1122   : > { %5306 = vmatprep.subr.msk.mxu1 %vm1366_vm8, %v7250_v57 }
0x1123   : > { %5307 = vmatpush3.msk.msra.mxu1 %vm1366_vm8, %v7250_v57 }
0x1124   : > { %5309 = vmatmul.mubr.msk.f32.vlgmr.msra.gmra.mrb[46].mxu1 %vm1353_vm7, %v7259_v36  ;;  %5648 = vmatprep.subr.bf16.mxu1 %v6330_v0 }
0x1125   : > { %5311 = vmatprep.mubr.msk.f32.mxu1 %vm1353_vm7, %v7267_v33 }
0x1128   : > { %5312 = vmatmul.mubr.msk.f32.gmra.mrb[48].mxu1 %vm1353_vm7, %v7274_v30 }
0x1129   : > { %5336 = vmatprep.mubr.msk.f32.mxu1 %vm6331_vm0, %v6332_v1 }
0x11f7   : > { %v5310_v4 = vpop.f32.mrb[46].mxu1 }
0x11f8   : > { %3052 = vrot.lane.b32.xlu0 %v5310_v4, %s6334_s2  ;;  %v3027_v40 = vpop.f32.mrb[47].mxu1 }
0x11f9   : > { %3050 = vrot.lane.b32.xlu1 %v3027_v40, %s6334_s2 }
0x11fb   : > { %v5313_v63 = vpop.f32.mrb[48].mxu1 }
0x11fc   : > { %v3037_v7 = vpop.f32.mrb[49].mxu1 }
0x11fd   : > { %3054 = vrot.lane.b32.xlu1 %v3037_v7, %s6334_s2 }
0x1201   : > { %3056 = vrot.lane.b32.xlu1 %v5313_v63, %s6334_s2 }
0x126a   : > { %v3053_v51 = vpop.permute.xlu0 %3052 }
0x126b   : > { %v3063_v13 = vmul.f32 %v3053_v51, %v2954_v6  ;;  %v3051_v32 = vpop.permute.xlu1 %3050 }
0x126c   : > { %v3062_v35 = vmul.f32 %v3051_v32, %v2953_v3 }
0x126d   : > { %3085 = vrot.lane.b32.xlu1 %v3063_v13, %s6335_s23 }
0x126e   : > { %3083 = vrot.lane.b32.xlu0 %v3062_v35, %s6335_s23 }
0x126f   : > { %v3055_v38 = vpop.permute.xlu1 %3054 }
0x1270   : > { %v3064_v20 = vmul.f32 %v3055_v38, %v2955_v26 }
0x1272   : > { %3087 = vrot.lane.b32.xlu0 %v3064_v20, %s6335_s23 }
0x1273   : > { %v3057_v41 = vpop.permute.xlu1 %3056 }
0x1274   : > { %v3065_v14 = vmul.f32 %v3057_v41, %v2956_v43 }
0x1276   : > { %3705 = vrot.lane.b32.xlu0 %v2953_v3, %s6334_s2  ;;  %3089 = vrot.lane.b32.xlu1 %v3065_v14, %s6335_s23  ;;  %v4606_v3 = vld [vmem:[%s7574_s10 + $0x50] sm:$0xff] }
0x1277   : > { %v5658_v42 = vpack.c.bf16 %v4607_v54, %v4606_v3 }
0x127a   : > { %3709 = vrot.lane.b32.xlu0 %v2955_v26, %s6334_s2  ;;  %3707 = vrot.lane.b32.xlu1 %v2954_v6, %s6334_s2  ;;  %v4609_v6 = vld [vmem:[%s7574_s10 + $0x68] sm:$0xff] }
0x127b   : > { %v5661_v24 = vpack.c.bf16 %v4609_v6, %v4608_v2  ;;  %v4594_v26 = vld [vmem:[#allocation10 + $0x1] ss:$0 sm:$0xff] }
0x127e   : > { %3711 = vrot.lane.b32.xlu1 %v2956_v43, %s6334_s2  ;;  %s744_s2 = scalar_lea.vmem [#allocation16], %s4516_s28 }
0x127f   : > { %s4289_s30 = sshll.u32 %s744_s2, 4  ;;  %s7489_s30 = int_to_ptr.vmem [resolvable:$true] %s4289_s30 }
0x1280   : > { %s6200_s3 = scalar_lea.vmem %s7489_s30, 512 }
0x1281   : > { %p6201_p11 = scmp.ne.s32.totalorder %s7489_s30, %s6200_s3 }
0x12df   : > { %v3086_v44 = vpop.permute.xlu1 %3085 }
0x12e0   : > { %v3084_v62 = vpop.permute.xlu0 %3083 }
0x12e1   : > { %5322 = vmatprep.mubr.msk.f32.mxu0 %vm810_vm1, %v3084_v62 }
0x12e2   : > { %5323 = vmatmul.mubr.msk.f32.vlgmr.msra.gmra.mrb[56].mxu0 %vm810_vm1, %v3086_v44 }
0x12e3   : > { %5656 = vmatpush3.bf16.msra.mxu0 %v5655_v19 }
0x12e4   : > { %v3088_v39 = vpop.permute.xlu0 %3087  ;;  %5657 = vmatprep.subr.bf16.mxu0 %v6330_v0 }
0x12e5   : > { %5325 = vmatprep.mubr.msk.f32.mxu0 %vm810_vm1, %v3088_v39 }
0x12e7   : > { %5659 = vmatpush3.bf16.msra.mxu0 %v5658_v42  ;;  %v4613_v42 = vld [vmem:[%s7575_s11 + $0x1] ss:$0 sm:$0xff] }
0x12e8   : > { %v3090_v9 = vpop.permute.xlu1 %3089  ;;  %5660 = vmatprep.subr.bf16.mxu0 %v6330_v0 }
0x12e9   : > { %5326 = vmatmul.mubr.msk.f32.gmra.mrb[58].mxu0 %vm810_vm1, %v3090_v9 }
0x12ea   : > { %5355 = vmatprep.mubr.msk.f32.mxu0 %vm6331_vm0, %v6332_v1 }
0x12eb   : > { %5662 = vmatpush3.bf16.msra.mxu0 %v5661_v24 }
0x12ec   : > { %5663 = vmatprep.subr.bf16.mxu0 %v6330_v0 }
0x12ef   : > { %5665 = vmatpush3.bf16.msra.mxu0 %v5664_v25 }
0x12f0   : > { %5678 = vmatprep.subr.bf16.mxu0 %v6330_v0 }
0x13b5   : > { %v5324_v28 = vpop.f32.mrb[56].mxu0 }
0x13b6   : > { %v3171_v8 = vadd.f32 %v5324_v28, %v4594_v26  ;;  %v3165_v49 = vpop.f32.mrb[57].mxu0 }
0x13b7   : > { %v3166_v31 = vadd.f32 %v4594_v26, %v3165_v49 }
0x13b8   : > { %v3189_v34 = vmul.f32 0.7692308, %v3171_v8  ;;  %vm3185_vm2 = vcmp.gt.f32.partialorder %v3171_v8, 0.0 }
0x13b9   : > { %v3188_v43 = vmul.f32 0.7692308, %v3166_v31  ;;  %vm3184_vm3 = vcmp.gt.f32.partialorder %v3166_v31, 0.0 }
0x13ba   : > { %v3194_v56 = vmul.f32 1.442695, %v3189_v34 }
0x13bb   : > { %v3192_v4 = vmul.f32 1.442695, %v3188_v43 }
0x13bc   : > { %5933 = vpow2.f32 %v3194_v56  ;;  %v5327_v40 = vpop.f32.mrb[58].mxu0 }
0x13bd   : > { %5935 = vpow2.f32 %v3192_v4  ;;  %v3181_v63 = vadd.f32 %v5327_v40, %v4594_v26  ;;  %v3175_v7 = vpop.f32.mrb[59].mxu0 }
0x13be   : > { %v3176_v55 = vadd.f32 %v4594_v26, %v3175_v7 }
0x13bf   : > { %v3191_v59 = vmul.f32 0.7692308, %v3181_v63  ;;  %vm3187_vm10 = vcmp.gt.f32.partialorder %v3181_v63, 0.0 }
0x13c0   : > { %v3190_v11 = vmul.f32 0.7692308, %v3176_v55  ;;  %vm3186_vm11 = vcmp.gt.f32.partialorder %v3176_v55, 0.0 }
0x13c1   : > { %v3198_v10 = vmul.f32 1.442695, %v3191_v59 }
0x13c2   : > { %v3196_v60 = vmul.f32 1.442695, %v3190_v11 }
0x13c3   : > { %5937 = vpow2.f32 %v3198_v10 }
0x13c4   : > { %5939 = vpow2.f32 %v3196_v60 }
0x13c6   : > { %v5934_v16 = vpop.eup %5933 }
0x13c7   : > { %v5936_v51 = vpop.eup %5935  ;;  %v4600_v13 = vadd.f32 -1.0, %v5934_v16 }
0x13c8   : > { %v4599_v32 = vadd.f32 -1.0, %v5936_v51 }
0x13c9   : > { %v3205_v35 = vmul.f32 1.3, %v4600_v13 }
0x13ca   : > { %v3204_v38 = vmul.f32 1.3, %v4599_v32 }
0x13cb   : > { %v3209_v20 = vsel %vm3185_vm2, %v3171_v8, %v3205_v35 }
0x13cc   : > { %v3208_v41 = vsel %vm3184_vm3, %v3166_v31, %v3204_v38 }
0x13cd   : > { %v5938_v14 = vpop.eup %5937  ;;  %v5649_v62 = vpack.c.bf16 %v3209_v20, %v3208_v41  ;;  %5356 = vmatmul.mubr.msk.f32.vlgmr.msra.gmra.mrb[60].mxu0 %vm1705_vm14, %v3208_v41 }
0x13ce   : > { %v5940_v44 = vpop.eup %5939  ;;  %v4602_v39 = vadd.f32 -1.0, %v5938_v14  ;;  %5358 = vmatprep.mubr.msk.f32.mxu0 %vm6331_vm0, %v6332_v1 }
0x13cf   : > { %5650 = vmatpush3.bf16.msra.mxu1 %v5649_v62  ;;  %v4601_v9 = vadd.f32 -1.0, %v5940_v44 }
0x13d0   : > { %v3207_v47 = vmul.f32 1.3, %v4602_v39  ;;  %5651 = vmatprep.subr.bf16.mxu1 %v6330_v0 }
0x13d1   : > { %5359 = vmatmul.mubr.msk.f32.gmra.mrb[62].mxu0 %vm1705_vm14, %v3209_v20  ;;  %v3206_v18 = vmul.f32 1.3, %v4601_v9 }
0x13d2   : > { %v3211_v19 = vsel %vm3187_vm10, %v3181_v63, %v3207_v47  ;;  %5361 = vmatprep.mubr.msk.f32.mxu0 %vm6331_vm0, %v6332_v1 }
0x13d3   : > { %v3210_v3 = vsel %vm3186_vm11, %v3176_v55, %v3206_v18 }
0x13d4   : > { %v5652_v54 = vpack.c.bf16 %v3211_v19, %v3210_v3 }
0x13d5   : > { %5362 = vmatmul.mubr.msk.f32.gmra.mrb[64].mxu0 %vm1705_vm14, %v3210_v3 }
0x13d6   : > { %5653 = vmatpush3.bf16.msra.mxu1 %v5652_v54  ;;  %5364 = vmatprep.mubr.msk.f32.mxu0 %vm6331_vm0, %v6332_v1  ;;  %v5974_v54 = vld [vmem:[%s7639_s26] sm:$0xf] }
0x13d7   : > { %5666 = vmatprep.subr.bf16.mxu1 %v6330_v0 }
0x13d9   : > { %5337 = vmatmul.mubr.msk.f32.vlgmr.msra.gmra.mrb[50].mxu1 %vm810_vm1, %v6754_v22  ;;  %5365 = vmatmul.mubr.msk.f32.gmra.mrb[66].mxu0 %vm1705_vm14, %v3211_v19 }
0x13da   : > { %5367 = vmatprep.mubr.msk.f32.mxu0 %vm6331_vm0, %v6332_v1  ;;  %5378 = vmatprep.mubr.msk.f32.mxu1 %vm6331_vm0, %v6332_v1 }
0x14a0   : > { %v3381_v2 = vpop.f32.mrb[60].mxu0 }
0x14a1   : > { %v3382_v6 = vadd.f32 %v4613_v42, %v3381_v2  ;;  %v5357_v24 = vpop.f32.mrb[61].mxu0 }
0x14a3   : > { %v3411_v29 = vsel %vm1833_vm4, -1e+09, %v3382_v6 }
0x14a4   : > { %v3386_v23 = vpop.f32.mrb[62].mxu0  ;;  %v3415_v28 = vsel %vm1353_vm7, %v3411_v29, -inf }
0x14a5   : > { %v3387_v22 = vadd.f32 %v4613_v42, %v3386_v23  ;;  %v5360_v25 = vpop.f32.mrb[63].mxu0 }
0x14a7   : > { %v3412_v26 = vsel %vm1834_vm5, -1e+09, %v3387_v22 }
0x14a8   : > { %v3416_v8 = vsel %vm1353_vm7, %v3412_v26, -inf  ;;  %v3391_v49 = vpop.f32.mrb[64].mxu0 }
0x14a9   : > { %v3419_v31 = vmax.f32 %v3415_v28, %v3416_v8  ;;  %v3392_v34 = vadd.f32 %v4613_v42, %v3391_v49  ;;  %v5363_v43 = vpop.f32.mrb[65].mxu0 }
0x14ab   : > { %v3413_v40 = vsel %vm1835_vm6, -1e+09, %v3392_v34 }
0x14ac   : > { %v3278_v56 = vpop.f32.mrb[50].mxu1  ;;  %v3396_v4 = vpop.f32.mrb[66].mxu0  ;;  %v3417_v59 = vsel %vm1353_vm7, %v3413_v40, -inf }
0x14ad   : > { %v3282_v52 = vmul.f32 %v3278_v56, %v6853_v48  ;;  %v3397_v63 = vadd.f32 %v4613_v42, %v3396_v4  ;;  %v5366_v7 = vpop.f32.mrb[67].mxu0  ;;  %v5338_v55 = vpop.f32.mrb[51].mxu1 }
0x14ae   : > { %v3706_v7 = vpop.permute.xlu0 %3705 }
0x14af   : > { %v3414_v45 = vsel %vm1836_vm9, -1e+09, %v3397_v63  ;;  %5368 = vmatmul.mubr.msk.f32.gmra.mrb[68].mxu0 %vm1705_vm14, %v3282_v52  ;;  %v3708_v63 = vpop.permute.xlu1 %3707 }
0x14b0   : > { %v3418_v11 = vsel %vm1353_vm7, %v3414_v45, -inf  ;;  %5416 = vmatprep.mubr.msk.f32.mxu0 %vm6331_vm0, %v6332_v1 }
0x14b1   : > { %v3420_v10 = vmax.f32 %v3417_v59, %v3418_v11 }
0x14b3   : > { %v3421_v61 = vmax.f32 %v3419_v31, %v3420_v10  ;;  %v3712_v10 = vpop.permute.xlu1 %3711 }
0x14b5   : > { %v3422_v60 = vrot.slane %v3421_v61, 4 }
0x14b7   : > { %v3423_v16 = vmax.f32 %v3421_v61, %v3422_v60 }
0x14b9   : > { %v3424_v48 = vrot.slane %v3423_v16, 2 }
0x14bb   : > { %v3425_v51 = vmax.f32 %v3423_v16, %v3424_v48  ;;  %v3710_v16 = vpop.permute.xlu0 %3709 }
0x14bd   : > { %v3426_v13 = vrot.slane %v3425_v51, 1 }
0x14bf   : > { %v3427_v32 = vmax.f32 %v3425_v51, %v3426_v13 }
0x14c1   : > { %v3431_v35 = vsub.f32 %v3414_v45, %v3427_v32  ;;  %v3428_v58 = vsub.f32 %v3411_v29, %v3427_v32  ;;  %v3429_v38 = vsub.f32 %v3412_v26, %v3427_v32  ;;  %v3430_v20 = vsub.f32 %v3413_v40, %v3427_v32 }
0x14c3   : > { %v3432_v41 = vmul.f32 1.442695, %v3428_v58  ;;  %v3434_v14 = vmul.f32 1.442695, %v3429_v38  ;;  %v3438_v62 = vmul.f32 1.442695, %v3431_v35 }
0x14c4   : > { %v3436_v44 = vmul.f32 1.442695, %v3430_v20  ;;  %v3804_v35 = vld [vmem:[#allocation11 + $0x20] sm:$0xff]  ;;  %v3805_v58 = vld [vmem:[#allocation11 + $0x28] sm:$0xff]  ;;  %v3806_v38 = vld [vmem:[#allocation11 + $0x30] sm:$0xff] }
0x14c5   : > { %5941 = vpow2.f32 %v3432_v41  ;;  %v5679_v20 = vpack.c.bf16 %v3805_v58, %v3804_v35  ;;  %v3807_v41 = vld [vmem:[#allocation11 + $0x38] sm:$0xff] }
0x14c6   : > { %5943 = vpow2.f32 %v3434_v14  ;;  %v5682_v14 = vpack.c.bf16 %v3807_v41, %v3806_v38 }
0x14c7   : > { %5945 = vpow2.f32 %v3438_v62  ;;  %5680 = vmatpush3.bf16.msra.mxu0 %v5679_v20 }
0x14c8   : > { %5947 = vpow2.f32 %v3436_v44  ;;  %5681 = vmatprep.subr.bf16.mxu0 %v6330_v0 }
0x14cb   : > { %5683 = vmatpush3.bf16.msra.mxu0 %v5682_v14 }
0x14cc   : > { %5692 = vmatprep.subr.bf16.mxu0 %v6330_v0 }
0x14cf   : > { %v5942_v39 = vpop.eup %5941 }
0x14d0   : > { %v5944_v9 = vpop.eup %5943 }
0x14d1   : > { %v5946_v47 = vpop.eup %5945  ;;  %v5667_v18 = vpack.c.bf16 %v5944_v9, %v5942_v39 }
0x14d2   : > { %v5948_v19 = vpop.eup %5947 }
0x14d3   : > { %5668 = vmatpush3.bf16.msra.mxu1 %v5667_v18  ;;  %v5670_v3 = vpack.c.bf16 %v5946_v47, %v5948_v19  ;;  %v4155_v18 = vld [vmem:[#allocation14] sm:$0xff] }
0x14d4   : > { %5669 = vmatprep.subr.bf16.mxu1 %v6330_v0 }
0x14d7   : > { %5671 = vmatpush3.bf16.msra.mxu1 %v5670_v3 }
0x14da   : > { %5379 = vmatmul.mubr.msk.f32.vlgmr.msra.gmra.mrb[52].mxu1 %vm810_vm1, %v5974_v54 }
0x14db   : > { %5383 = vmatprep.mubr.msk.f32.mxu1 %vm1353_vm7, %v7237_v21 }
0x1582   : > { %v3401_v2 = vpop.f32.mrb[68].mxu0 }
0x1583   : > { %v3402_v6 = vadd.f32 %v4613_v42, %v3401_v2  ;;  %v5369_v24 = vpop.f32.mrb[69].mxu0  ;;  %v5975_v42 = vld [vmem:[%s7579_s15] sm:$0xf] }
0x1584   : > { %v4158_v2 = vld [vmem:[#allocation14 + $0x18] sm:$0xff] }
0x1585   : > { %v4619_v23 = vmul.f32 -1.442695, %v3402_v6 }
0x1587   : > { %5949 = vpow2.f32 %v4619_v23  ;;  %v4160_v23 = vld [vmem:[#allocation14 + $0x28] sm:$0xff] }
0x1591   : > { %v5950_v29 = vpop.eup %5949 }
0x1592   : > { %v3408_v22 = vadd.f32 1.0, %v5950_v29 }
0x1594   : > { %5951 = vrcp.f32 %v3408_v22  ;;  %v4161_v22 = vld [vmem:[#allocation14 + $0x30] sm:$0xff] }
0x159e   : > { %v5952_v25 = vpop.eup %5951 }
0x159f   : > { %3797 = vrot.lane.b32.xlu1 %v5952_v25, %s6336_s24  ;;  %v4162_v25 = vld [vmem:[#allocation14 + $0x38] sm:$0xff]  ;;  %s7647_s24 = sld [smem:[#allocation32_spill]] }
0x15a3   : > { %4150 = vrot.lane.b32.xlu1 %v7081_v17, %s6335_s23  ;;  %s7646_s23 = smov %s7645_s20  ;;  %s6204_s20 = sshll.u32 %s6338_s18, 4  ;;  %s6205_s20 = int_to_ptr.vmem [resolvable:$false] %s6204_s20 }
0x15a4   : > { %s6206_s4 = scalar_lea.vmem %s6205_s20, 1024  ;;  %p6207_p9 = scmp.lt.s32.totalorder %s7489_s30, %s6205_s20 }
0x15a5   : > { %p7649_p5 = scmp.ne.s32.totalorder %s7647_s24, 0  ;;  %p6208_p10 = scmp.lt.s32.totalorder %s6206_s4, %s6200_s3 }
0x15a7   : > { %p6202_p0 = pnand %p6201_p11, %p7649_p5  ;;  %p6209_p13 = por %p6208_p10, %p6207_p9 }
0x15a9   : > { %p6203_p6 = pneg %p6202_p0 }
0x15ab   : > { %p6210_p12 = pnand %p6209_p13, %p6203_p6 }
0x15ad   : > { %v3506_v26 = vpop.f32.mrb[52].mxu1 }
0x15ae   : > { %v3510_v28 = vmax.f32 %v3506_v26, 1e-20  ;;  %v5380_v8 = vpop.f32.mrb[53].mxu1  ;;  %v5702_v26 = vpack.c.bf16 %v4162_v25, %v4161_v22 }
0x15af   : > { %v4164_v8 = vld [vmem:[#allocation14 + $0x48] sm:$0xff] }
0x15b0   : > { %5953 = vrcp.f32 %v3510_v28  ;;  %v4163_v28 = vld [vmem:[#allocation14 + $0x40] sm:$0xff] }
0x15ba   : > { %v5954_v49 = vpop.eup %5953 }
0x15bb   : > { %5381 = vmatprep.subr.msk.mxu1 %vm1366_vm8, %v5954_v49 }
0x15bc   : > { %5382 = vmatpush3.msk.msra.mxu1 %vm1366_vm8, %v5954_v49  ;;  %v5705_v49 = vpack.c.bf16 %v4164_v8, %v4163_v28 }
0x15bd   : > { %5384 = vmatmul.mubr.msk.f32.vlgmr.msra.gmra.mrb[54].mxu1 %vm1353_vm7, %v7259_v36  ;;  %5389 = vmatprep.subr.msk.mxu1 %vm1366_vm8, %v5975_v42 }
0x15be   : > { %5386 = vmatprep.mubr.msk.f32.mxu1 %vm1353_vm7, %v7267_v33  ;;  %5390 = vmatpush3.msk.msra.mxu1 %vm1366_vm8, %v5975_v42  ;;  %v4166_v42 = vld [vmem:[#allocation14 + $0x58] sm:$0xff] }
0x15bf   : > { %5672 = vmatprep.subr.bf16.mxu1 %v6330_v0 }
0x15c1   : > { %5387 = vmatmul.mubr.msk.f32.gmra.mrb[56].mxu1 %vm1353_vm7, %v7274_v30 }
0x1690   : > { %v5385_v17 = vpop.f32.mrb[54].mxu1 }
0x1691   : > { %v3581_v31 = vpop.f32.mrb[55].mxu1  ;;  %v3601_v43 = vmul.f32 %v5944_v9, %v5385_v17 }
0x1692   : > { %v3600_v34 = vmul.f32 %v5942_v39, %v3581_v31 }
0x1694   : > { %v5388_v56 = vpop.f32.mrb[56].mxu1  ;;  %5391 = vmatprep.mubr.msk.f32.mxu1 %vm1353_vm7, %v3600_v34 }
0x1695   : > { %v3591_v4 = vpop.f32.mrb[57].mxu1  ;;  %5392 = vmatmul.mubr.msk.f32.vlgmr.msra.gmra.mrb[58].mxu1 %vm1353_vm7, %v3601_v43  ;;  %v3603_v52 = vmul.f32 %v5946_v47, %v5388_v56  ;;  %v3884_v56 = vld [vmem:[#allocation13 + $0x20] sm:$0xff] }
0x1696   : > { %v3602_v40 = vmul.f32 %v5948_v19, %v3591_v4  ;;  %v4156_v19 = vld [vmem:[#allocation14 + $0x8] sm:$0xff] }
0x1697   : > { %v5693_v3 = vpack.c.bf16 %v4156_v19, %v4155_v18  ;;  %v3885_v4 = vld [vmem:[#allocation13 + $0x28] sm:$0xff] }
0x1698   : > { %5394 = vmatprep.mubr.msk.f32.mxu1 %vm1353_vm7, %v3602_v40  ;;  %v3886_v40 = vld [vmem:[#allocation13 + $0x30] sm:$0xff] }
0x1699   : > { %5395 = vmatmul.mubr.msk.f32.gmra.mrb[60].mxu1 %vm1353_vm7, %v3603_v52  ;;  %v3887_v52 = vld [vmem:[#allocation13 + $0x38] sm:$0xff] }
0x169a   : > { %5405 = vmatprep.mubr.msk.f32.mxu1 %vm6331_vm0, %v6332_v1 }
0x1768   : > { %v5393_v55 = vpop.f32.mrb[58].mxu1 }
0x1769   : > { %v3718_v45 = vmul.f32 %v5393_v55, %v3708_v63  ;;  %v3682_v59 = vpop.f32.mrb[59].mxu1  ;;  %v5684_v63 = vpack.c.bf16 %v3885_v4, %v3884_v56 }
0x176a   : > { %v3717_v11 = vmul.f32 %v3706_v7, %v3682_v59 }
0x176c   : > { %v5673_v61 = vpack.c.bf16 %v3718_v45, %v3717_v11  ;;  %v5396_v60 = vpop.f32.mrb[60].mxu1  ;;  %v5688_v45 = vpack.c.bf16 %v3887_v52, %v3886_v40 }
0x176d   : > { %v3720_v48 = vmul.f32 %v5396_v60, %v3712_v10  ;;  %v3692_v51 = vpop.f32.mrb[61].mxu1 }
0x176e   : > { %v3719_v13 = vmul.f32 %v3710_v16, %v3692_v51  ;;  %5674 = vmatpush3.bf16.msra.mxu1 %v5673_v61 }
0x176f   : > { %5675 = vmatprep.subr.bf16.mxu1 %v6330_v0 }
0x1770   : > { %v5676_v32 = vpack.c.bf16 %v3720_v48, %v3719_v13 }
0x1772   : > { %5677 = vmatpush3.bf16.msra.mxu1 %v5676_v32 }
0x1775   : > { %5406 = vmatmul.mubr.msk.f32.vlgmr.msra.gmra.mrb[62].mxu1 %vm810_vm1, %v5974_v54  ;;  %v4157_v54 = vld [vmem:[#allocation14 + $0x10] sm:$0xff] }
0x1776   : > { %5421 = vmatprep.mubr.msk.f32.mxu1 %vm1353_vm7, %v7237_v21  ;;  %v3798_v21 = vpop.permute.xlu1 %3797  ;;  %v5696_v24 = vpack.c.bf16 %v4158_v2, %v4157_v54 }
0x177a   : > { %v4151_v31 = vpop.permute.xlu1 %4150 }
0x177b   : > { %v4153_v34 = vsel %vm810_vm1, %v6856_v53, %v4151_v31 }
0x1848   : > { %v3787_v62 = vpop.f32.mrb[62].mxu1 }
0x1849   : > { %3792 = vrot.lane.b32.xlu0 %v3787_v62, %s6337_s21  ;;  %v5407_v44 = vpop.f32.mrb[63].mxu1 }
0x18bb   : > { %v3793_v39 = vpop.permute.xlu0 %3792 }
0x18bc   : > { %v3795_v9 = vmul.f32 %v3793_v39, %v7250_v57  ;;  %v4159_v57 = vld [vmem:[#allocation14 + $0x20] sm:$0xff] }
0x18bd   : > { %v5699_v29 = vpack.c.bf16 %v4160_v23, %v4159_v57 }
0x18be   : > { %v3800_v47 = vmul.f32 %v3798_v21, %v3795_v9 }
0x18c0   : > { %3809 = vrot.lane.b32.xlu0 %v3800_v47, %s6337_s21  ;;  %v4154_v43 = vsel %vm1705_vm14, %v4153_v34, %v3800_v47  ;;  %s4648_s21 = sshll.u32 %s6463_s1, 6  ;;  %s4271_s1 = scalar_lea.sflag [#allocation4], %s7463_s22 }
0x18c1   : > { %s7494_s29 = scalar_lea.hbm %s7648_s19, %s4648_s21 }
0x1932   : > { %v3810_v6 = vpop.permute.xlu0 %3809 }
0x1933   : > { %5417 = vmatmul.mubr.msk.f32.vlgmr.msra.gmra.mrb[70].mxu0 %vm810_vm1, %v3810_v6 }
0x1934   : > { %5694 = vmatpush3.bf16.msra.mxu0 %v5693_v3  ;;  %5465 = vmatprep.mubr.msk.f32.mxu0 %vm6331_vm0, %v6332_v1  ;;  %v4165_v1 = vld [vmem:[#allocation14 + $0x50] sm:$0xff]  ;;  %vm4171_vm0 = vcmask 785408  }
0x1935   : > { %5695 = vmatprep.subr.bf16.mxu0 %v6330_v0  ;;  %v5708_v17 = vpack.c.bf16 %v4166_v42, %v4165_v1 }
0x1938   : > { %5697 = vmatpush3.bf16.msra.mxu0 %v5696_v24 }
0x1939   : > { %5698 = vmatprep.subr.bf16.mxu0 %v6330_v0 }
0x193c   : > { %5700 = vmatpush3.bf16.msra.mxu0 %v5699_v29 }
0x193d   : > { %5701 = vmatprep.subr.bf16.mxu0 %v6330_v0 }
0x1940   : > { %5703 = vmatpush3.bf16.msra.mxu0 %v5702_v26 }
0x1941   : > { %5704 = vmatprep.subr.bf16.mxu0 %v6330_v0 }
0x1944   : > { %5706 = vmatpush3.bf16.msra.mxu0 %v5705_v49 }
0x1945   : > { %5707 = vmatprep.subr.bf16.mxu0 %v6330_v0 }
0x1948   : > { %5709 = vmatpush3.bf16.msra.mxu0 %v5708_v17 }
0x194b   : > { %5466 = vmatmul.mubr.msk.f32.vlgmr.msra.gmra.mrb[72].mxu0 %vm4171_vm0, %v4154_v43 }
0x1a06   : > { %v3879_v7 = vpop.f32.mrb[70].mxu0 }
0x1a07   : > { %v5418_v55 = vpop.f32.mrb[71].mxu0  ;;  %5419 = vmatprep.subr.msk.mxu1 %vm1366_vm8, %v3879_v7 }
0x1a08   : > { %5420 = vmatpush3.msk.msra.mxu1 %vm1366_vm8, %v3879_v7 }
0x1a09   : > { %5422 = vmatmul.mubr.msk.f32.vlgmr.msra.gmra.mrb[64].mxu1 %vm1353_vm7, %v7259_v36  ;;  %5685 = vmatprep.subr.bf16.mxu1 %v5684_v63  ;;  %v7433_v36 = vld [vmem:[%s7642_s17 + $0x4] sm:$0x7] }
0x1a0a   : > { %5687 = vmatpush3.bf16.msra.mxu1 %v5684_v63  ;;  %5424 = vmatprep.mubr.msk.f32.mxu1 %vm1353_vm7, %v7267_v33  ;;  %v4064_v33 = vrot.slane %v7433_v36, %v6821_v50 }
0x1a0b   : > { %5689 = vmatprep.subr.bf16.mxu1 %v5688_v45 }
0x1a0d   : > { %5425 = vmatmul.mubr.msk.f32.gmra.mrb[66].mxu1 %vm1353_vm7, %v7274_v30  ;;  %v7440_v30 = vld [vmem:[%s7643_s14] sm:$0x7]  ;;  %vm4245_vm7 = vcmask 257024   ;;  %s4305_s14 = sshll.u32 %s7486_s25, 4  ;;  %s7496_s14 = int_to_ptr.vmem [resolvable:$true] %s4305_s14 }
0x1a0e   : > { %5691 = vmatpush3.bf16.msra.mxu1 %v5688_v45  ;;  %5435 = vmatprep.mubr.msk.f32.mxu1 %vm810_vm1, %v7146_v15  ;;  %v4170_v60 = vrot.slane %v7440_v30, %v6821_v50 }
0x1a11   : > { %5436 = vmatmul.mubr.msk.f32.vlgmr.msra.gmra.mrb[64].mxu1 %vm810_vm1, %v7153_v37 }
0x1a12   : > { %5438 = vmatprep.mubr.msk.f32.mxu1 %vm810_vm1, %v7161_v12 }
0x1a15   : > { %5439 = vmatmul.mubr.msk.f32.gmra.mrb[66].mxu1 %vm810_vm1, %v7169_v27 }
0x1a1e   : > { %v4241_v0 = vpop.f32.mrb[72].mxu0 }
0x1a1f   : > { %v5467_v53 = vpop.f32.mrb[73].mxu0  ;;  %v4242_v20 = vadd.f32 %v4241_v0, %v4170_v60 }
0x1a21   : > { %v4246_v39 = vsel %vm4245_vm7, %v4242_v20, 0.0 }
0x1ae4   : > { %v5437_v59 = vpop.f32.mrb[64].mxu1 }
0x1ae5   : > { %v4066_v11 = vadd.f32 %v5437_v59, %v4064_v33  ;;  %v4042_v10 = vpop.f32.mrb[65].mxu1 }
0x1ae6   : > { %v4065_v61 = vadd.f32 %v4064_v33, %v4042_v10 }
0x1ae7   : > { %v4070_v16 = vmax.f32 %v4066_v11, 0.0 }
0x1ae8   : > { %v4069_v48 = vmax.f32 %v4065_v61, 0.0  ;;  %v5440_v51 = vpop.f32.mrb[66].mxu1  ;;  %v4132_v61 = vrot.slane %v7433_v36, %v6893_v46 }
0x1ae9   : > { %v4068_v13 = vadd.f32 %v5440_v51, %v4064_v33  ;;  %v4052_v32 = vpop.f32.mrb[67].mxu1  ;;  %v4074_v35 = vadd.f32 %v4070_v16, %v7153_v37 }
0x1aea   : > { %v4067_v58 = vadd.f32 %v4064_v33, %v4052_v32  ;;  %v4073_v38 = vadd.f32 %v4069_v48, %v7146_v15  ;;  %v4140_v48 = vrot.slane %v7433_v36, %v6896_v5  ;;  %v4262_v36 = vrot.slane %v7440_v30, %v6893_v46 }
0x1aeb   : > { %v4080_v41 = vsel %vm810_vm1, %v4074_v35, 0.0  ;;  %v4072_v14 = vmax.f32 %v4068_v13, 0.0 }
0x1aec   : > { %v4071_v62 = vmax.f32 %v4067_v58, 0.0  ;;  %4081 = vadd.xlane.f32.xlu1 %v4080_v41  ;;  %v4077_v44 = vsel %vm810_vm1, %v4073_v38, 0.0 }
0x1aed   : > { %4078 = vadd.xlane.f32.xlu0 %v4077_v44  ;;  %v4076_v9 = vadd.f32 %v4072_v14, %v7169_v27 }
0x1aee   : > { %v4075_v50 = vadd.f32 %v4071_v62, %v7161_v12 }
0x1aef   : > { %v4086_v15 = vsel %vm810_vm1, %v4076_v9, 0.0 }
0x1af0   : > { %4247 = vadd.xlane.f32.xlu1 %v4246_v39  ;;  %v4083_v37 = vsel %vm810_vm1, %v4075_v50, 0.0 }
0x1af1   : > { %4084 = vadd.xlane.f32.xlu0 %v4083_v37  ;;  %v4267_v37 = vrot.slane %v7440_v30, %v6896_v5 }
0x1af5   : > { %4087 = vadd.xlane.f32.xlu0 %v4086_v15 }
0x1b79   : > { %v4082_v21 = vpop.xlane.xlu1 %4081 }
0x1b7a   : > { %v4090_v47 = vmul.f32 0.03125, %v4082_v21  ;;  %v4079_v18 = vpop.xlane.xlu0 %4078 }
0x1b7b   : > { %v4089_v19 = vmul.f32 0.03125, %v4079_v18 }
0x1b7c   : > { %v4094_v3 = vsub.f32 %v4074_v35, %v4090_v47 }
0x1b7d   : > { %v4093_v54 = vsub.f32 %v4073_v38, %v4089_v19  ;;  %v4248_v2 = vpop.xlane.xlu1 %4247 }
0x1b7e   : > { %v4249_v6 = vmul.f32 0.03125, %v4248_v2  ;;  %v4085_v12 = vpop.xlane.xlu0 %4084  ;;  %v4098_v24 = vmul.f32 %v4094_v3, %v4094_v3 }
0x1b7f   : > { %v4091_v57 = vmul.f32 0.03125, %v4085_v12  ;;  %v4097_v23 = vmul.f32 %v4093_v54, %v4093_v54 }
0x1b80   : > { %v4104_v29 = vsel %vm810_vm1, %v4098_v24, 0.0  ;;  %v7454_v22 = vsub.f32 %v4242_v20, %v4249_v6 }
0x1b81   : > { %v4095_v27 = vsub.f32 %v4075_v50, %v4091_v57  ;;  %4105 = vadd.xlane.f32.xlu1 %v4104_v29  ;;  %v4101_v25 = vsel %vm810_vm1, %v4097_v23, 0.0 }
0x1b82   : > { %4102 = vadd.xlane.f32.xlu0 %v4101_v25  ;;  %v4088_v26 = vpop.xlane.xlu0 %4087  ;;  %v4251_v42 = vmul.f32 %v7454_v22, %v7454_v22 }
0x1b83   : > { %v4092_v28 = vmul.f32 0.03125, %v4088_v26  ;;  %v4099_v8 = vmul.f32 %v4095_v27, %v4095_v27 }
0x1b84   : > { %v4252_v31 = vsel %vm4245_vm7, %v4251_v42, 0.0 }
0x1b85   : > { %v4096_v49 = vsub.f32 %v4076_v9, %v4092_v28  ;;  %v4107_v1 = vsel %vm810_vm1, %v4099_v8, 0.0 }
0x1b86   : > { %4108 = vadd.xlane.f32.xlu0 %v4107_v1 }
0x1b87   : > { %v4100_v17 = vmul.f32 %v4096_v49, %v4096_v49 }
0x1b89   : > { %v4110_v34 = vsel %vm810_vm1, %v4100_v17, 0.0 }
0x1b8a   : > { %4253 = vadd.xlane.f32.xlu0 %v4252_v31  ;;  %4111 = vadd.xlane.f32.xlu1 %v4110_v34 }
0x1c0e   : > { %v4106_v43 = vpop.xlane.xlu1 %4105 }
0x1c0f   : > { %v4114_v56 = vmul.f32 0.03125, %v4106_v43  ;;  %v4103_v4 = vpop.xlane.xlu0 %4102 }
0x1c10   : > { %v4113_v40 = vmul.f32 0.03125, %v4103_v4 }
0x1c11   : > { %v4118_v52 = vadd.f32 1e-05, %v4114_v56 }
0x1c12   : > { %v4117_v63 = vadd.f32 1e-05, %v4113_v40 }
0x1c13   : > { %5955 = vrsqrt.f32 %v4118_v52  ;;  %v4109_v7 = vpop.xlane.xlu0 %4108 }
0x1c14   : > { %5957 = vrsqrt.f32 %v4117_v63  ;;  %v4115_v55 = vmul.f32 0.03125, %v4109_v7 }
0x1c16   : > { %v4119_v45 = vadd.f32 1e-05, %v4115_v55 }
0x1c17   : > { %v4112_v0 = vpop.xlane.xlu1 %4111  ;;  %v4254_v53 = vpop.xlane.xlu0 %4253 }
0x1c18   : > { %5959 = vrsqrt.f32 %v4119_v45  ;;  %v4116_v33 = vmul.f32 0.03125, %v4112_v0  ;;  %v4255_v59 = vmul.f32 0.03125, %v4254_v53 }
0x1c1a   : > { %v4120_v11 = vadd.f32 1e-05, %v4116_v33  ;;  %v4256_v10 = vadd.f32 1e-05, %v4255_v59 }
0x1c1c   : > { %5961 = vrsqrt.f32 %v4120_v11 }
0x1c1d   : > { %v5956_v60 = vpop.eup %5955  ;;  %5963 = vrsqrt.f32 %v4256_v10 }
0x1c1e   : > { %v5958_v16 = vpop.eup %5957  ;;  %v4126_v51 = vmul.f32 %v5956_v60, %v4094_v3 }
0x1c1f   : > { %v4125_v13 = vmul.f32 %v5958_v16, %v4093_v54 }
0x1c20   : > { %v4134_v32 = vmul.f32 %v4132_v61, %v4126_v51 }
0x1c21   : > { %v4133_v35 = vmul.f32 %v4132_v61, %v4125_v13 }
0x1c22   : > { %v5960_v58 = vpop.eup %5959  ;;  %v4142_v38 = vadd.f32 %v4140_v48, %v4134_v32 }
0x1c23   : > { %v4141_v20 = vadd.f32 %v4140_v48, %v4133_v35  ;;  %v4127_v41 = vmul.f32 %v5960_v58, %v4095_v27 }
0x1c24   : > { %4146 = vst.msk [vmem:[%s744_s2 + $0x8] sm:$0xff] %vm810_vm1, %v4142_v38 }
0x1c25   : > { %v4135_v14 = vmul.f32 %v4132_v61, %v4127_v41  ;;  %4145 = vst.msk [vmem:[%s744_s2] sm:$0xff] %vm810_vm1, %v4141_v20 }
0x1c26   : > { %v5962_v62 = vpop.eup %5961 }
0x1c27   : > { %v5964_v44 = vpop.eup %5963  ;;  %v4143_v50 = vadd.f32 %v4140_v48, %v4135_v14  ;;  %v4128_v39 = vmul.f32 %v5962_v62, %v4096_v49 }
0x1c28   : > { %v4258_v9 = vmul.f32 %v5964_v44, %v7454_v22 }
0x1c29   : > { %v4136_v15 = vmul.f32 %v4132_v61, %v4128_v39  ;;  %4147 = vst.msk [vmem:[%s744_s2 + $0x10] sm:$0xff] %vm810_vm1, %v4143_v50 }
0x1c2a   : > { %v4263_v46 = vmul.f32 %v4262_v36, %v4258_v9 }
0x1c2b   : > { %v4144_v5 = vadd.f32 %v4140_v48, %v4136_v15 }
0x1c2c   : > { %v4268_v30 = vadd.f32 %v4267_v37, %v4263_v46 }
0x1c2d   : > { %4148 = vst.msk [vmem:[%s744_s2 + $0x18] sm:$0xff] %vm810_vm1, %v4144_v5 }
0x1c2e   : > { %6213 = shalt.err (!%p6210_p12)
}
0x1c2f   : > { %s6214_s2 = scalar_lea.hbm %s7482_s0, 512  ;;  %s6218_s28 = scalar_lea.hbm %s7646_s23, 1024 }
0x1c30   : > { %p6215_p1 = scmp.ne.s32.totalorder %s7482_s0, %s6214_s2  ;;  %p6219_p4 = scmp.lt.u32.totalorder %s7482_s0, %s7646_s23 }
0x1c31   : > { %p6220_p7 = scmp.lt.u32.totalorder %s6218_s28, %s6214_s2  ;;  %p6222_p11 = scmp.lt.u32.totalorder %s6214_s2, %s7482_s0 }
0x1c32   : > { %p6216_p2 = pnand %p6215_p1, %p7649_p5 }
0x1c33   : > { %p6221_p8 = por %p6220_p7, %p6219_p4 }
0x1c34   : > { %p6217_p3 = pneg %p6216_p2 }
0x1c35   : > { %p6223_p0 = por %p6222_p11, %p6221_p8 }
0x1c37   : > { %p6224_p6 = pnand %p6223_p0, %p6217_p3 }
0x1c39   : > { %6227 = shalt.err (!%p6224_p6)
}
0x1c3a   : > { %s6339_s4 = smov 128   ;;  %s6340_s3 = smov 8   ;;  %4269 = vst.msk [vmem:[%s7486_s25] sm:$0xf] %vm4245_vm7, %v4268_v30 }
0x1c3b   : > { %5750 = dma.vmem_to_hbm [thread:$0]  (%p7649_p5), %s7489_s30, 512, %s7482_s0, %s4271_s1, %s6339_s4, %s6339_s4, %s6340_s3  }
0x1c3c   : > { %s4276_s2 = scalar_lea.sflag [#allocation18], %s7463_s22  ;;  %s6228_s21 = scalar_lea.vmem %s7496_s14, 64 }
0x1c3d   : > { %p6229_p9 = scmp.ne.s32.totalorder %s7496_s14, %s6228_s21  ;;  %s6341_s27 = smov [#allocation17]  }
0x1c3e   : > { %s6232_s28 = sshll.u32 %s6341_s27, 4  ;;  %s6233_s28 = int_to_ptr.vmem [resolvable:$false] %s6232_s28 }
0x1c3f   : > { %p6230_p10 = pnand %p6229_p9, %p7649_p5  ;;  %s6234_s18 = scalar_lea.vmem %s6233_s28, 128 }
0x1c40   : > { %p6235_p12 = scmp.lt.s32.totalorder %s7496_s14, %s6233_s28  ;;  %p6236_p1 = scmp.lt.s32.totalorder %s6234_s18, %s6228_s21 }
0x1c41   : > { %p6231_p13 = pneg %p6230_p10 }
0x1c42   : > { %p6237_p2 = por %p6236_p1, %p6235_p12 }
0x1c44   : > { %p6238_p3 = pnand %p6237_p2, %p6231_p13 }
0x1c46   : > { %6241 = shalt.err (!%p6238_p3)
}
0x1c47   : > { %s6242_s22 = scalar_lea.hbm %s7494_s29, 64  ;;  %s6246_s25 = scalar_lea.hbm %s7648_s19, 128 }
0x1c48   : > { %p6243_p4 = scmp.ne.s32.totalorder %s7494_s29, %s6242_s22  ;;  %p6247_p11 = scmp.lt.u32.totalorder %s7494_s29, %s7648_s19 }
0x1c49   : > { %p6248_p0 = scmp.lt.u32.totalorder %s6246_s25, %s6242_s22  ;;  %p6250_p9 = scmp.lt.u32.totalorder %s6242_s22, %s7494_s29 }
0x1c4a   : > { %p6244_p7 = pnand %p6243_p4, %p7649_p5 }
0x1c4b   : > { %p6249_p6 = por %p6248_p0, %p6247_p11 }
0x1c4c   : > { %p6245_p8 = pneg %p6244_p7 }
0x1c4d   : > { %p6251_p10 = por %p6250_p9, %p6249_p6 }
0x1c4f   : > { %p6252_p13 = pnand %p6251_p10, %p6245_p8 }
0x1c51   : > { %6255 = shalt.err (!%p6252_p13)
}
0x1c52   : > { %5751 = dma.vmem_to_hbm [thread:$0]  (%p7649_p5), %s7496_s14, 64, %s7494_s29, %s4276_s2  }
0x1c53 PF: > { %s7650_s4 = sld [smem:[#allocation29_spill]]  ;;  %s7651_s3 = sld [smem:[#allocation26_spill]] }
0x1c54   : > { %s7652_s21 = sld [smem:[#allocation33_spill]] }
0x1c59   : > { %p5802_p12 = scmp.ge.s32.totalorder %s7650_s4, 2  ;;  %s4317_s27 = sand.u32 1, %s7651_s3  }
0x1c5a   : > { %p7653_p1 = scmp.ne.s32.totalorder %s7652_s21, 0  ;;  %s4318_s28 = scalar_lea.sflag [#allocation4], %s4317_s27 }
0x1c5c   : > { %p5780_p2 = pnand %p5802_p12, %p7653_p1 }
0x1c5e   : > { %6293 = dma.done.wait (!%p5780_p2), %s4318_s28, 512  }
0x1c5f   : > { %6295 = vsyncadd (!%p5780_p2), %s4318_s28, 4294966784  ;;  %s4327_s18 = scalar_lea.sflag [#allocation18], %s4317_s27 }
0x1c60   : > { %6297 = dma.done.wait (!%p5780_p2), %s4327_s18, 64  }
0x1c61   : > { %6299 = vsyncadd (!%p5780_p2), %s4327_s18, 4294967232  ;;  %s7654_s21 = sld [smem:[#allocation30_spill]]  ;;  %s7655_s0 = sld [smem:[#allocation27_spill]] }
0x1c62   : > { %s7656_s30 = sld [smem:[#allocation28_spill]]  ;;  %s7657_s20 = sld [smem:[#allocation31_spill]] }
0x1c67   : > { %p38_p5 = scmp.ge.s32.totalorder %s7654_s21, 4  }
0x1c69   :  { %40 = sbr.rel (!%p38_p5) target bundleno = 20 (0x14), region = 192 }
0x1c70   :  { %4332 = vsyncpa [#allocation3], 1 }
0x1c71   :  { %4334 = vsyncpa [#allocation3 + $0x1], 1 }
0x1c72   :  { %4335 = vsyncpa [#allocation6], 1 }
0x1c73   :  { %4336 = vsyncpa [#allocation9], 1 }
0x1c74   :  { %4337 = vsyncpa [#allocation12], 1 }
0x1c75   :  { %4338 = vsyncpa [#allocation15], 1 }
0x1c76   :  { %4339 = vsyncpa [#allocation4], 1 }
0x1c77   :  { %4341 = vsyncpa [#allocation4 + $0x1], 1 }
0x1c78   :  { %4342 = vsyncpa [#allocation18], 1 }
0x1c79   :  { %4344 = vsyncpa [#allocation18 + $0x1], 1 }

</bundles_post_ra>
